<compile_context>
chip_gen: v6e
topology: v6e:2x2x1
jax: 0.10.0
libtpu: 0.0.40
codegen_flags: <defaults>
</compile_context>

<pallas_src>
import jax
import jax.numpy as jnp
import numpy as np
from jax.experimental import pallas as pl
from jax.experimental.pallas import tpu as pltpu


_VMEM_BUDGET = 40 * 1024 * 1024  # conservative: leaves headroom under v7x's 64 MiB VMEM


def _pick_row_block(h_out, wp, c_out_padded, itemsize, n_batch, budget_bytes):
    """Largest output-row block `hb` such that hb | h_out, the output block's
    sublane dim (hb*wp) is 8-aligned (or the full dim), the double-buffered
    output block + f32 accumulator fit the VMEM budget, and the grid keeps
    >= 2 steps when the batch axis alone cannot feed both v7x TensorCores."""
    valid = []
    for hb in range(1, h_out + 1):
        if h_out % hb:
            continue
        if (hb * wp) % 8 and hb != h_out:
            continue
        if hb * wp * c_out_padded * (2 * itemsize + 4) > budget_bytes:
            continue
        valid.append(hb)
    if not valid:
        return h_out
    if n_batch < 2:
        multi = [hb for hb in valid if h_out // hb >= 2]
        if multi:
            return max(multi)
    return max(valid)


def _conv_tap_kernel(k, wp, flat_blk, neg_slope, apply_act, has_bias):
    """K*K shifted-matmul conv over a flattened (H*W, C) layout.

    x_ref: ((Hp+1)*Wp, C_in)   whole padded image, resident per batch item
    w_ref: (K*K, C_in, C_out)  equalized-lr scale already folded in
    b_ref: (1, C_out) f32      per-channel bias
    o_ref: (flat_blk, C_out)   one block of flattened output rows
    """

    def kernel(x_ref, w_ref, b_ref, o_ref):
        # flat_blk is a multiple of 8 whenever there is more than one row
        # block (see _pick_row_block), so this alignment hint always holds.
        r0 = pl.multiple_of(pl.program_id(1) * flat_blk, 8)
        acc = None
        for ki in range(k):            # static unroll: K*K MXU matmuls
            for kj in range(k):
                tap = x_ref[pl.ds(r0 + ki * wp + kj, flat_blk), :]
                part = jnp.dot(tap, w_ref[ki * k + kj],
                               preferred_element_type=jnp.float32)
                acc = part if acc is None else acc + part
        if apply_act:                  # LeakyReLU fused into the epilogue
            acc = jnp.where(acc >= 0.0, acc, jnp.float32(neg_slope) * acc)
        if has_bias:                   # bias added AFTER activation (as in the module)
            acc = acc + b_ref[...]
        o_ref[...] = acc.astype(o_ref.dtype)

    return kernel


def equal_conv_transpose2d(x, weight, bias=None, *, activation=True,
                           negative_slope=0.2, padding=2):
    """Forward of EqualConvTranspose2d (NCHW in, NCHW out)."""
    n, c_in, h, w = x.shape
    c_out, c_in_w, k, k2 = weight.shape
    assert c_in_w == c_in and k == k2

    # Equalized-lr scale folded into the (tiny) weight at trace time;
    # relayout to (K*K, C_in, C_out): one (C_in, C_out) matmul per tap.
    scale = 1.0 / np.sqrt(c_in * k * k + 1e-8)
    w_taps = jnp.transpose(weight * scale, (2, 3, 1, 0)).reshape(k * k, c_in, c_out)

    hp, wp = h + 2 * padding, w + 2 * padding
    h_out, w_out = hp - k + 1, wp - k + 1
    assert h_out >= 1 and w_out >= 1 and wp >= k - 1

    # Channels-last relayout with the conv halo fused into a single pad (one
    # extra bottom row keeps every flattened tap read in bounds).
    x_nhwc = jnp.transpose(x, (0, 2, 3, 1))
    xp = jnp.pad(x_nhwc, ((0, 0), (padding, padding + 1), (padding, padding), (0, 0)))
    flat_len = (hp + 1) * wp
    xp_flat = xp.reshape(n, flat_len, c_in)

    has_bias = bias is not None
    b2d = (jnp.reshape(bias, (1, c_out)).astype(jnp.float32) if has_bias
           else jnp.zeros((1, c_out), jnp.float32))

    # --- block sizing against an explicit VMEM budget (v7x-safe) ------------
    itemsize = jnp.dtype(x.dtype).itemsize
    lane_pad = lambda c: -(-c // 128) * 128
    sub_pad = lambda r: -(-r // 8) * 8
    # TODO(synk): very large feature maps would additionally need spatial tiling
    # of the resident input block (halo DMA via pl.ANY); not needed at the
    # scales exercised here.
    in_blk_bytes = 2 * sub_pad(flat_len) * lane_pad(c_in) * itemsize
    hb = _pick_row_block(h_out, wp, lane_pad(c_out), itemsize, n,
                         max(_VMEM_BUDGET - in_blk_bytes, 1 << 20))
    flat_blk = hb * wp
    n_hblk = h_out // hb
    out_blk_bytes = sub_pad(flat_blk) * lane_pad(c_out) * (2 * itemsize + 4)
    vmem_limit = int(min(64 << 20, in_blk_bytes + out_blk_bytes + (8 << 20)))

    kernel = _conv_tap_kernel(k, wp, flat_blk, float(negative_slope),
                              bool(activation), has_bias)
    out_flat = pl.pallas_call(
        kernel,
        out_shape=jax.ShapeDtypeStruct((n, n_hblk * flat_blk, c_out), x.dtype),
        grid=(n, n_hblk),
        in_specs=[
            # whole padded image per batch item; block index ignores the row
            # axis so it stays resident in VMEM across the row blocks.
            pl.BlockSpec((None, flat_len, c_in), lambda ni, hi: (ni, 0, 0)),
            pl.BlockSpec((k * k, c_in, c_out), lambda ni, hi: (0, 0, 0)),
            pl.BlockSpec((1, c_out), lambda ni, hi: (0, 0)),
        ],
        out_specs=pl.BlockSpec((None, flat_blk, c_out), lambda ni, hi: (ni, hi, 0)),
        compiler_params=pltpu.CompilerParams(
            dimension_semantics=("parallel", "parallel"),
            vmem_limit_bytes=vmem_limit),
    )(xp_flat, w_taps, b2d)

    # Drop the (K-1) wrap-around columns of each flattened row, back to NCHW.
    out = out_flat.reshape(n, h_out, wp, c_out)[:, :, :w_out, :]
    return jnp.transpose(out, (0, 3, 1, 2))


def equal_conv_transpose2d_ref(x, weight, bias=None, *, activation=True,
                               negative_slope=0.2, padding=2):
    """Pure-JAX reference matching the PyTorch module."""
    c_in = x.shape[1]
    k = weight.shape[-1]
    scale = 1.0 / np.sqrt(c_in * k * k + 1e-8)
    out = jax.lax.conv_general_dilated(
        x, weight * scale, window_strides=(1, 1),
        padding=((padding, padding), (padding, padding)),
        dimension_numbers=("NCHW", "OIHW", "NCHW"),
        precision=jax.lax.Precision.HIGHEST)
    if activation:
        out = jnp.where(out >= 0, out, negative_slope * out)
    if bias is not None:
        out = out + jnp.reshape(bias, (1, -1, 1, 1))
    return out


if __name__ == "__main__":
    key = jax.random.PRNGKey(0)
    k_x, k_w = jax.random.split(key)

    # Small module-consistent config: in=4, out=8, kernel=3; the module
    # hardcodes stride=1, padding=2, so H_out = H + 2.
    N, C_IN, H, W = 2, 4, 16, 16
    C_OUT, K = 8, 3
    x = jax.random.normal(k_x, (N, C_IN, H, W), dtype=jnp.float32)
    weight = jax.random.normal(k_w, (C_OUT, C_IN, K, K), dtype=jnp.float32)
    bias = jnp.full((1, C_OUT, 1, 1), 0.1, dtype=jnp.float32)  # bias_init=0.1

    out = equal_conv_transpose2d(x, weight, bias, activation=True)
    out = jax.block_until_ready(out)

    ref = equal_conv_transpose2d_ref(x, weight, bias, activation=True)
    # f32 matmuls on the TPU MXU may run as bf16-pass decompositions that can
    # differ between the Pallas kernel and the XLA reference conv; compare with
    # a tolerance that absorbs that while still catching structural bugs.
    np.testing.assert_allclose(np.asarray(out), np.asarray(ref), rtol=1e-2, atol=1e-2)
    assert out.shape == (N, C_OUT, H + 2 * 2 - K + 1, W + 2 * 2 - K + 1)

    print("KERNEL_OK")
</pallas_src>

<mosaic_0001>
module attributes {stable_mosaic.version = 11 : i64} {
  func.func @kernel(%arg0: i32, %arg1: i32, %arg2: memref<1x420x4xf32, #tpu.memory_space<vmem>>, %arg3: memref<9x4x8xf32, #tpu.memory_space<vmem>>, %arg4: memref<1x8xf32, #tpu.memory_space<vmem>>, %arg5: memref<1x360x8xf32, #tpu.memory_space<vmem>>) attributes {dimension_semantics = [#tpu.dimension_semantics<parallel>, #tpu.dimension_semantics<parallel>], iteration_bounds = array<i64: 2, 1>, scalar_prefetch = 0 : i64, scratch_operands = 0 : i64, tpu.core_type = #tpu.core_type<tc>, window_params = [{transform_indices = @transform_0, window_bounds = array<i64: 1, 420, 4>}, {pipeline_mode = #tpu.pipeline_mode<synchronous>, transform_indices = @transform_1, window_bounds = array<i64: 9, 4, 8>}, {pipeline_mode = #tpu.pipeline_mode<synchronous>, transform_indices = @transform_2, window_bounds = array<i64: 1, 8>}, {transform_indices = @transform_3, window_bounds = array<i64: 1, 360, 8>}]} {
    %c360_i32 = arith.constant 360 : i32
    %0 = arith.muli %arg1, %c360_i32 : i32
    %1 = tpu.assume_multiple %0, 8 : i32
    %c0_i32 = arith.constant 0 : i32
    %2 = arith.addi %1, %c0_i32 : i32
    %c0_i32_0 = arith.constant 0 : i32
    %3 = arith.addi %2, %c0_i32_0 : i32
    %c0 = arith.constant 0 : index
    %4 = arith.index_cast %3 : i32 to index
    %c0_1 = arith.constant 0 : index
    %5 = vector.load %arg2[%c0, %4, %c0_1] : memref<1x420x4xf32, #tpu.memory_space<vmem>>, vector<1x360x4xf32>
    %6 = vector.shape_cast %5 : vector<1x360x4xf32> to vector<360x4xf32>
    %c0_2 = arith.constant 0 : index
    %c0_3 = arith.constant 0 : index
    %c0_4 = arith.constant 0 : index
    %7 = vector.load %arg3[%c0_2, %c0_3, %c0_4] : memref<9x4x8xf32, #tpu.memory_space<vmem>>, vector<1x4x8xf32>
    %8 = vector.shape_cast %7 : vector<1x4x8xf32> to vector<4x8xf32>
    %cst = arith.constant dense<0.000000e+00> : vector<360x8xf32>
    %9 = tpu.matmul %6, %8, %cst {dimension_numbers = #tpu.dot_dimension_numbers<[1], [0], [0], [1], [0, 0, 1, 1], [], []>} : vector<360x4xf32>, vector<4x8xf32>, vector<360x8xf32> -> vector<360x8xf32>
    %c0_i32_5 = arith.constant 0 : i32
    %10 = arith.addi %1, %c0_i32_5 : i32
    %c1_i32 = arith.constant 1 : i32
    %11 = arith.addi %10, %c1_i32 : i32
    %c0_6 = arith.constant 0 : index
    %12 = arith.index_cast %11 : i32 to index
    %c0_7 = arith.constant 0 : index
    %13 = vector.load %arg2[%c0_6, %12, %c0_7] : memref<1x420x4xf32, #tpu.memory_space<vmem>>, vector<1x360x4xf32>
    %14 = vector.shape_cast %13 : vector<1x360x4xf32> to vector<360x4xf32>
    %c1 = arith.constant 1 : index
    %c0_8 = arith.constant 0 : index
    %c0_9 = arith.constant 0 : index
    %15 = vector.load %arg3[%c1, %c0_8, %c0_9] : memref<9x4x8xf32, #tpu.memory_space<vmem>>, vector<1x4x8xf32>
    %16 = vector.shape_cast %15 : vector<1x4x8xf32> to vector<4x8xf32>
    %cst_10 = arith.constant dense<0.000000e+00> : vector<360x8xf32>
    %17 = tpu.matmul %14, %16, %cst_10 {dimension_numbers = #tpu.dot_dimension_numbers<[1], [0], [0], [1], [0, 0, 1, 1], [], []>} : vector<360x4xf32>, vector<4x8xf32>, vector<360x8xf32> -> vector<360x8xf32>
    %18 = arith.addf %9, %17 : vector<360x8xf32>
    %c0_i32_11 = arith.constant 0 : i32
    %19 = arith.addi %1, %c0_i32_11 : i32
    %c2_i32 = arith.constant 2 : i32
    %20 = arith.addi %19, %c2_i32 : i32
    %c0_12 = arith.constant 0 : index
    %21 = arith.index_cast %20 : i32 to index
    %c0_13 = arith.constant 0 : index
    %22 = vector.load %arg2[%c0_12, %21, %c0_13] : memref<1x420x4xf32, #tpu.memory_space<vmem>>, vector<1x360x4xf32>
    %23 = vector.shape_cast %22 : vector<1x360x4xf32> to vector<360x4xf32>
    %c2 = arith.constant 2 : index
    %c0_14 = arith.constant 0 : index
    %c0_15 = arith.constant 0 : index
    %24 = vector.load %arg3[%c2, %c0_14, %c0_15] : memref<9x4x8xf32, #tpu.memory_space<vmem>>, vector<1x4x8xf32>
    %25 = vector.shape_cast %24 : vector<1x4x8xf32> to vector<4x8xf32>
    %cst_16 = arith.constant dense<0.000000e+00> : vector<360x8xf32>
    %26 = tpu.matmul %23, %25, %cst_16 {dimension_numbers = #tpu.dot_dimension_numbers<[1], [0], [0], [1], [0, 0, 1, 1], [], []>} : vector<360x4xf32>, vector<4x8xf32>, vector<360x8xf32> -> vector<360x8xf32>
    %27 = arith.addf %18, %26 : vector<360x8xf32>
    %c20_i32 = arith.constant 20 : i32
    %28 = arith.addi %1, %c20_i32 : i32
    %c0_i32_17 = arith.constant 0 : i32
    %29 = arith.addi %28, %c0_i32_17 : i32
    %c0_18 = arith.constant 0 : index
    %30 = arith.index_cast %29 : i32 to index
    %c0_19 = arith.constant 0 : index
    %31 = vector.load %arg2[%c0_18, %30, %c0_19] : memref<1x420x4xf32, #tpu.memory_space<vmem>>, vector<1x360x4xf32>
    %32 = vector.shape_cast %31 : vector<1x360x4xf32> to vector<360x4xf32>
    %c3 = arith.constant 3 : index
    %c0_20 = arith.constant 0 : index
    %c0_21 = arith.constant 0 : index
    %33 = vector.load %arg3[%c3, %c0_20, %c0_21] : memref<9x4x8xf32, #tpu.memory_space<vmem>>, vector<1x4x8xf32>
    %34 = vector.shape_cast %33 : vector<1x4x8xf32> to vector<4x8xf32>
    %cst_22 = arith.constant dense<0.000000e+00> : vector<360x8xf32>
    %35 = tpu.matmul %32, %34, %cst_22 {dimension_numbers = #tpu.dot_dimension_numbers<[1], [0], [0], [1], [0, 0, 1, 1], [], []>} : vector<360x4xf32>, vector<4x8xf32>, vector<360x8xf32> -> vector<360x8xf32>
    %36 = arith.addf %27, %35 : vector<360x8xf32>
    %c20_i32_23 = arith.constant 20 : i32
    %37 = arith.addi %1, %c20_i32_23 : i32
    %c1_i32_24 = arith.constant 1 : i32
    %38 = arith.addi %37, %c1_i32_24 : i32
    %c0_25 = arith.constant 0 : index
    %39 = arith.index_cast %38 : i32 to index
    %c0_26 = arith.constant 0 : index
    %40 = vector.load %arg2[%c0_25, %39, %c0_26] : memref<1x420x4xf32, #tpu.memory_space<vmem>>, vector<1x360x4xf32>
    %41 = vector.shape_cast %40 : vector<1x360x4xf32> to vector<360x4xf32>
    %c4 = arith.constant 4 : index
    %c0_27 = arith.constant 0 : index
    %c0_28 = arith.constant 0 : index
    %42 = vector.load %arg3[%c4, %c0_27, %c0_28] : memref<9x4x8xf32, #tpu.memory_space<vmem>>, vector<1x4x8xf32>
    %43 = vector.shape_cast %42 : vector<1x4x8xf32> to vector<4x8xf32>
    %cst_29 = arith.constant dense<0.000000e+00> : vector<360x8xf32>
    %44 = tpu.matmul %41, %43, %cst_29 {dimension_numbers = #tpu.dot_dimension_numbers<[1], [0], [0], [1], [0, 0, 1, 1], [], []>} : vector<360x4xf32>, vector<4x8xf32>, vector<360x8xf32> -> vector<360x8xf32>
    %45 = arith.addf %36, %44 : vector<360x8xf32>
    %c20_i32_30 = arith.constant 20 : i32
    %46 = arith.addi %1, %c20_i32_30 : i32
    %c2_i32_31 = arith.constant 2 : i32
    %47 = arith.addi %46, %c2_i32_31 : i32
    %c0_32 = arith.constant 0 : index
    %48 = arith.index_cast %47 : i32 to index
    %c0_33 = arith.constant 0 : index
    %49 = vector.load %arg2[%c0_32, %48, %c0_33] : memref<1x420x4xf32, #tpu.memory_space<vmem>>, vector<1x360x4xf32>
    %50 = vector.shape_cast %49 : vector<1x360x4xf32> to vector<360x4xf32>
    %c5 = arith.constant 5 : index
    %c0_34 = arith.constant 0 : index
    %c0_35 = arith.constant 0 : index
    %51 = vector.load %arg3[%c5, %c0_34, %c0_35] : memref<9x4x8xf32, #tpu.memory_space<vmem>>, vector<1x4x8xf32>
    %52 = vector.shape_cast %51 : vector<1x4x8xf32> to vector<4x8xf32>
    %cst_36 = arith.constant dense<0.000000e+00> : vector<360x8xf32>
    %53 = tpu.matmul %50, %52, %cst_36 {dimension_numbers = #tpu.dot_dimension_numbers<[1], [0], [0], [1], [0, 0, 1, 1], [], []>} : vector<360x4xf32>, vector<4x8xf32>, vector<360x8xf32> -> vector<360x8xf32>
    %54 = arith.addf %45, %53 : vector<360x8xf32>
    %c40_i32 = arith.constant 40 : i32
    %55 = arith.addi %1, %c40_i32 : i32
    %c0_i32_37 = arith.constant 0 : i32
    %56 = arith.addi %55, %c0_i32_37 : i32
    %c0_38 = arith.constant 0 : index
    %57 = arith.index_cast %56 : i32 to index
    %c0_39 = arith.constant 0 : index
    %58 = vector.load %arg2[%c0_38, %57, %c0_39] : memref<1x420x4xf32, #tpu.memory_space<vmem>>, vector<1x360x4xf32>
    %59 = vector.shape_cast %58 : vector<1x360x4xf32> to vector<360x4xf32>
    %c6 = arith.constant 6 : index
    %c0_40 = arith.constant 0 : index
    %c0_41 = arith.constant 0 : index
    %60 = vector.load %arg3[%c6, %c0_40, %c0_41] : memref<9x4x8xf32, #tpu.memory_space<vmem>>, vector<1x4x8xf32>
    %61 = vector.shape_cast %60 : vector<1x4x8xf32> to vector<4x8xf32>
    %cst_42 = arith.constant dense<0.000000e+00> : vector<360x8xf32>
    %62 = tpu.matmul %59, %61, %cst_42 {dimension_numbers = #tpu.dot_dimension_numbers<[1], [0], [0], [1], [0, 0, 1, 1], [], []>} : vector<360x4xf32>, vector<4x8xf32>, vector<360x8xf32> -> vector<360x8xf32>
    %63 = arith.addf %54, %62 : vector<360x8xf32>
    %c40_i32_43 = arith.constant 40 : i32
    %64 = arith.addi %1, %c40_i32_43 : i32
    %c1_i32_44 = arith.constant 1 : i32
    %65 = arith.addi %64, %c1_i32_44 : i32
    %c0_45 = arith.constant 0 : index
    %66 = arith.index_cast %65 : i32 to index
    %c0_46 = arith.constant 0 : index
    %67 = vector.load %arg2[%c0_45, %66, %c0_46] : memref<1x420x4xf32, #tpu.memory_space<vmem>>, vector<1x360x4xf32>
    %68 = vector.shape_cast %67 : vector<1x360x4xf32> to vector<360x4xf32>
    %c7 = arith.constant 7 : index
    %c0_47 = arith.constant 0 : index
    %c0_48 = arith.constant 0 : index
    %69 = vector.load %arg3[%c7, %c0_47, %c0_48] : memref<9x4x8xf32, #tpu.memory_space<vmem>>, vector<1x4x8xf32>
    %70 = vector.shape_cast %69 : vector<1x4x8xf32> to vector<4x8xf32>
    %cst_49 = arith.constant dense<0.000000e+00> : vector<360x8xf32>
    %71 = tpu.matmul %68, %70, %cst_49 {dimension_numbers = #tpu.dot_dimension_numbers<[1], [0], [0], [1], [0, 0, 1, 1], [], []>} : vector<360x4xf32>, vector<4x8xf32>, vector<360x8xf32> -> vector<360x8xf32>
    %72 = arith.addf %63, %71 : vector<360x8xf32>
    %c40_i32_50 = arith.constant 40 : i32
    %73 = arith.addi %1, %c40_i32_50 : i32
    %c2_i32_51 = arith.constant 2 : i32
    %74 = arith.addi %73, %c2_i32_51 : i32
    %c0_52 = arith.constant 0 : index
    %75 = arith.index_cast %74 : i32 to index
    %c0_53 = arith.constant 0 : index
    %76 = vector.load %arg2[%c0_52, %75, %c0_53] : memref<1x420x4xf32, #tpu.memory_space<vmem>>, vector<1x360x4xf32>
    %77 = vector.shape_cast %76 : vector<1x360x4xf32> to vector<360x4xf32>
    %c8 = arith.constant 8 : index
    %c0_54 = arith.constant 0 : index
    %c0_55 = arith.constant 0 : index
    %78 = vector.load %arg3[%c8, %c0_54, %c0_55] : memref<9x4x8xf32, #tpu.memory_space<vmem>>, vector<1x4x8xf32>
    %79 = vector.shape_cast %78 : vector<1x4x8xf32> to vector<4x8xf32>
    %cst_56 = arith.constant dense<0.000000e+00> : vector<360x8xf32>
    %80 = tpu.matmul %77, %79, %cst_56 {dimension_numbers = #tpu.dot_dimension_numbers<[1], [0], [0], [1], [0, 0, 1, 1], [], []>} : vector<360x4xf32>, vector<4x8xf32>, vector<360x8xf32> -> vector<360x8xf32>
    %81 = arith.addf %72, %80 : vector<360x8xf32>
    %cst_57 = arith.constant 0.000000e+00 : f32
    %82 = vector.broadcast %cst_57 : f32 to vector<360x8xf32>
    %83 = arith.cmpf oge, %81, %82 : vector<360x8xf32>
    %cst_58 = arith.constant 2.000000e-01 : f32
    %84 = vector.broadcast %cst_58 : f32 to vector<360x8xf32>
    %85 = arith.mulf %84, %81 : vector<360x8xf32>
    %86 = arith.select %83, %81, %85 : vector<360x8xi1>, vector<360x8xf32>
    %c0_59 = arith.constant 0 : index
    %c0_60 = arith.constant 0 : index
    %87 = vector.load %arg4[%c0_59, %c0_60] : memref<1x8xf32, #tpu.memory_space<vmem>>, vector<1x8xf32>
    %88 = vector.broadcast %87 : vector<1x8xf32> to vector<360x8xf32>
    %89 = arith.addf %86, %88 : vector<360x8xf32>
    %c0_61 = arith.constant 0 : index
    %c0_62 = arith.constant 0 : index
    %c0_63 = arith.constant 0 : index
    %90 = vector.load %arg5[%c0_61, %c0_62, %c0_63] : memref<1x360x8xf32, #tpu.memory_space<vmem>>, vector<1x360x8xf32>
    %91 = vector.shape_cast %90 : vector<1x360x8xf32> to vector<360x8xf32>
    %92 = vector.shape_cast %89 : vector<360x8xf32> to vector<1x360x8xf32>
    tpu.vector_store %arg5[%c0_61, %c0_62, %c0_63], %92 {strides = array<i32>} : memref<1x360x8xf32, #tpu.memory_space<vmem>>, vector<1x360x8xf32>,
    return
  }
  func.func @transform_0(%arg0: i32, %arg1: i32) -> (i32, i32, i32) {
    %c0_i32 = arith.constant 0 : i32
    %c0_i32_0 = arith.constant 0 : i32
    %c0_i32_1 = arith.constant 0 : i32
    return %arg0, %c0_i32, %c0_i32_0 : i32, i32, i32
  }
  func.func @transform_1(%arg0: i32, %arg1: i32) -> (i32, i32, i32) {
    %c0_i32 = arith.constant 0 : i32
    %c0_i32_0 = arith.constant 0 : i32
    %c0_i32_1 = arith.constant 0 : i32
    %c0_i32_2 = arith.constant 0 : i32
    return %c0_i32, %c0_i32_0, %c0_i32_1 : i32, i32, i32
  }
  func.func @transform_2(%arg0: i32, %arg1: i32) -> (i32, i32) {
    %c0_i32 = arith.constant 0 : i32
    %c0_i32_0 = arith.constant 0 : i32
    %c0_i32_1 = arith.constant 0 : i32
    return %c0_i32, %c0_i32_0 : i32, i32
  }
  func.func @transform_3(%arg0: i32, %arg1: i32) -> (i32, i32, i32) {
    %c0_i32 = arith.constant 0 : i32
    %c0_i32_0 = arith.constant 0 : i32
    return %arg0, %arg1, %c0_i32 : i32, i32, i32
  }
}

</mosaic_0001>

<bundles_post_ra>
// kernel: tpu_custom_call.1
= control target key start
LH: loop header
LB: loop body
LE: loop exit
PB: predicated region body
PF: predicated region fallthrough
CT: control target
= control target key end

     0   :  { %s7658_s12 = smov 0   ;;  %s7660_s13 = smov 0   ;;  %s10046_s0 = inlined_call_operand.vmem [shape: f32[2,420,4], index: 0, kind: input, shape index: {}]   ;;  %s10047_s1 = inlined_call_operand.vmem [shape: f32[9,4,8], index: 1, kind: input, shape index: {}]   ;;  %s10048_s2 = inlined_call_operand.vmem [shape: f32[1,8], index: 2, kind: input, shape index: {}]   ;;  %s10049_s3 = inlined_call_operand.vmem [shape: f32[2,360,8], index: 3, kind: output, shape index: {}]  }
   0x1   :  { %s7662_s14 = smov 0  }
   0x2 LB: > { %s25_s15 = sadd.s32 1, %s7630_s13  ;;  %p5147_p0 = scmp.ge.s32.totalorder %s7634_s14, 1  ;;  %s7634_s14 = sphi %s7662_s14, %s13_s14   ;;  %s7630_s13 = sphi %s7660_s13, %s10051_s13   ;;  %s7626_s12 = sphi %s7658_s12, %s10050_s12  }
   0x3   : > { %p27_p1 = scmp.ge.s32.totalorder %s25_s15, 2  ;;  %p151_p2 = scmp.lt.s32.totalorder %s7634_s14, 3 }
   0x5   : > { %s10053_s15 = smov (%p27_p1, %s25_s15), 0  ;;  %p152_p3 = pnand %p5147_p0, %p151_p2 }
   0x6   : > { %p179_p4 = scmp.lt.s32.totalorder (!%p152_p3), %s7626_s12, 1 }
   0x7   : > { %155 = sbr.rel (%p152_p3) target bundleno = 1026 (0x402), region = 32 }
   0xc   : > { %v5195_v0 = vld [vmem:[%s10047_s1 + $0x4] sm:$0xf]  ;;  %vm427_vm0 = vcmask 1043456   ;;  %v7636_v1 = vmov 0.0   ;;  %s10055_s12 = smov (!%p179_p4, %s7626_s12), 1  ;;  %vm7637_vm1 = vmmov 0  }
   0xd   : > { %6349 = vmatprep.subr.mxu0 %v7636_v1  ;;  %7582 = vmatprep.subr.mxu1 %v7636_v1  ;;  %s7584_s18 = smul.u32 424, %s10055_s12  ;;  %vm291_vm2 = vcmask 31744   ;;  %v5333_v2 = vld [vmem:[%s10047_s1 + $0x8] sm:$0xf]  ;;  %v241_v3 = vld [vmem:[%s10047_s1] sm:$0xf] }
   0xe   : > { %6350 = vmatpush3.msk.msra.mxu0 %vm427_vm0, %v5195_v0  ;;  %7583 = vmatpush3.msk.msra.mxu1 %vm427_vm0, %v5195_v0  ;;  %v5425_v50 = vld [vmem:[%s10047_s1 + $0xc] sm:$0xf]  ;;  %v5517_v53 = vld [vmem:[%s10047_s1 + $0x10] sm:$0xf]  ;;  %s7585_s11 = smul.u32 360, %s10055_s12  ;;  %vm4990_vm4 = vcmask 64512  }
   0xf   : > { %6351 = vmatprep.mubr.msk.f32.mxu0 %vm7637_vm1, %v7636_v1  ;;  %6420 = vmatprep.mubr.msk.f32.mxu1 %vm7637_vm1, %v7636_v1  ;;  %s7695_s21 = scalar_lea.vmem %s10046_s0, %s7584_s18 }
  0x10   : > { %6623 = vmatprep.subr.mxu0 %v7636_v1  ;;  %6486 = vmatprep.subr.mxu1 %v7636_v1  ;;  %v5150_v4 = vld [vmem:[%s7695_s21 + $0x1] sm:$0xff]  ;;  %v5173_v5 = vld [vmem:[%s7695_s21 + $0xb9] sm:$0xff]  ;;  %v5151_v6 = vld [vmem:[%s7695_s21 + $0x9] sm:$0xff]  ;;  %s9857_s20 = scalar_lea.vmem %s10049_s3, %s7585_s11 }
  0x11   : > { %6352 = vmatmul.mubr.msk.f32.vlgmr.msra.gmra.mxu0 %vm291_vm2, %v5150_v4  ;;  %6421 = vmatmul.mubr.msk.f32.vlgmr.msra.gmra.mxu1 %vm291_vm2, %v5173_v5  ;;  %v5174_v7 = vld [vmem:[%s7695_s21 + $0xc1] sm:$0xff]  ;;  %v5152_v8 = vld [vmem:[%s7695_s21 + $0x11] sm:$0xff]  ;;  %v5175_v9 = vld [vmem:[%s7695_s21 + $0xc9] sm:$0xff] }
  0x12   : > { %6624 = vmatpush3.msk.msra.mxu0 %vm427_vm0, %v5333_v2  ;;  %6487 = vmatpush3.msk.msra.mxu1 %vm427_vm0, %v241_v3  ;;  %v5153_v10 = vld [vmem:[%s7695_s21 + $0x19] sm:$0xff]  ;;  %v5176_v11 = vld [vmem:[%s7695_s21 + $0xd1] sm:$0xff]  ;;  %v5154_v12 = vld [vmem:[%s7695_s21 + $0x21] sm:$0xff] }
  0x13   : > { %6354 = vmatprep.mubr.msk.f32.mxu0 %vm7637_vm1, %v7636_v1  ;;  %6423 = vmatprep.mubr.msk.f32.mxu1 %vm7637_vm1, %v7636_v1  ;;  %v5177_v13 = vld [vmem:[%s7695_s21 + $0xd9] sm:$0xff]  ;;  %v5155_v14 = vld [vmem:[%s7695_s21 + $0x29] sm:$0xff]  ;;  %v5178_v15 = vld [vmem:[%s7695_s21 + $0xe1] sm:$0xff] }
  0x14   : > { %6760 = vmatprep.subr.mxu1 %v7636_v1  ;;  %6897 = vmatprep.subr.mxu0 %v7636_v1  ;;  %v5156_v16 = vld [vmem:[%s7695_s21 + $0x31] sm:$0xff]  ;;  %v5179_v17 = vld [vmem:[%s7695_s21 + $0xe9] sm:$0xff]  ;;  %v5157_v18 = vld [vmem:[%s7695_s21 + $0x39] sm:$0xff] }
  0x15   : > { %6355 = vmatmul.mubr.msk.f32.gmra.mxu0 %vm291_vm2, %v5151_v6  ;;  %6424 = vmatmul.mubr.msk.f32.gmra.mxu1 %vm291_vm2, %v5174_v7  ;;  %v5180_v19 = vld [vmem:[%s7695_s21 + $0xf1] sm:$0xff]  ;;  %v5158_v20 = vld [vmem:[%s7695_s21 + $0x41] sm:$0xff]  ;;  %v5181_v21 = vld [vmem:[%s7695_s21 + $0xf9] sm:$0xff] }
  0x16   : > { %6357 = vmatprep.mubr.msk.f32.mxu0 %vm7637_vm1, %v7636_v1  ;;  %6426 = vmatprep.mubr.msk.f32.mxu1 %vm7637_vm1, %v7636_v1  ;;  %v5159_v22 = vld [vmem:[%s7695_s21 + $0x49] sm:$0xff]  ;;  %v5182_v23 = vld [vmem:[%s7695_s21 + $0x101] sm:$0xff]  ;;  %v5160_v24 = vld [vmem:[%s7695_s21 + $0x51] sm:$0xff] }
  0x17   : > { %v5183_v25 = vld [vmem:[%s7695_s21 + $0x109] sm:$0xff]  ;;  %v5161_v26 = vld [vmem:[%s7695_s21 + $0x59] sm:$0xff]  ;;  %v5184_v27 = vld [vmem:[%s7695_s21 + $0x111] sm:$0xff] }
  0x18   : > { %v5162_v28 = vld [vmem:[%s7695_s21 + $0x61] sm:$0xff]  ;;  %v5185_v29 = vld [vmem:[%s7695_s21 + $0x119] sm:$0xff]  ;;  %v5163_v30 = vld [vmem:[%s7695_s21 + $0x69] sm:$0xff] }
  0x19   : > { %6358 = vmatmul.mubr.msk.f32.gmra.mxu0 %vm291_vm2, %v5152_v8  ;;  %6427 = vmatmul.mubr.msk.f32.gmra.mxu1 %vm291_vm2, %v5175_v9  ;;  %v5186_v31 = vld [vmem:[%s7695_s21 + $0x121] sm:$0xff]  ;;  %v5164_v32 = vld [vmem:[%s7695_s21 + $0x71] sm:$0xff]  ;;  %v5187_v33 = vld [vmem:[%s7695_s21 + $0x129] sm:$0xff] }
  0x1a   : > { %6360 = vmatprep.mubr.msk.f32.mxu0 %vm7637_vm1, %v7636_v1  ;;  %6429 = vmatprep.mubr.msk.f32.mxu1 %vm7637_vm1, %v7636_v1  ;;  %v5165_v34 = vld [vmem:[%s7695_s21 + $0x79] sm:$0xff]  ;;  %v5188_v35 = vld [vmem:[%s7695_s21 + $0x131] sm:$0xff]  ;;  %v5166_v36 = vld [vmem:[%s7695_s21 + $0x81] sm:$0xff] }
  0x1b   : > { %v5189_v37 = vld [vmem:[%s7695_s21 + $0x139] sm:$0xff]  ;;  %v5167_v38 = vld [vmem:[%s7695_s21 + $0x89] sm:$0xff]  ;;  %v5190_v39 = vld [vmem:[%s7695_s21 + $0x141] sm:$0xff] }
  0x1c   : > { %v5168_v40 = vld [vmem:[%s7695_s21 + $0x91] sm:$0xff]  ;;  %v5191_v41 = vld [vmem:[%s7695_s21 + $0x149] sm:$0xff]  ;;  %v5169_v42 = vld [vmem:[%s7695_s21 + $0x99] sm:$0xff] }
  0x1d   : > { %6361 = vmatmul.mubr.msk.f32.gmra.mxu0 %vm291_vm2, %v5153_v10  ;;  %6430 = vmatmul.mubr.msk.f32.gmra.mxu1 %vm291_vm2, %v5176_v11  ;;  %v5192_v43 = vld [vmem:[%s7695_s21 + $0x151] sm:$0xff]  ;;  %v5170_v44 = vld [vmem:[%s7695_s21 + $0xa1] sm:$0xff]  ;;  %v5193_v45 = vld [vmem:[%s7695_s21 + $0x159] sm:$0xff] }
  0x1e   : > { %6363 = vmatprep.mubr.msk.f32.mxu0 %vm7637_vm1, %v7636_v1  ;;  %6432 = vmatprep.mubr.msk.f32.mxu1 %vm7637_vm1, %v7636_v1  ;;  %v5171_v46 = vld [vmem:[%s7695_s21 + $0xa9] sm:$0xff]  ;;  %v5194_v47 = vld [vmem:[%s7695_s21 + $0x161] sm:$0xff]  ;;  %v5172_v48 = vld [vmem:[%s7695_s21 + $0xb1] sm:$0xff] }
  0x1f   : > { %v196_v49 = vld [vmem:[%s7695_s21] sm:$0xff]  ;;  %v197_v51 = vld [vmem:[%s7695_s21 + $0x8] sm:$0xff]  ;;  %v198_v54 = vld [vmem:[%s7695_s21 + $0x10] sm:$0xff] }
  0x20   : > { %v5288_v52 = vld [vmem:[%s7695_s21 + $0x2] sm:$0xff]  ;;  %v5289_v55 = vld [vmem:[%s7695_s21 + $0xa] sm:$0xff]  ;;  %v199_v56 = vld [vmem:[%s7695_s21 + $0x18] sm:$0xff] }
  0x21   : > { %6364 = vmatmul.mubr.msk.f32.gmra.mxu0 %vm291_vm2, %v5154_v12  ;;  %6433 = vmatmul.mubr.msk.f32.gmra.mxu1 %vm291_vm2, %v5177_v13  ;;  %v5290_v57 = vld [vmem:[%s7695_s21 + $0x12] sm:$0xff]  ;;  %v200_v58 = vld [vmem:[%s7695_s21 + $0x20] sm:$0xff]  ;;  %v201_v60 = vld [vmem:[%s7695_s21 + $0x28] sm:$0xff] }
  0x22   : > { %6366 = vmatprep.mubr.msk.f32.mxu0 %vm7637_vm1, %v7636_v1  ;;  %6435 = vmatprep.mubr.msk.f32.mxu1 %vm7637_vm1, %v7636_v1  ;;  %v5291_v59 = vld [vmem:[%s7695_s21 + $0x1a] sm:$0xff]  ;;  %v5292_v61 = vld [vmem:[%s7695_s21 + $0x22] sm:$0xff]  ;;  %v202_v62 = vld [vmem:[%s7695_s21 + $0x30] sm:$0xff] }
  0x23   : > { %v5293_v63 = vld [vmem:[%s7695_s21 + $0x2a] sm:$0xff]  ;;  %v203_v0 = vld [vmem:[%s7695_s21 + $0x38] sm:$0xff]  ;;  %v204_v3 = vld [vmem:[%s7695_s21 + $0x40] sm:$0xff] }
  0x24   : > { %v5294_v2 = vld [vmem:[%s7695_s21 + $0x32] sm:$0xff]  ;;  %v5295_v4 = vld [vmem:[%s7695_s21 + $0x3a] sm:$0xff]  ;;  %v205_v5 = vld [vmem:[%s7695_s21 + $0x48] sm:$0xff] }
  0x25   : > { %6367 = vmatmul.mubr.msk.f32.gmra.mxu0 %vm291_vm2, %v5155_v14  ;;  %6436 = vmatmul.mubr.msk.f32.gmra.mxu1 %vm291_vm2, %v5178_v15  ;;  %v5296_v6 = vld [vmem:[%s7695_s21 + $0x42] sm:$0xff]  ;;  %v206_v7 = vld [vmem:[%s7695_s21 + $0x50] sm:$0xff]  ;;  %v207_v9 = vld [vmem:[%s7695_s21 + $0x58] sm:$0xff] }
  0x26   : > { %6369 = vmatprep.mubr.msk.f32.mxu0 %vm7637_vm1, %v7636_v1  ;;  %6438 = vmatprep.mubr.msk.f32.mxu1 %vm7637_vm1, %v7636_v1  ;;  %v5297_v8 = vld [vmem:[%s7695_s21 + $0x4a] sm:$0xff]  ;;  %v5298_v10 = vld [vmem:[%s7695_s21 + $0x52] sm:$0xff]  ;;  %v208_v11 = vld [vmem:[%s7695_s21 + $0x60] sm:$0xff] }
  0x27   : > { %v5299_v12 = vld [vmem:[%s7695_s21 + $0x5a] sm:$0xff]  ;;  %v209_v13 = vld [vmem:[%s7695_s21 + $0x68] sm:$0xff]  ;;  %v210_v15 = vld [vmem:[%s7695_s21 + $0x70] sm:$0xff] }
  0x28   : > { %v5300_v14 = vld [vmem:[%s7695_s21 + $0x62] sm:$0xff] }
  0x29   : > { %6370 = vmatmul.mubr.msk.f32.gmra.mxu0 %vm291_vm2, %v5156_v16  ;;  %6439 = vmatmul.mubr.msk.f32.gmra.mxu1 %vm291_vm2, %v5179_v17  ;;  %v5301_v16 = vld [vmem:[%s7695_s21 + $0x6a] sm:$0xff]  ;;  %v211_v17 = vld [vmem:[%s7695_s21 + $0x78] sm:$0xff] }
  0x2a   : > { %6372 = vmatprep.mubr.msk.f32.mxu0 %vm7637_vm1, %v7636_v1  ;;  %6441 = vmatprep.mubr.msk.f32.mxu1 %vm7637_vm1, %v7636_v1 }
  0x2d   : > { %6373 = vmatmul.mubr.msk.f32.gmra.mxu0 %vm291_vm2, %v5157_v18  ;;  %6442 = vmatmul.mubr.msk.f32.gmra.mxu1 %vm291_vm2, %v5180_v19  ;;  %v5302_v18 = vld [vmem:[%s7695_s21 + $0x72] sm:$0xff]  ;;  %v212_v19 = vld [vmem:[%s7695_s21 + $0x80] sm:$0xff] }
  0x2e   : > { %6375 = vmatprep.mubr.msk.f32.mxu0 %vm7637_vm1, %v7636_v1  ;;  %6444 = vmatprep.mubr.msk.f32.mxu1 %vm7637_vm1, %v7636_v1 }
  0x31   : > { %6376 = vmatmul.mubr.msk.f32.gmra.mxu0 %vm291_vm2, %v5158_v20  ;;  %6445 = vmatmul.mubr.msk.f32.gmra.mxu1 %vm291_vm2, %v5181_v21  ;;  %v5303_v20 = vld [vmem:[%s7695_s21 + $0x7a] sm:$0xff]  ;;  %v213_v21 = vld [vmem:[%s7695_s21 + $0x88] sm:$0xff] }
  0x32   : > { %6378 = vmatprep.mubr.msk.f32.mxu0 %vm7637_vm1, %v7636_v1  ;;  %6447 = vmatprep.mubr.msk.f32.mxu1 %vm7637_vm1, %v7636_v1 }
  0x35   : > { %6379 = vmatmul.mubr.msk.f32.gmra.mxu0 %vm291_vm2, %v5159_v22  ;;  %6448 = vmatmul.mubr.msk.f32.gmra.mxu1 %vm291_vm2, %v5182_v23  ;;  %v5304_v22 = vld [vmem:[%s7695_s21 + $0x82] sm:$0xff]  ;;  %v214_v23 = vld [vmem:[%s7695_s21 + $0x90] sm:$0xff] }
  0x36   : > { %6381 = vmatprep.mubr.msk.f32.mxu0 %vm7637_vm1, %v7636_v1  ;;  %6450 = vmatprep.mubr.msk.f32.mxu1 %vm7637_vm1, %v7636_v1 }
  0x39   : > { %6382 = vmatmul.mubr.msk.f32.gmra.mxu0 %vm291_vm2, %v5160_v24  ;;  %6451 = vmatmul.mubr.msk.f32.gmra.mxu1 %vm291_vm2, %v5183_v25  ;;  %v5305_v24 = vld [vmem:[%s7695_s21 + $0x8a] sm:$0xff]  ;;  %v215_v25 = vld [vmem:[%s7695_s21 + $0x98] sm:$0xff] }
  0x3a   : > { %6384 = vmatprep.mubr.msk.f32.mxu0 %vm7637_vm1, %v7636_v1  ;;  %6453 = vmatprep.mubr.msk.f32.mxu1 %vm7637_vm1, %v7636_v1 }
  0x3d   : > { %6385 = vmatmul.mubr.msk.f32.gmra.mxu0 %vm291_vm2, %v5161_v26  ;;  %6454 = vmatmul.mubr.msk.f32.gmra.mxu1 %vm291_vm2, %v5184_v27  ;;  %v5306_v26 = vld [vmem:[%s7695_s21 + $0x92] sm:$0xff]  ;;  %v216_v27 = vld [vmem:[%s7695_s21 + $0xa0] sm:$0xff] }
  0x3e   : > { %6387 = vmatprep.mubr.msk.f32.mxu0 %vm7637_vm1, %v7636_v1  ;;  %6456 = vmatprep.mubr.msk.f32.mxu1 %vm7637_vm1, %v7636_v1 }
  0x41   : > { %6388 = vmatmul.mubr.msk.f32.gmra.mxu0 %vm291_vm2, %v5162_v28  ;;  %6457 = vmatmul.mubr.msk.f32.gmra.mxu1 %vm291_vm2, %v5185_v29  ;;  %v5307_v28 = vld [vmem:[%s7695_s21 + $0x9a] sm:$0xff]  ;;  %v217_v29 = vld [vmem:[%s7695_s21 + $0xa8] sm:$0xff] }
  0x42   : > { %6390 = vmatprep.mubr.msk.f32.mxu0 %vm7637_vm1, %v7636_v1  ;;  %6459 = vmatprep.mubr.msk.f32.mxu1 %vm7637_vm1, %v7636_v1 }
  0x45   : > { %6391 = vmatmul.mubr.msk.f32.gmra.mxu0 %vm291_vm2, %v5163_v30  ;;  %6460 = vmatmul.mubr.msk.f32.gmra.mxu1 %vm291_vm2, %v5186_v31  ;;  %v5308_v30 = vld [vmem:[%s7695_s21 + $0xa2] sm:$0xff]  ;;  %v218_v31 = vld [vmem:[%s7695_s21 + $0xb0] sm:$0xff] }
  0x46   : > { %6393 = vmatprep.mubr.msk.f32.mxu0 %vm7637_vm1, %v7636_v1  ;;  %6462 = vmatprep.mubr.msk.f32.mxu1 %vm7637_vm1, %v7636_v1 }
  0x49   : > { %6394 = vmatmul.mubr.msk.f32.gmra.mxu0 %vm291_vm2, %v5164_v32  ;;  %6463 = vmatmul.mubr.msk.f32.gmra.mxu1 %vm291_vm2, %v5187_v33  ;;  %v5309_v32 = vld [vmem:[%s7695_s21 + $0xaa] sm:$0xff]  ;;  %v219_v33 = vld [vmem:[%s7695_s21 + $0xb8] sm:$0xff] }
  0x4a   : > { %6396 = vmatprep.mubr.msk.f32.mxu0 %vm7637_vm1, %v7636_v1  ;;  %6465 = vmatprep.mubr.msk.f32.mxu1 %vm7637_vm1, %v7636_v1 }
  0x4d   : > { %6397 = vmatmul.mubr.msk.f32.gmra.mxu0 %vm291_vm2, %v5165_v34  ;;  %6466 = vmatmul.mubr.msk.f32.gmra.mxu1 %vm291_vm2, %v5188_v35  ;;  %v5310_v34 = vld [vmem:[%s7695_s21 + $0xb2] sm:$0xff]  ;;  %v220_v35 = vld [vmem:[%s7695_s21 + $0xc0] sm:$0xff] }
  0x4e   : > { %6399 = vmatprep.mubr.msk.f32.mxu0 %vm7637_vm1, %v7636_v1  ;;  %6468 = vmatprep.mubr.msk.f32.mxu1 %vm7637_vm1, %v7636_v1 }
  0x51   : > { %6400 = vmatmul.mubr.msk.f32.gmra.mxu0 %vm291_vm2, %v5166_v36  ;;  %6469 = vmatmul.mubr.msk.f32.gmra.mxu1 %vm291_vm2, %v5189_v37  ;;  %v5311_v36 = vld [vmem:[%s7695_s21 + $0xba] sm:$0xff]  ;;  %v221_v37 = vld [vmem:[%s7695_s21 + $0xc8] sm:$0xff] }
  0x52   : > { %6402 = vmatprep.mubr.msk.f32.mxu0 %vm7637_vm1, %v7636_v1  ;;  %6471 = vmatprep.mubr.msk.f32.mxu1 %vm7637_vm1, %v7636_v1 }
  0x55   : > { %6403 = vmatmul.mubr.msk.f32.gmra.mxu0 %vm291_vm2, %v5167_v38  ;;  %6472 = vmatmul.mubr.msk.f32.gmra.mxu1 %vm291_vm2, %v5190_v39  ;;  %v5312_v38 = vld [vmem:[%s7695_s21 + $0xc2] sm:$0xff]  ;;  %v222_v39 = vld [vmem:[%s7695_s21 + $0xd0] sm:$0xff] }
  0x56   : > { %6405 = vmatprep.mubr.msk.f32.mxu0 %vm7637_vm1, %v7636_v1  ;;  %6474 = vmatprep.mubr.msk.f32.mxu1 %vm7637_vm1, %v7636_v1 }
  0x59   : > { %6406 = vmatmul.mubr.msk.f32.gmra.mxu0 %vm291_vm2, %v5168_v40  ;;  %6475 = vmatmul.mubr.msk.f32.gmra.mxu1 %vm291_vm2, %v5191_v41  ;;  %v5313_v40 = vld [vmem:[%s7695_s21 + $0xca] sm:$0xff] }
  0x5a   : > { %6408 = vmatprep.mubr.msk.f32.mxu0 %vm7637_vm1, %v7636_v1  ;;  %6477 = vmatprep.mubr.msk.f32.mxu1 %vm7637_vm1, %v7636_v1 }
  0x5d   : > { %6409 = vmatmul.mubr.msk.f32.gmra.mxu0 %vm291_vm2, %v5169_v42  ;;  %6478 = vmatmul.mubr.msk.f32.gmra.mxu1 %vm291_vm2, %v5192_v43  ;;  %v223_v43 = vld [vmem:[%s7695_s21 + $0xd8] sm:$0xff] }
  0x5e   : > { %6411 = vmatprep.mubr.msk.f32.mxu0 %vm7637_vm1, %v7636_v1  ;;  %6480 = vmatprep.mubr.msk.f32.mxu1 %vm7637_vm1, %v7636_v1 }
  0x61   : > { %6412 = vmatmul.mubr.msk.f32.gmra.mxu0 %vm291_vm2, %v5170_v44  ;;  %6481 = vmatmul.mubr.msk.f32.gmra.mxu1 %vm291_vm2, %v5193_v45  ;;  %v5314_v44 = vld [vmem:[%s7695_s21 + $0xd2] sm:$0xff] }
  0x62   : > { %6414 = vmatprep.mubr.msk.f32.mxu0 %vm7637_vm1, %v7636_v1  ;;  %6483 = vmatprep.mubr.msk.f32.mxu1 %vm7637_vm1, %v7636_v1 }
  0x65   : > { %6415 = vmatmul.mubr.msk.f32.gmra.mxu0 %vm291_vm2, %v5171_v46  ;;  %6484 = vmatmul.mubr.msk.f32.gmra.mxu1 %vm291_vm2, %v5194_v47 }
  0x66   : > { %6417 = vmatprep.mubr.msk.f32.mxu0 %vm7637_vm1, %v7636_v1  ;;  %6488 = vmatprep.mubr.msk.f32.mxu1 %vm7637_vm1, %v7636_v1 }
  0x69   : > { %6418 = vmatmul.mubr.msk.f32.gmra.mxu0 %vm291_vm2, %v5172_v48  ;;  %6489 = vmatmul.mubr.msk.f32.vlgmr.msra.gmra.mxu1 %vm291_vm2, %v196_v49  ;;  %v224_v49 = vld [vmem:[%s7695_s21 + $0xe0] sm:$0xff] }
  0x6a   : > { %6761 = vmatpush3.msk.msra.mxu1 %vm427_vm0, %v5425_v50  ;;  %6491 = vmatprep.mubr.msk.f32.mxu1 %vm7637_vm1, %v7636_v1  ;;  %v5315_v50 = vld [vmem:[%s7695_s21 + $0xda] sm:$0xff] }
  0x6b   : > { %6625 = vmatprep.mubr.msk.f32.mxu0 %vm7637_vm1, %v7636_v1  ;;  %7034 = vmatprep.subr.mxu1 %v7636_v1 }
  0x6d   : > { %6492 = vmatmul.mubr.msk.f32.gmra.mxu1 %vm291_vm2, %v197_v51  ;;  %6626 = vmatmul.mubr.msk.f32.vlgmr.msra.gmra.mxu0 %vm291_vm2, %v5288_v52 }
  0x6e   : > { %6898 = vmatpush3.msk.msra.mxu0 %vm427_vm0, %v5517_v53  ;;  %6494 = vmatprep.mubr.msk.f32.mxu1 %vm7637_vm1, %v7636_v1 }
  0x6f   : > { %6628 = vmatprep.mubr.msk.f32.mxu0 %vm7637_vm1, %v7636_v1  ;;  %7171 = vmatprep.subr.mxu0 %v7636_v1 }
  0x71   : > { %6495 = vmatmul.mubr.msk.f32.gmra.mxu1 %vm291_vm2, %v198_v54  ;;  %6629 = vmatmul.mubr.msk.f32.gmra.mxu0 %vm291_vm2, %v5289_v55  ;;  %v225_v55 = vld [vmem:[%s7695_s21 + $0xe8] sm:$0xff] }
  0x72   : > { %6497 = vmatprep.mubr.msk.f32.mxu1 %vm7637_vm1, %v7636_v1  ;;  %6631 = vmatprep.mubr.msk.f32.mxu0 %vm7637_vm1, %v7636_v1 }
  0x75   : > { %6498 = vmatmul.mubr.msk.f32.gmra.mxu1 %vm291_vm2, %v199_v56  ;;  %6632 = vmatmul.mubr.msk.f32.gmra.mxu0 %vm291_vm2, %v5290_v57  ;;  %v5316_v56 = vld [vmem:[%s7695_s21 + $0xe2] sm:$0xff] }
  0x76   : > { %6500 = vmatprep.mubr.msk.f32.mxu1 %vm7637_vm1, %v7636_v1  ;;  %6634 = vmatprep.mubr.msk.f32.mxu0 %vm7637_vm1, %v7636_v1 }
  0x79   : > { %6501 = vmatmul.mubr.msk.f32.gmra.mxu1 %vm291_vm2, %v200_v58  ;;  %6635 = vmatmul.mubr.msk.f32.gmra.mxu0 %vm291_vm2, %v5291_v59 }
  0x7a   : > { %6503 = vmatprep.mubr.msk.f32.mxu1 %vm7637_vm1, %v7636_v1  ;;  %6637 = vmatprep.mubr.msk.f32.mxu0 %vm7637_vm1, %v7636_v1 }
  0x7d   : > { %6504 = vmatmul.mubr.msk.f32.gmra.mxu1 %vm291_vm2, %v201_v60  ;;  %6638 = vmatmul.mubr.msk.f32.gmra.mxu0 %vm291_vm2, %v5292_v61  ;;  %v226_v61 = vld [vmem:[%s7695_s21 + $0xf0] sm:$0xff] }
  0x7e   : > { %6506 = vmatprep.mubr.msk.f32.mxu1 %vm7637_vm1, %v7636_v1  ;;  %6640 = vmatprep.mubr.msk.f32.mxu0 %vm7637_vm1, %v7636_v1 }
  0x81   : > { %6507 = vmatmul.mubr.msk.f32.gmra.mxu1 %vm291_vm2, %v202_v62  ;;  %6641 = vmatmul.mubr.msk.f32.gmra.mxu0 %vm291_vm2, %v5293_v63  ;;  %v5317_v62 = vld [vmem:[%s7695_s21 + $0xea] sm:$0xff] }
  0x82   : > { %6509 = vmatprep.mubr.msk.f32.mxu1 %vm7637_vm1, %v7636_v1  ;;  %6643 = vmatprep.mubr.msk.f32.mxu0 %vm7637_vm1, %v7636_v1 }
  0x85   : > { %6510 = vmatmul.mubr.msk.f32.gmra.mxu1 %vm291_vm2, %v203_v0  ;;  %6644 = vmatmul.mubr.msk.f32.gmra.mxu0 %vm291_vm2, %v5294_v2 }
  0x86   : > { %6512 = vmatprep.mubr.msk.f32.mxu1 %vm7637_vm1, %v7636_v1  ;;  %6646 = vmatprep.mubr.msk.f32.mxu0 %vm7637_vm1, %v7636_v1 }
  0x89   : > { %6513 = vmatmul.mubr.msk.f32.gmra.mxu1 %vm291_vm2, %v204_v3  ;;  %6647 = vmatmul.mubr.msk.f32.gmra.mxu0 %vm291_vm2, %v5295_v4  ;;  %v227_v4 = vld [vmem:[%s7695_s21 + $0xf8] sm:$0xff] }
  0x8a   : > { %6515 = vmatprep.mubr.msk.f32.mxu1 %vm7637_vm1, %v7636_v1  ;;  %6649 = vmatprep.mubr.msk.f32.mxu0 %vm7637_vm1, %v7636_v1 }
  0x8d   : > { %6516 = vmatmul.mubr.msk.f32.gmra.mxu1 %vm291_vm2, %v205_v5  ;;  %6650 = vmatmul.mubr.msk.f32.gmra.mxu0 %vm291_vm2, %v5296_v6  ;;  %v5318_v5 = vld [vmem:[%s7695_s21 + $0xf2] sm:$0xff] }
  0x8e   : > { %6518 = vmatprep.mubr.msk.f32.mxu1 %vm7637_vm1, %v7636_v1  ;;  %6652 = vmatprep.mubr.msk.f32.mxu0 %vm7637_vm1, %v7636_v1 }
  0x91   : > { %6519 = vmatmul.mubr.msk.f32.gmra.mxu1 %vm291_vm2, %v206_v7  ;;  %6653 = vmatmul.mubr.msk.f32.gmra.mxu0 %vm291_vm2, %v5297_v8 }
  0x92   : > { %6521 = vmatprep.mubr.msk.f32.mxu1 %vm7637_vm1, %v7636_v1  ;;  %6655 = vmatprep.mubr.msk.f32.mxu0 %vm7637_vm1, %v7636_v1 }
  0x95   : > { %6522 = vmatmul.mubr.msk.f32.gmra.mxu1 %vm291_vm2, %v207_v9  ;;  %6656 = vmatmul.mubr.msk.f32.gmra.mxu0 %vm291_vm2, %v5298_v10  ;;  %v228_v10 = vld [vmem:[%s7695_s21 + $0x100] sm:$0xff] }
  0x96   : > { %6524 = vmatprep.mubr.msk.f32.mxu1 %vm7637_vm1, %v7636_v1  ;;  %6658 = vmatprep.mubr.msk.f32.mxu0 %vm7637_vm1, %v7636_v1 }
  0x99   : > { %6525 = vmatmul.mubr.msk.f32.gmra.mxu1 %vm291_vm2, %v208_v11  ;;  %6659 = vmatmul.mubr.msk.f32.gmra.mxu0 %vm291_vm2, %v5299_v12  ;;  %v5319_v11 = vld [vmem:[%s7695_s21 + $0xfa] sm:$0xff] }
  0x9a   : > { %6527 = vmatprep.mubr.msk.f32.mxu1 %vm7637_vm1, %v7636_v1  ;;  %6661 = vmatprep.mubr.msk.f32.mxu0 %vm7637_vm1, %v7636_v1 }
  0x9d   : > { %6528 = vmatmul.mubr.msk.f32.gmra.mxu1 %vm291_vm2, %v209_v13  ;;  %6662 = vmatmul.mubr.msk.f32.gmra.mxu0 %vm291_vm2, %v5300_v14 }
  0x9e   : > { %6530 = vmatprep.mubr.msk.f32.mxu1 %vm7637_vm1, %v7636_v1  ;;  %6664 = vmatprep.mubr.msk.f32.mxu0 %vm7637_vm1, %v7636_v1 }
  0xa1   : > { %6531 = vmatmul.mubr.msk.f32.gmra.mxu1 %vm291_vm2, %v210_v15  ;;  %6665 = vmatmul.mubr.msk.f32.gmra.mxu0 %vm291_vm2, %v5301_v16  ;;  %v229_v16 = vld [vmem:[%s7695_s21 + $0x108] sm:$0xff] }
  0xa2   : > { %6533 = vmatprep.mubr.msk.f32.mxu1 %vm7637_vm1, %v7636_v1  ;;  %6667 = vmatprep.mubr.msk.f32.mxu0 %vm7637_vm1, %v7636_v1 }
  0xa5   : > { %6534 = vmatmul.mubr.msk.f32.gmra.mxu1 %vm291_vm2, %v211_v17  ;;  %6668 = vmatmul.mubr.msk.f32.gmra.mxu0 %vm291_vm2, %v5302_v18  ;;  %v5320_v17 = vld [vmem:[%s7695_s21 + $0x102] sm:$0xff] }
  0xa6   : > { %6536 = vmatprep.mubr.msk.f32.mxu1 %vm7637_vm1, %v7636_v1  ;;  %6670 = vmatprep.mubr.msk.f32.mxu0 %vm7637_vm1, %v7636_v1 }
  0xa9   : > { %6537 = vmatmul.mubr.msk.f32.gmra.mxu1 %vm291_vm2, %v212_v19  ;;  %6671 = vmatmul.mubr.msk.f32.gmra.mxu0 %vm291_vm2, %v5303_v20 }
  0xaa   : > { %6539 = vmatprep.mubr.msk.f32.mxu1 %vm7637_vm1, %v7636_v1  ;;  %6673 = vmatprep.mubr.msk.f32.mxu0 %vm7637_vm1, %v7636_v1 }
  0xad   : > { %6540 = vmatmul.mubr.msk.f32.gmra.mxu1 %vm291_vm2, %v213_v21  ;;  %6674 = vmatmul.mubr.msk.f32.gmra.mxu0 %vm291_vm2, %v5304_v22  ;;  %v230_v22 = vld [vmem:[%s7695_s21 + $0x110] sm:$0xff] }
  0xae   : > { %6542 = vmatprep.mubr.msk.f32.mxu1 %vm7637_vm1, %v7636_v1  ;;  %6676 = vmatprep.mubr.msk.f32.mxu0 %vm7637_vm1, %v7636_v1 }
  0xb1   : > { %6543 = vmatmul.mubr.msk.f32.gmra.mxu1 %vm291_vm2, %v214_v23  ;;  %6677 = vmatmul.mubr.msk.f32.gmra.mxu0 %vm291_vm2, %v5305_v24  ;;  %v5321_v23 = vld [vmem:[%s7695_s21 + $0x10a] sm:$0xff] }
  0xb2   : > { %6545 = vmatprep.mubr.msk.f32.mxu1 %vm7637_vm1, %v7636_v1  ;;  %6679 = vmatprep.mubr.msk.f32.mxu0 %vm7637_vm1, %v7636_v1 }
  0xb5   : > { %6546 = vmatmul.mubr.msk.f32.gmra.mxu1 %vm291_vm2, %v215_v25  ;;  %6680 = vmatmul.mubr.msk.f32.gmra.mxu0 %vm291_vm2, %v5306_v26 }
  0xb6   : > { %6548 = vmatprep.mubr.msk.f32.mxu1 %vm7637_vm1, %v7636_v1  ;;  %6682 = vmatprep.mubr.msk.f32.mxu0 %vm7637_vm1, %v7636_v1 }
  0xb9   : > { %6549 = vmatmul.mubr.msk.f32.gmra.mxu1 %vm291_vm2, %v216_v27  ;;  %6683 = vmatmul.mubr.msk.f32.gmra.mxu0 %vm291_vm2, %v5307_v28  ;;  %v231_v28 = vld [vmem:[%s7695_s21 + $0x118] sm:$0xff] }
  0xba   : > { %6551 = vmatprep.mubr.msk.f32.mxu1 %vm7637_vm1, %v7636_v1  ;;  %6685 = vmatprep.mubr.msk.f32.mxu0 %vm7637_vm1, %v7636_v1 }
  0xbd   : > { %6552 = vmatmul.mubr.msk.f32.gmra.mxu1 %vm291_vm2, %v217_v29  ;;  %6686 = vmatmul.mubr.msk.f32.gmra.mxu0 %vm291_vm2, %v5308_v30  ;;  %v5322_v29 = vld [vmem:[%s7695_s21 + $0x112] sm:$0xff] }
  0xbe   : > { %6554 = vmatprep.mubr.msk.f32.mxu1 %vm7637_vm1, %v7636_v1  ;;  %6688 = vmatprep.mubr.msk.f32.mxu0 %vm7637_vm1, %v7636_v1 }
  0xc1   : > { %6555 = vmatmul.mubr.msk.f32.gmra.mxu1 %vm291_vm2, %v218_v31  ;;  %6689 = vmatmul.mubr.msk.f32.gmra.mxu0 %vm291_vm2, %v5309_v32 }
  0xc2   : > { %6557 = vmatprep.mubr.msk.f32.mxu1 %vm7637_vm1, %v7636_v1  ;;  %6691 = vmatprep.mubr.msk.f32.mxu0 %vm7637_vm1, %v7636_v1 }
  0xc5   : > { %6558 = vmatmul.mubr.msk.f32.gmra.mxu1 %vm291_vm2, %v219_v33  ;;  %6692 = vmatmul.mubr.msk.f32.gmra.mxu0 %vm291_vm2, %v5310_v34  ;;  %v232_v34 = vld [vmem:[%s7695_s21 + $0x120] sm:$0xff] }
  0xc6   : > { %6560 = vmatprep.mubr.msk.f32.mxu1 %vm7637_vm1, %v7636_v1  ;;  %6694 = vmatprep.mubr.msk.f32.mxu0 %vm7637_vm1, %v7636_v1 }
  0xc9   : > { %6561 = vmatmul.mubr.msk.f32.gmra.mxu1 %vm291_vm2, %v220_v35  ;;  %6695 = vmatmul.mubr.msk.f32.gmra.mxu0 %vm291_vm2, %v5311_v36  ;;  %v5323_v35 = vld [vmem:[%s7695_s21 + $0x11a] sm:$0xff] }
  0xca   : > { %6563 = vmatprep.mubr.msk.f32.mxu1 %vm7637_vm1, %v7636_v1  ;;  %6697 = vmatprep.mubr.msk.f32.mxu0 %vm7637_vm1, %v7636_v1 }
  0xcd   : > { %6564 = vmatmul.mubr.msk.f32.gmra.mxu1 %vm291_vm2, %v221_v37  ;;  %6698 = vmatmul.mubr.msk.f32.gmra.mxu0 %vm291_vm2, %v5312_v38 }
  0xce   : > { %6566 = vmatprep.mubr.msk.f32.mxu1 %vm7637_vm1, %v7636_v1  ;;  %6700 = vmatprep.mubr.msk.f32.mxu0 %vm7637_vm1, %v7636_v1 }
  0xd1   : > { %v8103_v41 = vpop.f32.mrf.mxu0  ;;  %v8105_v42 = vpop.f32.mrf.mxu1  ;;  %6567 = vmatmul.mubr.msk.f32.gmra.mxu1 %vm291_vm2, %v222_v39  ;;  %6701 = vmatmul.mubr.msk.f32.gmra.mxu0 %vm291_vm2, %v5313_v40  ;;  %v233_v40 = vld [vmem:[%s7695_s21 + $0x128] sm:$0xff] }
  0xd2   : > { %6569 = vmatprep.mubr.msk.f32.mxu1 %vm7637_vm1, %v7636_v1  ;;  %6703 = vmatprep.mubr.msk.f32.mxu0 %vm7637_vm1, %v7636_v1 }
  0xd3   : > { %v6353_v45 = vpop.f32.mrf.mxu0  ;;  %v6422_v46 = vpop.f32.mrf.mxu1 }
  0xd5   : > { %v8115_v47 = vpop.f32.mrf.mxu0  ;;  %v8117_v48 = vpop.f32.mrf.mxu1  ;;  %6570 = vmatmul.mubr.msk.f32.gmra.mxu1 %vm291_vm2, %v223_v43  ;;  %6704 = vmatmul.mubr.msk.f32.gmra.mxu0 %vm291_vm2, %v5314_v44  ;;  %v5324_v43 = vld [vmem:[%s7695_s21 + $0x122] sm:$0xff] }
  0xd6   : > { %6572 = vmatprep.mubr.msk.f32.mxu1 %vm7637_vm1, %v7636_v1  ;;  %6706 = vmatprep.mubr.msk.f32.mxu0 %vm7637_vm1, %v7636_v1 }
  0xd7   : > { %v6356_v51 = vpop.f32.mrf.mxu0  ;;  %v6425_v52 = vpop.f32.mrf.mxu1 }
  0xd8   : > { %v5325_v51 = vld [vmem:[%s7695_s21 + $0x12a] sm:$0xff] }
  0xd9   : > { %v8127_v53 = vpop.f32.mrf.mxu0  ;;  %v8129_v54 = vpop.f32.mrf.mxu1  ;;  %6573 = vmatmul.mubr.msk.f32.gmra.mxu1 %vm291_vm2, %v224_v49  ;;  %6707 = vmatmul.mubr.msk.f32.gmra.mxu0 %vm291_vm2, %v5315_v50  ;;  %v234_v50 = vld [vmem:[%s7695_s21 + $0x130] sm:$0xff] }
  0xda   : > { %6575 = vmatprep.mubr.msk.f32.mxu1 %vm7637_vm1, %v7636_v1  ;;  %6709 = vmatprep.mubr.msk.f32.mxu0 %vm7637_vm1, %v7636_v1 }
  0xdb   : > { %v6359_v57 = vpop.f32.mrf.mxu0  ;;  %v6428_v58 = vpop.f32.mrf.mxu1 }
  0xdc   : > { %v235_v58 = vld [vmem:[%s7695_s21 + $0x138] sm:$0xff] }
  0xdd   : > { %v8139_v59 = vpop.f32.mrf.mxu0  ;;  %v8141_v60 = vpop.f32.mrf.mxu1  ;;  %6576 = vmatmul.mubr.msk.f32.gmra.mxu1 %vm291_vm2, %v225_v55  ;;  %6710 = vmatmul.mubr.msk.f32.gmra.mxu0 %vm291_vm2, %v5316_v56 }
  0xde   : > { %6578 = vmatprep.mubr.msk.f32.mxu1 %vm7637_vm1, %v7636_v1  ;;  %6712 = vmatprep.mubr.msk.f32.mxu0 %vm7637_vm1, %v7636_v1 }
  0xdf   : > { %v6362_v63 = vpop.f32.mrf.mxu0  ;;  %v6431_v0 = vpop.f32.mrf.mxu1 }
  0xe1   : > { %v8151_v2 = vpop.f32.mrf.mxu0  ;;  %v8153_v3 = vpop.f32.mrf.mxu1  ;;  %6579 = vmatmul.mubr.msk.f32.gmra.mxu1 %vm291_vm2, %v226_v61  ;;  %6713 = vmatmul.mubr.msk.f32.gmra.mxu0 %vm291_vm2, %v5317_v62  ;;  %v5326_v61 = vld [vmem:[%s7695_s21 + $0x132] sm:$0xff] }
  0xe2   : > { %6581 = vmatprep.mubr.msk.f32.mxu1 %vm7637_vm1, %v7636_v1  ;;  %6715 = vmatprep.mubr.msk.f32.mxu0 %vm7637_vm1, %v7636_v1 }
  0xe3   : > { %v6365_v6 = vpop.f32.mrf.mxu0  ;;  %v6434_v7 = vpop.f32.mrf.mxu1 }
  0xe4   : > { %v5327_v6 = vld [vmem:[%s7695_s21 + $0x13a] sm:$0xff] }
  0xe5   : > { %v8163_v8 = vpop.f32.mrf.mxu0  ;;  %v8165_v9 = vpop.f32.mrf.mxu1  ;;  %6582 = vmatmul.mubr.msk.f32.gmra.mxu1 %vm291_vm2, %v227_v4  ;;  %6716 = vmatmul.mubr.msk.f32.gmra.mxu0 %vm291_vm2, %v5318_v5  ;;  %v236_v5 = vld [vmem:[%s7695_s21 + $0x140] sm:$0xff] }
  0xe6   : > { %6584 = vmatprep.mubr.msk.f32.mxu1 %vm7637_vm1, %v7636_v1  ;;  %6718 = vmatprep.mubr.msk.f32.mxu0 %vm7637_vm1, %v7636_v1 }
  0xe7   : > { %v6368_v12 = vpop.f32.mrf.mxu0  ;;  %v6437_v13 = vpop.f32.mrf.mxu1 }
  0xe8   : > { %v237_v13 = vld [vmem:[%s7695_s21 + $0x148] sm:$0xff] }
  0xe9   : > { %v8175_v14 = vpop.f32.mrf.mxu0  ;;  %v8177_v15 = vpop.f32.mrf.mxu1  ;;  %6585 = vmatmul.mubr.msk.f32.gmra.mxu1 %vm291_vm2, %v228_v10  ;;  %6719 = vmatmul.mubr.msk.f32.gmra.mxu0 %vm291_vm2, %v5319_v11 }
  0xea   : > { %6587 = vmatprep.mubr.msk.f32.mxu1 %vm7637_vm1, %v7636_v1  ;;  %6721 = vmatprep.mubr.msk.f32.mxu0 %vm7637_vm1, %v7636_v1 }
  0xeb   : > { %v6371_v18 = vpop.f32.mrf.mxu0  ;;  %v6440_v19 = vpop.f32.mrf.mxu1 }
  0xed   : > { %v8187_v20 = vpop.f32.mrf.mxu0  ;;  %v8189_v21 = vpop.f32.mrf.mxu1  ;;  %6588 = vmatmul.mubr.msk.f32.gmra.mxu1 %vm291_vm2, %v229_v16  ;;  %6722 = vmatmul.mubr.msk.f32.gmra.mxu0 %vm291_vm2, %v5320_v17  ;;  %v5328_v16 = vld [vmem:[%s7695_s21 + $0x142] sm:$0xff] }
  0xee   : > { %6590 = vmatprep.mubr.msk.f32.mxu1 %vm7637_vm1, %v7636_v1  ;;  %6724 = vmatprep.mubr.msk.f32.mxu0 %vm7637_vm1, %v7636_v1 }
  0xef   : > { %v6374_v24 = vpop.f32.mrf.mxu0  ;;  %v6443_v25 = vpop.f32.mrf.mxu1 }
  0xf0   : > { %v5329_v24 = vld [vmem:[%s7695_s21 + $0x14a] sm:$0xff] }
  0xf1   : > { %v8199_v26 = vpop.f32.mrf.mxu0  ;;  %v8201_v27 = vpop.f32.mrf.mxu1  ;;  %6591 = vmatmul.mubr.msk.f32.gmra.mxu1 %vm291_vm2, %v230_v22  ;;  %6725 = vmatmul.mubr.msk.f32.gmra.mxu0 %vm291_vm2, %v5321_v23  ;;  %v238_v23 = vld [vmem:[%s7695_s21 + $0x150] sm:$0xff] }
  0xf2   : > { %6593 = vmatprep.mubr.msk.f32.mxu1 %vm7637_vm1, %v7636_v1  ;;  %6727 = vmatprep.mubr.msk.f32.mxu0 %vm7637_vm1, %v7636_v1 }
  0xf3   : > { %v6377_v30 = vpop.f32.mrf.mxu0  ;;  %v6446_v31 = vpop.f32.mrf.mxu1 }
  0xf4   : > { %v239_v31 = vld [vmem:[%s7695_s21 + $0x158] sm:$0xff] }
  0xf5   : > { %v8211_v32 = vpop.f32.mrf.mxu0  ;;  %v8213_v33 = vpop.f32.mrf.mxu1  ;;  %6594 = vmatmul.mubr.msk.f32.gmra.mxu1 %vm291_vm2, %v231_v28  ;;  %6728 = vmatmul.mubr.msk.f32.gmra.mxu0 %vm291_vm2, %v5322_v29 }
  0xf6   : > { %6596 = vmatprep.mubr.msk.f32.mxu1 %vm7637_vm1, %v7636_v1  ;;  %6730 = vmatprep.mubr.msk.f32.mxu0 %vm7637_vm1, %v7636_v1 }
  0xf7   : > { %v6380_v36 = vpop.f32.mrf.mxu0  ;;  %v6449_v37 = vpop.f32.mrf.mxu1 }
  0xf9   : > { %v8223_v38 = vpop.f32.mrf.mxu0  ;;  %v8225_v39 = vpop.f32.mrf.mxu1  ;;  %6597 = vmatmul.mubr.msk.f32.gmra.mxu1 %vm291_vm2, %v232_v34  ;;  %6731 = vmatmul.mubr.msk.f32.gmra.mxu0 %vm291_vm2, %v5323_v35  ;;  %v5330_v34 = vld [vmem:[%s7695_s21 + $0x152] sm:$0xff] }
  0xfa   : > { %6599 = vmatprep.mubr.msk.f32.mxu1 %vm7637_vm1, %v7636_v1  ;;  %6733 = vmatprep.mubr.msk.f32.mxu0 %vm7637_vm1, %v7636_v1 }
  0xfb   : > { %v6383_v44 = vpop.f32.mrf.mxu0  ;;  %v6452_v45 = vpop.f32.mrf.mxu1 }
  0xfc   : > { %v5331_v44 = vld [vmem:[%s7695_s21 + $0x15a] sm:$0xff] }
  0xfd   : > { %v8235_v46 = vpop.f32.mrf.mxu0  ;;  %v8237_v49 = vpop.f32.mrf.mxu1  ;;  %6600 = vmatmul.mubr.msk.f32.gmra.mxu1 %vm291_vm2, %v233_v40  ;;  %6734 = vmatmul.mubr.msk.f32.gmra.mxu0 %vm291_vm2, %v5324_v43  ;;  %v240_v43 = vld [vmem:[%s7695_s21 + $0x160] sm:$0xff] }
  0xfe   : > { %6602 = vmatprep.mubr.msk.f32.mxu1 %vm7637_vm1, %v7636_v1  ;;  %6736 = vmatprep.mubr.msk.f32.mxu0 %vm7637_vm1, %v7636_v1 }
  0xff   : > { %v6386_v52 = vpop.f32.mrf.mxu0  ;;  %v6455_v55 = vpop.f32.mrf.mxu1 }
 0x100   : > { %v5332_v55 = vld [vmem:[%s7695_s21 + $0x162] sm:$0xff] }
 0x101   : > { %v8247_v56 = vpop.f32.mrf.mxu0  ;;  %v8249_v57 = vpop.f32.mrf.mxu1  ;;  %6603 = vmatmul.mubr.msk.f32.gmra.mxu1 %vm291_vm2, %v234_v50  ;;  %6737 = vmatmul.mubr.msk.f32.gmra.mxu0 %vm291_vm2, %v5325_v51 }
 0x102   : > { %6605 = vmatprep.mubr.msk.f32.mxu1 %vm7637_vm1, %v7636_v1  ;;  %6739 = vmatprep.mubr.msk.f32.mxu0 %vm7637_vm1, %v7636_v1 }
 0x103   : > { %v6389_v62 = vpop.f32.mrf.mxu0  ;;  %v6458_v63 = vpop.f32.mrf.mxu1 }
 0x104   : > { %v5609_v63 = vld [vmem:[%s10047_s1 + $0x14] sm:$0xf] }
 0x105   : > { %v8259_v0 = vpop.f32.mrf.mxu0  ;;  %v8261_v4 = vpop.f32.mrf.mxu1  ;;  %6606 = vmatmul.mubr.msk.f32.gmra.mxu1 %vm291_vm2, %v235_v58  ;;  %6740 = vmatmul.mubr.msk.f32.gmra.mxu0 %vm291_vm2, %v5326_v61  ;;  %v5380_v58 = vld [vmem:[%s7695_s21 + $0x14] sm:$0xff] }
 0x106   : > { %6608 = vmatprep.mubr.msk.f32.mxu1 %vm7637_vm1, %v7636_v1  ;;  %6742 = vmatprep.mubr.msk.f32.mxu0 %vm7637_vm1, %v7636_v1 }
 0x107   : > { %v6392_v7 = vpop.f32.mrf.mxu0  ;;  %v6461_v10 = vpop.f32.mrf.mxu1 }
 0x108   : > { %v5381_v7 = vld [vmem:[%s7695_s21 + $0x1c] sm:$0xff] }
 0x109   : > { %v8271_v11 = vpop.f32.mrf.mxu0  ;;  %v8273_v12 = vpop.f32.mrf.mxu1  ;;  %6609 = vmatmul.mubr.msk.f32.gmra.mxu1 %vm291_vm2, %v236_v5  ;;  %6743 = vmatmul.mubr.msk.f32.gmra.mxu0 %vm291_vm2, %v5327_v6  ;;  %v5472_v10 = vld [vmem:[%s7695_s21 + $0x15] sm:$0xff] }
 0x10a   : > { %6611 = vmatprep.mubr.msk.f32.mxu1 %vm7637_vm1, %v7636_v1  ;;  %6745 = vmatprep.mubr.msk.f32.mxu0 %vm7637_vm1, %v7636_v1 }
 0x10b   : > { %v6395_v17 = vpop.f32.mrf.mxu0  ;;  %v6464_v18 = vpop.f32.mrf.mxu1 }
 0x10c   : > { %v5701_v17 = vld [vmem:[%s10047_s1 + $0x18] sm:$0xf] }
 0x10d   : > { %v8283_v19 = vpop.f32.mrf.mxu0  ;;  %v8285_v22 = vpop.f32.mrf.mxu1  ;;  %6612 = vmatmul.mubr.msk.f32.gmra.mxu1 %vm291_vm2, %v237_v13  ;;  %6746 = vmatmul.mubr.msk.f32.gmra.mxu0 %vm291_vm2, %v5328_v16 }
 0x10e   : > { %6614 = vmatprep.mubr.msk.f32.mxu1 %vm7637_vm1, %v7636_v1  ;;  %6748 = vmatprep.mubr.msk.f32.mxu0 %vm7637_vm1, %v7636_v1 }
 0x10f   : > { %v6398_v25 = vpop.f32.mrf.mxu0  ;;  %v6467_v28 = vpop.f32.mrf.mxu1 }
 0x110   : > { %v5473_v25 = vld [vmem:[%s7695_s21 + $0x1d] sm:$0xff] }
 0x111   : > { %v8295_v29 = vpop.f32.mrf.mxu0  ;;  %v8297_v30 = vpop.f32.mrf.mxu1  ;;  %6615 = vmatmul.mubr.msk.f32.gmra.mxu1 %vm291_vm2, %v238_v23  ;;  %6749 = vmatmul.mubr.msk.f32.gmra.mxu0 %vm291_vm2, %v5329_v24  ;;  %v5382_v24 = vld [vmem:[%s7695_s21 + $0x24] sm:$0xff] }
 0x112   : > { %6617 = vmatprep.mubr.msk.f32.mxu1 %vm7637_vm1, %v7636_v1  ;;  %6751 = vmatprep.mubr.msk.f32.mxu0 %vm7637_vm1, %v7636_v1 }
 0x113   : > { %v6401_v35 = vpop.f32.mrf.mxu0  ;;  %v6470_v36 = vpop.f32.mrf.mxu1 }
 0x114   : > { %v5383_v36 = vld [vmem:[%s7695_s21 + $0x2c] sm:$0xff] }
 0x115   : > { %v8307_v37 = vpop.f32.mrf.mxu0  ;;  %v8309_v40 = vpop.f32.mrf.mxu1  ;;  %6618 = vmatmul.mubr.msk.f32.gmra.mxu1 %vm291_vm2, %v239_v31  ;;  %6752 = vmatmul.mubr.msk.f32.gmra.mxu0 %vm291_vm2, %v5330_v34 }
 0x116   : > { %6620 = vmatprep.mubr.msk.f32.mxu1 %vm7637_vm1, %v7636_v1  ;;  %6754 = vmatprep.mubr.msk.f32.mxu0 %vm7637_vm1, %v7636_v1 }
 0x117   : > { %v6404_v45 = vpop.f32.mrf.mxu0  ;;  %v6473_v50 = vpop.f32.mrf.mxu1 }
 0x119   : > { %v8319_v51 = vpop.f32.mrf.mxu0  ;;  %v8321_v52 = vpop.f32.mrf.mxu1  ;;  %6621 = vmatmul.mubr.msk.f32.gmra.mxu1 %vm291_vm2, %v240_v43  ;;  %6755 = vmatmul.mubr.msk.f32.gmra.mxu0 %vm291_vm2, %v5331_v44  ;;  %v5474_v43 = vld [vmem:[%s7695_s21 + $0x25] sm:$0xff] }
 0x11a   : > { %6757 = vmatprep.mubr.msk.f32.mxu0 %vm7637_vm1, %v7636_v1  ;;  %6762 = vmatprep.mubr.msk.f32.mxu1 %vm7637_vm1, %v7636_v1 }
 0x11b   : > { %v6407_v61 = vpop.f32.mrf.mxu0  ;;  %v6476_v62 = vpop.f32.mrf.mxu1 }
 0x11c   : > { %v5475_v61 = vld [vmem:[%s7695_s21 + $0x2d] sm:$0xff] }
 0x11d   : > { %v8334_v5 = vpop.f32.mrf.mxu0  ;;  %v8336_v6 = vpop.f32.mrf.mxu1  ;;  %6758 = vmatmul.mubr.msk.f32.gmra.mxu0 %vm291_vm2, %v5332_v55  ;;  %6763 = vmatmul.mubr.msk.f32.vlgmr.msra.gmra.mxu1 %vm291_vm2, %v5380_v58  ;;  %v5384_v58 = vld [vmem:[%s7695_s21 + $0x34] sm:$0xff] }
 0x11e   : > { %7035 = vmatpush3.msk.msra.mxu1 %vm427_vm0, %v5609_v63  ;;  %6765 = vmatprep.mubr.msk.f32.mxu1 %vm7637_vm1, %v7636_v1 }
 0x11f   : > { %v6410_v13 = vpop.f32.mrf.mxu0  ;;  %v6479_v16 = vpop.f32.mrf.mxu1  ;;  %6899 = vmatprep.mubr.msk.f32.mxu0 %vm7637_vm1, %v7636_v1  ;;  %7308 = vmatprep.subr.mxu1 %v7636_v1 }
 0x121   : > { %v8351_v18 = vpop.f32.mrf.mxu0  ;;  %v8353_v23 = vpop.f32.mrf.mxu1  ;;  %6766 = vmatmul.mubr.msk.f32.gmra.mxu1 %vm291_vm2, %v5381_v7  ;;  %6900 = vmatmul.mubr.msk.f32.vlgmr.msra.gmra.mxu0 %vm291_vm2, %v5472_v10 }
 0x122   : > { %7172 = vmatpush3.msk.msra.mxu0 %vm427_vm0, %v5701_v17  ;;  %6768 = vmatprep.mubr.msk.f32.mxu1 %vm7637_vm1, %v7636_v1  ;;  %v5385_v17 = vld [vmem:[%s7695_s21 + $0x3c] sm:$0xff] }
 0x123   : > { %v6413_v28 = vpop.f32.mrf.mxu0  ;;  %v6482_v31 = vpop.f32.mrf.mxu1  ;;  %6902 = vmatprep.mubr.msk.f32.mxu0 %vm7637_vm1, %v7636_v1  ;;  %7445 = vmatprep.subr.mxu0 %v7636_v1 }
 0x125   : > { %v8365_v34 = vpop.f32.mrf.mxu0  ;;  %v8367_v35 = vpop.f32.mrf.mxu1  ;;  %6769 = vmatmul.mubr.msk.f32.gmra.mxu1 %vm291_vm2, %v5382_v24  ;;  %6903 = vmatmul.mubr.msk.f32.gmra.mxu0 %vm291_vm2, %v5473_v25  ;;  %v5476_v24 = vld [vmem:[%s7695_s21 + $0x35] sm:$0xff] }
 0x126   : > { %6771 = vmatprep.mubr.msk.f32.mxu1 %vm7637_vm1, %v7636_v1  ;;  %6905 = vmatprep.mubr.msk.f32.mxu0 %vm7637_vm1, %v7636_v1 }
 0x127   : > { %v6416_v44 = vpop.f32.mrf.mxu0  ;;  %v6485_v45 = vpop.f32.mrf.mxu1 }
 0x128   : > { %v5386_v44 = vld [vmem:[%s7695_s21 + $0x44] sm:$0xff] }
 0x129   : > { %v8377_v50 = vpop.f32.mrf.mxu0  ;;  %v925_v55 = vpop.f32.mrf.mxu1  ;;  %6772 = vmatmul.mubr.msk.f32.gmra.mxu1 %vm291_vm2, %v5383_v36  ;;  %6906 = vmatmul.mubr.msk.f32.gmra.mxu0 %vm291_vm2, %v5474_v43  ;;  %v5477_v45 = vld [vmem:[%s7695_s21 + $0x3d] sm:$0xff] }
 0x12a   : > { %6774 = vmatprep.mubr.msk.f32.mxu1 %vm7637_vm1, %v7636_v1  ;;  %6908 = vmatprep.mubr.msk.f32.mxu0 %vm7637_vm1, %v7636_v1  ;;  %v926_v7 = vadd.f32 %v925_v55, %v8103_v41 }
 0x12b   : > { %v6419_v62 = vpop.f32.mrf.mxu0  ;;  %v6490_v63 = vpop.f32.mrf.mxu1 }
 0x12d   : > { %v930_v10 = vpop.f32.mrf.mxu1  ;;  %v1402_v13 = vpop.f32.mrf.mxu0  ;;  %6775 = vmatmul.mubr.msk.f32.gmra.mxu1 %vm291_vm2, %v5384_v58  ;;  %6909 = vmatmul.mubr.msk.f32.gmra.mxu0 %vm291_vm2, %v5475_v61 }
 0x12e   : > { %v8390_v16 = vadd.f32 %v1402_v13, %v926_v7  ;;  %6777 = vmatprep.mubr.msk.f32.mxu1 %vm7637_vm1, %v7636_v1  ;;  %6911 = vmatprep.mubr.msk.f32.mxu0 %vm7637_vm1, %v7636_v1  ;;  %v931_v28 = vadd.f32 %v930_v10, %v8115_v47  ;;  %v5387_v7 = vld [vmem:[%s7695_s21 + $0x4c] sm:$0xff] }
 0x12f   : > { %v6493_v25 = vpop.f32.mrf.mxu1  ;;  %v6627_v41 = vpop.f32.mrf.mxu0  ;;  %v5478_v10 = vld [vmem:[%s7695_s21 + $0x45] sm:$0xff] }
 0x131   : > { %v935_v31 = vpop.f32.mrf.mxu1  ;;  %v1407_v36 = vpop.f32.mrf.mxu0  ;;  %6778 = vmatmul.mubr.msk.f32.gmra.mxu1 %vm291_vm2, %v5385_v17  ;;  %6912 = vmatmul.mubr.msk.f32.gmra.mxu0 %vm291_vm2, %v5476_v24 }
 0x132   : > { %v8401_v43 = vadd.f32 %v1407_v36, %v931_v28  ;;  %6780 = vmatprep.mubr.msk.f32.mxu1 %vm7637_vm1, %v7636_v1  ;;  %6914 = vmatprep.mubr.msk.f32.mxu0 %vm7637_vm1, %v7636_v1  ;;  %v936_v58 = vadd.f32 %v935_v31, %v8127_v53  ;;  %v5388_v28 = vld [vmem:[%s7695_s21 + $0x54] sm:$0xff] }
 0x133   : > { %v6496_v55 = vpop.f32.mrf.mxu1  ;;  %v6630_v47 = vpop.f32.mrf.mxu0  ;;  %v5479_v31 = vld [vmem:[%s7695_s21 + $0x4d] sm:$0xff] }
 0x135   : > { %v940_v61 = vpop.f32.mrf.mxu1  ;;  %v1412_v62 = vpop.f32.mrf.mxu0  ;;  %6781 = vmatmul.mubr.msk.f32.gmra.mxu1 %vm291_vm2, %v5386_v44  ;;  %6915 = vmatmul.mubr.msk.f32.gmra.mxu0 %vm291_vm2, %v5477_v45 }
 0x136   : > { %v8412_v63 = vadd.f32 %v1412_v62, %v936_v58  ;;  %6783 = vmatprep.mubr.msk.f32.mxu1 %vm7637_vm1, %v7636_v1  ;;  %6917 = vmatprep.mubr.msk.f32.mxu0 %vm7637_vm1, %v7636_v1  ;;  %v941_v17 = vadd.f32 %v940_v61, %v8139_v59  ;;  %v5389_v58 = vld [vmem:[%s7695_s21 + $0x5c] sm:$0xff] }
 0x137   : > { %v6499_v13 = vpop.f32.mrf.mxu1  ;;  %v6633_v53 = vpop.f32.mrf.mxu0  ;;  %v5480_v61 = vld [vmem:[%s7695_s21 + $0x55] sm:$0xff] }
 0x139   : > { %v945_v24 = vpop.f32.mrf.mxu1  ;;  %v1417_v25 = vpop.f32.mrf.mxu0  ;;  %6784 = vmatmul.mubr.msk.f32.gmra.mxu1 %vm291_vm2, %v5387_v7  ;;  %6918 = vmatmul.mubr.msk.f32.gmra.mxu0 %vm291_vm2, %v5478_v10 }
 0x13a   : > { %v8423_v41 = vadd.f32 %v1417_v25, %v941_v17  ;;  %6786 = vmatprep.mubr.msk.f32.mxu1 %vm7637_vm1, %v7636_v1  ;;  %6920 = vmatprep.mubr.msk.f32.mxu0 %vm7637_vm1, %v7636_v1  ;;  %v946_v44 = vadd.f32 %v945_v24, %v8151_v2  ;;  %v5390_v17 = vld [vmem:[%s7695_s21 + $0x64] sm:$0xff] }
 0x13b   : > { %v6502_v36 = vpop.f32.mrf.mxu1  ;;  %v6636_v59 = vpop.f32.mrf.mxu0  ;;  %v5481_v24 = vld [vmem:[%s7695_s21 + $0x5d] sm:$0xff] }
 0x13d   : > { %v950_v45 = vpop.f32.mrf.mxu1  ;;  %v1422_v55 = vpop.f32.mrf.mxu0  ;;  %6787 = vmatmul.mubr.msk.f32.gmra.mxu1 %vm291_vm2, %v5388_v28  ;;  %6921 = vmatmul.mubr.msk.f32.gmra.mxu0 %vm291_vm2, %v5479_v31 }
 0x13e   : > { %v8434_v47 = vadd.f32 %v1422_v55, %v946_v44  ;;  %6789 = vmatprep.mubr.msk.f32.mxu1 %vm7637_vm1, %v7636_v1  ;;  %6923 = vmatprep.mubr.msk.f32.mxu0 %vm7637_vm1, %v7636_v1  ;;  %v951_v7 = vadd.f32 %v950_v45, %v8163_v8  ;;  %v5391_v44 = vld [vmem:[%s7695_s21 + $0x6c] sm:$0xff] }
 0x13f   : > { %v6505_v62 = vpop.f32.mrf.mxu1  ;;  %v6639_v2 = vpop.f32.mrf.mxu0  ;;  %v5482_v45 = vld [vmem:[%s7695_s21 + $0x65] sm:$0xff] }
 0x141   : > { %v955_v10 = vpop.f32.mrf.mxu1  ;;  %v1427_v13 = vpop.f32.mrf.mxu0  ;;  %6790 = vmatmul.mubr.msk.f32.gmra.mxu1 %vm291_vm2, %v5389_v58  ;;  %6924 = vmatmul.mubr.msk.f32.gmra.mxu0 %vm291_vm2, %v5480_v61 }
 0x142   : > { %v8445_v53 = vadd.f32 %v1427_v13, %v951_v7  ;;  %6792 = vmatprep.mubr.msk.f32.mxu1 %vm7637_vm1, %v7636_v1  ;;  %6926 = vmatprep.mubr.msk.f32.mxu0 %vm7637_vm1, %v7636_v1  ;;  %v956_v28 = vadd.f32 %v955_v10, %v8175_v14  ;;  %v5392_v7 = vld [vmem:[%s7695_s21 + $0x74] sm:$0xff] }
 0x143   : > { %v6508_v25 = vpop.f32.mrf.mxu1  ;;  %v6642_v8 = vpop.f32.mrf.mxu0  ;;  %v5483_v10 = vld [vmem:[%s7695_s21 + $0x6d] sm:$0xff] }
 0x145   : > { %v960_v31 = vpop.f32.mrf.mxu1  ;;  %v1432_v36 = vpop.f32.mrf.mxu0  ;;  %6793 = vmatmul.mubr.msk.f32.gmra.mxu1 %vm291_vm2, %v5390_v17  ;;  %6927 = vmatmul.mubr.msk.f32.gmra.mxu0 %vm291_vm2, %v5481_v24 }
 0x146   : > { %v8456_v59 = vadd.f32 %v1432_v36, %v956_v28  ;;  %6795 = vmatprep.mubr.msk.f32.mxu1 %vm7637_vm1, %v7636_v1  ;;  %6929 = vmatprep.mubr.msk.f32.mxu0 %vm7637_vm1, %v7636_v1  ;;  %v961_v58 = vadd.f32 %v960_v31, %v8187_v20  ;;  %v5393_v28 = vld [vmem:[%s7695_s21 + $0x7c] sm:$0xff] }
 0x147   : > { %v6511_v55 = vpop.f32.mrf.mxu1  ;;  %v6645_v14 = vpop.f32.mrf.mxu0  ;;  %v5484_v31 = vld [vmem:[%s7695_s21 + $0x75] sm:$0xff] }
 0x149   : > { %v965_v61 = vpop.f32.mrf.mxu1  ;;  %v1437_v62 = vpop.f32.mrf.mxu0  ;;  %6796 = vmatmul.mubr.msk.f32.gmra.mxu1 %vm291_vm2, %v5391_v44  ;;  %6930 = vmatmul.mubr.msk.f32.gmra.mxu0 %vm291_vm2, %v5482_v45 }
 0x14a   : > { %v8467_v2 = vadd.f32 %v1437_v62, %v961_v58  ;;  %6798 = vmatprep.mubr.msk.f32.mxu1 %vm7637_vm1, %v7636_v1  ;;  %6932 = vmatprep.mubr.msk.f32.mxu0 %vm7637_vm1, %v7636_v1  ;;  %v966_v17 = vadd.f32 %v965_v61, %v8199_v26  ;;  %v5394_v58 = vld [vmem:[%s7695_s21 + $0x84] sm:$0xff] }
 0x14b   : > { %v6514_v13 = vpop.f32.mrf.mxu1  ;;  %v6648_v20 = vpop.f32.mrf.mxu0  ;;  %v5485_v61 = vld [vmem:[%s7695_s21 + $0x7d] sm:$0xff] }
 0x14d   : > { %v970_v24 = vpop.f32.mrf.mxu1  ;;  %v1442_v25 = vpop.f32.mrf.mxu0  ;;  %6799 = vmatmul.mubr.msk.f32.gmra.mxu1 %vm291_vm2, %v5392_v7  ;;  %6933 = vmatmul.mubr.msk.f32.gmra.mxu0 %vm291_vm2, %v5483_v10 }
 0x14e   : > { %v8478_v8 = vadd.f32 %v1442_v25, %v966_v17  ;;  %6801 = vmatprep.mubr.msk.f32.mxu1 %vm7637_vm1, %v7636_v1  ;;  %6935 = vmatprep.mubr.msk.f32.mxu0 %vm7637_vm1, %v7636_v1  ;;  %v971_v44 = vadd.f32 %v970_v24, %v8211_v32  ;;  %v5395_v17 = vld [vmem:[%s7695_s21 + $0x8c] sm:$0xff] }
 0x14f   : > { %v6517_v36 = vpop.f32.mrf.mxu1  ;;  %v6651_v26 = vpop.f32.mrf.mxu0  ;;  %v5486_v24 = vld [vmem:[%s7695_s21 + $0x85] sm:$0xff] }
 0x151   : > { %v975_v45 = vpop.f32.mrf.mxu1  ;;  %v1447_v55 = vpop.f32.mrf.mxu0  ;;  %6802 = vmatmul.mubr.msk.f32.gmra.mxu1 %vm291_vm2, %v5393_v28  ;;  %6936 = vmatmul.mubr.msk.f32.gmra.mxu0 %vm291_vm2, %v5484_v31 }
 0x152   : > { %v8489_v14 = vadd.f32 %v1447_v55, %v971_v44  ;;  %6804 = vmatprep.mubr.msk.f32.mxu1 %vm7637_vm1, %v7636_v1  ;;  %6938 = vmatprep.mubr.msk.f32.mxu0 %vm7637_vm1, %v7636_v1  ;;  %v976_v7 = vadd.f32 %v975_v45, %v8223_v38  ;;  %v5396_v44 = vld [vmem:[%s7695_s21 + $0x94] sm:$0xff] }
 0x153   : > { %v6520_v62 = vpop.f32.mrf.mxu1  ;;  %v6654_v32 = vpop.f32.mrf.mxu0  ;;  %v5487_v45 = vld [vmem:[%s7695_s21 + $0x8d] sm:$0xff] }
 0x155   : > { %v980_v10 = vpop.f32.mrf.mxu1  ;;  %v1452_v13 = vpop.f32.mrf.mxu0  ;;  %6805 = vmatmul.mubr.msk.f32.gmra.mxu1 %vm291_vm2, %v5394_v58  ;;  %6939 = vmatmul.mubr.msk.f32.gmra.mxu0 %vm291_vm2, %v5485_v61 }
 0x156   : > { %v8500_v20 = vadd.f32 %v1452_v13, %v976_v7  ;;  %6807 = vmatprep.mubr.msk.f32.mxu1 %vm7637_vm1, %v7636_v1  ;;  %6941 = vmatprep.mubr.msk.f32.mxu0 %vm7637_vm1, %v7636_v1  ;;  %v981_v28 = vadd.f32 %v980_v10, %v8235_v46  ;;  %v5397_v7 = vld [vmem:[%s7695_s21 + $0x9c] sm:$0xff] }
 0x157   : > { %v6523_v25 = vpop.f32.mrf.mxu1  ;;  %v6657_v38 = vpop.f32.mrf.mxu0  ;;  %v5488_v10 = vld [vmem:[%s7695_s21 + $0x95] sm:$0xff] }
 0x159   : > { %v985_v31 = vpop.f32.mrf.mxu1  ;;  %v1457_v36 = vpop.f32.mrf.mxu0  ;;  %6808 = vmatmul.mubr.msk.f32.gmra.mxu1 %vm291_vm2, %v5395_v17  ;;  %6942 = vmatmul.mubr.msk.f32.gmra.mxu0 %vm291_vm2, %v5486_v24 }
 0x15a   : > { %v8511_v26 = vadd.f32 %v1457_v36, %v981_v28  ;;  %6810 = vmatprep.mubr.msk.f32.mxu1 %vm7637_vm1, %v7636_v1  ;;  %6944 = vmatprep.mubr.msk.f32.mxu0 %vm7637_vm1, %v7636_v1  ;;  %v986_v58 = vadd.f32 %v985_v31, %v8247_v56  ;;  %v5398_v28 = vld [vmem:[%s7695_s21 + $0xa4] sm:$0xff] }
 0x15b   : > { %v6526_v55 = vpop.f32.mrf.mxu1  ;;  %v6660_v46 = vpop.f32.mrf.mxu0  ;;  %v5489_v31 = vld [vmem:[%s7695_s21 + $0x9d] sm:$0xff] }
 0x15d   : > { %v990_v61 = vpop.f32.mrf.mxu1  ;;  %v1462_v62 = vpop.f32.mrf.mxu0  ;;  %6811 = vmatmul.mubr.msk.f32.gmra.mxu1 %vm291_vm2, %v5396_v44  ;;  %6945 = vmatmul.mubr.msk.f32.gmra.mxu0 %vm291_vm2, %v5487_v45 }
 0x15e   : > { %v8522_v32 = vadd.f32 %v1462_v62, %v986_v58  ;;  %6813 = vmatprep.mubr.msk.f32.mxu1 %vm7637_vm1, %v7636_v1  ;;  %6947 = vmatprep.mubr.msk.f32.mxu0 %vm7637_vm1, %v7636_v1  ;;  %v991_v17 = vadd.f32 %v990_v61, %v8259_v0  ;;  %v5399_v58 = vld [vmem:[%s7695_s21 + $0xac] sm:$0xff] }
 0x15f   : > { %v6529_v13 = vpop.f32.mrf.mxu1  ;;  %v6663_v56 = vpop.f32.mrf.mxu0  ;;  %v5490_v61 = vld [vmem:[%s7695_s21 + $0xa5] sm:$0xff] }
 0x161   : > { %v995_v24 = vpop.f32.mrf.mxu1  ;;  %v1467_v25 = vpop.f32.mrf.mxu0  ;;  %6814 = vmatmul.mubr.msk.f32.gmra.mxu1 %vm291_vm2, %v5397_v7  ;;  %6948 = vmatmul.mubr.msk.f32.gmra.mxu0 %vm291_vm2, %v5488_v10 }
 0x162   : > { %v8533_v38 = vadd.f32 %v1467_v25, %v991_v17  ;;  %6816 = vmatprep.mubr.msk.f32.mxu1 %vm7637_vm1, %v7636_v1  ;;  %6950 = vmatprep.mubr.msk.f32.mxu0 %vm7637_vm1, %v7636_v1  ;;  %v996_v44 = vadd.f32 %v995_v24, %v8271_v11  ;;  %v5400_v17 = vld [vmem:[%s7695_s21 + $0xb4] sm:$0xff] }
 0x163   : > { %v6532_v36 = vpop.f32.mrf.mxu1  ;;  %v6666_v0 = vpop.f32.mrf.mxu0  ;;  %v5491_v24 = vld [vmem:[%s7695_s21 + $0xad] sm:$0xff] }
 0x165   : > { %v1000_v45 = vpop.f32.mrf.mxu1  ;;  %v1472_v55 = vpop.f32.mrf.mxu0  ;;  %6817 = vmatmul.mubr.msk.f32.gmra.mxu1 %vm291_vm2, %v5398_v28  ;;  %6951 = vmatmul.mubr.msk.f32.gmra.mxu0 %vm291_vm2, %v5489_v31 }
 0x166   : > { %v8544_v46 = vadd.f32 %v1472_v55, %v996_v44  ;;  %6819 = vmatprep.mubr.msk.f32.mxu1 %vm7637_vm1, %v7636_v1  ;;  %6953 = vmatprep.mubr.msk.f32.mxu0 %vm7637_vm1, %v7636_v1  ;;  %v1001_v7 = vadd.f32 %v1000_v45, %v8283_v19  ;;  %v5401_v44 = vld [vmem:[%s7695_s21 + $0xbc] sm:$0xff] }
 0x167   : > { %v6535_v62 = vpop.f32.mrf.mxu1  ;;  %v6669_v11 = vpop.f32.mrf.mxu0  ;;  %v5492_v45 = vld [vmem:[%s7695_s21 + $0xb5] sm:$0xff] }
 0x169   : > { %v1005_v10 = vpop.f32.mrf.mxu1  ;;  %v1477_v13 = vpop.f32.mrf.mxu0  ;;  %6820 = vmatmul.mubr.msk.f32.gmra.mxu1 %vm291_vm2, %v5399_v58  ;;  %6954 = vmatmul.mubr.msk.f32.gmra.mxu0 %vm291_vm2, %v5490_v61 }
 0x16a   : > { %v8555_v56 = vadd.f32 %v1477_v13, %v1001_v7  ;;  %6822 = vmatprep.mubr.msk.f32.mxu1 %vm7637_vm1, %v7636_v1  ;;  %6956 = vmatprep.mubr.msk.f32.mxu0 %vm7637_vm1, %v7636_v1  ;;  %v1006_v28 = vadd.f32 %v1005_v10, %v8295_v29  ;;  %v5402_v7 = vld [vmem:[%s7695_s21 + $0xc4] sm:$0xff] }
 0x16b   : > { %v6538_v25 = vpop.f32.mrf.mxu1  ;;  %v6672_v19 = vpop.f32.mrf.mxu0  ;;  %v5493_v10 = vld [vmem:[%s7695_s21 + $0xbd] sm:$0xff] }
 0x16d   : > { %v1010_v31 = vpop.f32.mrf.mxu1  ;;  %v1482_v36 = vpop.f32.mrf.mxu0  ;;  %6823 = vmatmul.mubr.msk.f32.gmra.mxu1 %vm291_vm2, %v5400_v17  ;;  %6957 = vmatmul.mubr.msk.f32.gmra.mxu0 %vm291_vm2, %v5491_v24 }
 0x16e   : > { %v8566_v0 = vadd.f32 %v1482_v36, %v1006_v28  ;;  %6825 = vmatprep.mubr.msk.f32.mxu1 %vm7637_vm1, %v7636_v1  ;;  %6959 = vmatprep.mubr.msk.f32.mxu0 %vm7637_vm1, %v7636_v1  ;;  %v1011_v58 = vadd.f32 %v1010_v31, %v8307_v37  ;;  %v5403_v28 = vld [vmem:[%s7695_s21 + $0xcc] sm:$0xff] }
 0x16f   : > { %v6541_v55 = vpop.f32.mrf.mxu1  ;;  %v6675_v29 = vpop.f32.mrf.mxu0  ;;  %v5494_v31 = vld [vmem:[%s7695_s21 + $0xc5] sm:$0xff] }
 0x171   : > { %v1015_v61 = vpop.f32.mrf.mxu1  ;;  %v1487_v62 = vpop.f32.mrf.mxu0  ;;  %6826 = vmatmul.mubr.msk.f32.gmra.mxu1 %vm291_vm2, %v5401_v44  ;;  %6960 = vmatmul.mubr.msk.f32.gmra.mxu0 %vm291_vm2, %v5492_v45 }
 0x172   : > { %v8577_v11 = vadd.f32 %v1487_v62, %v1011_v58  ;;  %6828 = vmatprep.mubr.msk.f32.mxu1 %vm7637_vm1, %v7636_v1  ;;  %6962 = vmatprep.mubr.msk.f32.mxu0 %vm7637_vm1, %v7636_v1  ;;  %v1016_v17 = vadd.f32 %v1015_v61, %v8319_v51  ;;  %v5404_v58 = vld [vmem:[%s7695_s21 + $0xd4] sm:$0xff] }
 0x173   : > { %v6544_v13 = vpop.f32.mrf.mxu1  ;;  %v6678_v37 = vpop.f32.mrf.mxu0  ;;  %v5495_v61 = vld [vmem:[%s7695_s21 + $0xcd] sm:$0xff] }
 0x175   : > { %v1020_v24 = vpop.f32.mrf.mxu1  ;;  %v1492_v25 = vpop.f32.mrf.mxu0  ;;  %6829 = vmatmul.mubr.msk.f32.gmra.mxu1 %vm291_vm2, %v5402_v7  ;;  %6963 = vmatmul.mubr.msk.f32.gmra.mxu0 %vm291_vm2, %v5493_v10 }
 0x176   : > { %v8588_v19 = vadd.f32 %v1492_v25, %v1016_v17  ;;  %6831 = vmatprep.mubr.msk.f32.mxu1 %vm7637_vm1, %v7636_v1  ;;  %6965 = vmatprep.mubr.msk.f32.mxu0 %vm7637_vm1, %v7636_v1  ;;  %v1021_v44 = vadd.f32 %v1020_v24, %v8334_v5  ;;  %v5405_v17 = vld [vmem:[%s7695_s21 + $0xdc] sm:$0xff] }
 0x177   : > { %v6547_v36 = vpop.f32.mrf.mxu1  ;;  %v6681_v51 = vpop.f32.mrf.mxu0  ;;  %v5496_v24 = vld [vmem:[%s7695_s21 + $0xd5] sm:$0xff] }
 0x179   : > { %v1025_v45 = vpop.f32.mrf.mxu1  ;;  %v1497_v55 = vpop.f32.mrf.mxu0  ;;  %6832 = vmatmul.mubr.msk.f32.gmra.mxu1 %vm291_vm2, %v5403_v28  ;;  %6966 = vmatmul.mubr.msk.f32.gmra.mxu0 %vm291_vm2, %v5494_v31 }
 0x17a   : > { %v8599_v29 = vadd.f32 %v1497_v55, %v1021_v44  ;;  %6834 = vmatprep.mubr.msk.f32.mxu1 %vm7637_vm1, %v7636_v1  ;;  %6968 = vmatprep.mubr.msk.f32.mxu0 %vm7637_vm1, %v7636_v1  ;;  %v1026_v7 = vadd.f32 %v1025_v45, %v8351_v18  ;;  %v5406_v44 = vld [vmem:[%s7695_s21 + $0xe4] sm:$0xff] }
 0x17b   : > { %v6550_v62 = vpop.f32.mrf.mxu1  ;;  %v6684_v5 = vpop.f32.mrf.mxu0  ;;  %v5497_v45 = vld [vmem:[%s7695_s21 + $0xdd] sm:$0xff] }
 0x17d   : > { %v1030_v10 = vpop.f32.mrf.mxu1  ;;  %v1502_v13 = vpop.f32.mrf.mxu0  ;;  %6835 = vmatmul.mubr.msk.f32.gmra.mxu1 %vm291_vm2, %v5404_v58  ;;  %6969 = vmatmul.mubr.msk.f32.gmra.mxu0 %vm291_vm2, %v5495_v61 }
 0x17e   : > { %v8610_v37 = vadd.f32 %v1502_v13, %v1026_v7  ;;  %6837 = vmatprep.mubr.msk.f32.mxu1 %vm7637_vm1, %v7636_v1  ;;  %6971 = vmatprep.mubr.msk.f32.mxu0 %vm7637_vm1, %v7636_v1  ;;  %v1031_v28 = vadd.f32 %v1030_v10, %v8365_v34  ;;  %v5407_v7 = vld [vmem:[%s7695_s21 + $0xec] sm:$0xff] }
 0x17f   : > { %v6553_v25 = vpop.f32.mrf.mxu1  ;;  %v6687_v18 = vpop.f32.mrf.mxu0  ;;  %v5498_v10 = vld [vmem:[%s7695_s21 + $0xe5] sm:$0xff] }
 0x181   : > { %v1035_v31 = vpop.f32.mrf.mxu1  ;;  %v1507_v36 = vpop.f32.mrf.mxu0  ;;  %6838 = vmatmul.mubr.msk.f32.gmra.mxu1 %vm291_vm2, %v5405_v17  ;;  %6972 = vmatmul.mubr.msk.f32.gmra.mxu0 %vm291_vm2, %v5496_v24 }
 0x182   : > { %v8621_v51 = vadd.f32 %v1507_v36, %v1031_v28  ;;  %6840 = vmatprep.mubr.msk.f32.mxu1 %vm7637_vm1, %v7636_v1  ;;  %6974 = vmatprep.mubr.msk.f32.mxu0 %vm7637_vm1, %v7636_v1  ;;  %v1036_v58 = vadd.f32 %v1035_v31, %v8377_v50  ;;  %v5408_v28 = vld [vmem:[%s7695_s21 + $0xf4] sm:$0xff] }
 0x183   : > { %v6556_v55 = vpop.f32.mrf.mxu1  ;;  %v6690_v34 = vpop.f32.mrf.mxu0  ;;  %v5499_v31 = vld [vmem:[%s7695_s21 + $0xed] sm:$0xff] }
 0x185   : > { %v1040_v61 = vpop.f32.mrf.mxu1  ;;  %v1512_v62 = vpop.f32.mrf.mxu0  ;;  %6841 = vmatmul.mubr.msk.f32.gmra.mxu1 %vm291_vm2, %v5406_v44  ;;  %6975 = vmatmul.mubr.msk.f32.gmra.mxu0 %vm291_vm2, %v5497_v45 }
 0x186   : > { %v8632_v5 = vadd.f32 %v1512_v62, %v1036_v58  ;;  %6843 = vmatprep.mubr.msk.f32.mxu1 %vm7637_vm1, %v7636_v1  ;;  %6977 = vmatprep.mubr.msk.f32.mxu0 %vm7637_vm1, %v7636_v1  ;;  %v1041_v17 = vadd.f32 %v1040_v61, %v8105_v42  ;;  %v5409_v58 = vld [vmem:[%s7695_s21 + $0xfc] sm:$0xff] }
 0x187   : > { %v6559_v13 = vpop.f32.mrf.mxu1  ;;  %v6693_v50 = vpop.f32.mrf.mxu0  ;;  %v5500_v61 = vld [vmem:[%s7695_s21 + $0xf5] sm:$0xff] }
 0x189   : > { %v1045_v24 = vpop.f32.mrf.mxu1  ;;  %v1517_v25 = vpop.f32.mrf.mxu0  ;;  %6844 = vmatmul.mubr.msk.f32.gmra.mxu1 %vm291_vm2, %v5407_v7  ;;  %6978 = vmatmul.mubr.msk.f32.gmra.mxu0 %vm291_vm2, %v5498_v10 }
 0x18a   : > { %v8643_v18 = vadd.f32 %v1517_v25, %v1041_v17  ;;  %6846 = vmatprep.mubr.msk.f32.mxu1 %vm7637_vm1, %v7636_v1  ;;  %6980 = vmatprep.mubr.msk.f32.mxu0 %vm7637_vm1, %v7636_v1  ;;  %v1046_v44 = vadd.f32 %v1045_v24, %v8117_v48  ;;  %v5410_v17 = vld [vmem:[%s7695_s21 + $0x104] sm:$0xff] }
 0x18b   : > { %v6562_v36 = vpop.f32.mrf.mxu1  ;;  %v6696_v42 = vpop.f32.mrf.mxu0  ;;  %v5501_v24 = vld [vmem:[%s7695_s21 + $0xfd] sm:$0xff] }
 0x18d   : > { %v1050_v45 = vpop.f32.mrf.mxu1  ;;  %v1522_v55 = vpop.f32.mrf.mxu0  ;;  %6847 = vmatmul.mubr.msk.f32.gmra.mxu1 %vm291_vm2, %v5408_v28  ;;  %6981 = vmatmul.mubr.msk.f32.gmra.mxu0 %vm291_vm2, %v5499_v31 }
 0x18e   : > { %v8654_v34 = vadd.f32 %v1522_v55, %v1046_v44  ;;  %6849 = vmatprep.mubr.msk.f32.mxu1 %vm7637_vm1, %v7636_v1  ;;  %6983 = vmatprep.mubr.msk.f32.mxu0 %vm7637_vm1, %v7636_v1  ;;  %v1051_v7 = vadd.f32 %v1050_v45, %v8129_v54  ;;  %v5411_v44 = vld [vmem:[%s7695_s21 + $0x10c] sm:$0xff] }
 0x18f   : > { %v6565_v62 = vpop.f32.mrf.mxu1  ;;  %v6699_v48 = vpop.f32.mrf.mxu0  ;;  %v5502_v45 = vld [vmem:[%s7695_s21 + $0x105] sm:$0xff] }
 0x191   : > { %v1055_v10 = vpop.f32.mrf.mxu1  ;;  %v1527_v13 = vpop.f32.mrf.mxu0  ;;  %6850 = vmatmul.mubr.msk.f32.gmra.mxu1 %vm291_vm2, %v5409_v58  ;;  %6984 = vmatmul.mubr.msk.f32.gmra.mxu0 %vm291_vm2, %v5500_v61 }
 0x192   : > { %v8665_v50 = vadd.f32 %v1527_v13, %v1051_v7  ;;  %6852 = vmatprep.mubr.msk.f32.mxu1 %vm7637_vm1, %v7636_v1  ;;  %6986 = vmatprep.mubr.msk.f32.mxu0 %vm7637_vm1, %v7636_v1  ;;  %v1056_v28 = vadd.f32 %v1055_v10, %v8141_v60  ;;  %v5412_v7 = vld [vmem:[%s7695_s21 + $0x114] sm:$0xff] }
 0x193   : > { %v6568_v25 = vpop.f32.mrf.mxu1  ;;  %v6702_v54 = vpop.f32.mrf.mxu0  ;;  %v5503_v10 = vld [vmem:[%s7695_s21 + $0x10d] sm:$0xff] }
 0x195   : > { %v1060_v31 = vpop.f32.mrf.mxu1  ;;  %v1532_v36 = vpop.f32.mrf.mxu0  ;;  %6853 = vmatmul.mubr.msk.f32.gmra.mxu1 %vm291_vm2, %v5410_v17  ;;  %6987 = vmatmul.mubr.msk.f32.gmra.mxu0 %vm291_vm2, %v5501_v24 }
 0x196   : > { %v8676_v42 = vadd.f32 %v1532_v36, %v1056_v28  ;;  %6855 = vmatprep.mubr.msk.f32.mxu1 %vm7637_vm1, %v7636_v1  ;;  %6989 = vmatprep.mubr.msk.f32.mxu0 %vm7637_vm1, %v7636_v1  ;;  %v1061_v58 = vadd.f32 %v1060_v31, %v8153_v3  ;;  %v5413_v28 = vld [vmem:[%s7695_s21 + $0x11c] sm:$0xff] }
 0x197   : > { %v6571_v55 = vpop.f32.mrf.mxu1  ;;  %v6705_v60 = vpop.f32.mrf.mxu0  ;;  %v5504_v31 = vld [vmem:[%s7695_s21 + $0x115] sm:$0xff] }
 0x199   : > { %v1065_v61 = vpop.f32.mrf.mxu1  ;;  %v1537_v62 = vpop.f32.mrf.mxu0  ;;  %6856 = vmatmul.mubr.msk.f32.gmra.mxu1 %vm291_vm2, %v5411_v44  ;;  %6990 = vmatmul.mubr.msk.f32.gmra.mxu0 %vm291_vm2, %v5502_v45 }
 0x19a   : > { %v8687_v48 = vadd.f32 %v1537_v62, %v1061_v58  ;;  %6858 = vmatprep.mubr.msk.f32.mxu1 %vm7637_vm1, %v7636_v1  ;;  %6992 = vmatprep.mubr.msk.f32.mxu0 %vm7637_vm1, %v7636_v1  ;;  %v1066_v17 = vadd.f32 %v1065_v61, %v8165_v9  ;;  %v5414_v58 = vld [vmem:[%s7695_s21 + $0x124] sm:$0xff] }
 0x19b   : > { %v6574_v13 = vpop.f32.mrf.mxu1  ;;  %v6708_v3 = vpop.f32.mrf.mxu0  ;;  %v5505_v61 = vld [vmem:[%s7695_s21 + $0x11d] sm:$0xff] }
 0x19d   : > { %v1070_v24 = vpop.f32.mrf.mxu1  ;;  %v1542_v25 = vpop.f32.mrf.mxu0  ;;  %6859 = vmatmul.mubr.msk.f32.gmra.mxu1 %vm291_vm2, %v5412_v7  ;;  %6993 = vmatmul.mubr.msk.f32.gmra.mxu0 %vm291_vm2, %v5503_v10 }
 0x19e   : > { %v8698_v54 = vadd.f32 %v1542_v25, %v1066_v17  ;;  %6861 = vmatprep.mubr.msk.f32.mxu1 %vm7637_vm1, %v7636_v1  ;;  %6995 = vmatprep.mubr.msk.f32.mxu0 %vm7637_vm1, %v7636_v1  ;;  %v1071_v44 = vadd.f32 %v1070_v24, %v8177_v15  ;;  %v5415_v17 = vld [vmem:[%s7695_s21 + $0x12c] sm:$0xff] }
 0x19f   : > { %v6577_v36 = vpop.f32.mrf.mxu1  ;;  %v6711_v9 = vpop.f32.mrf.mxu0  ;;  %v5506_v24 = vld [vmem:[%s7695_s21 + $0x125] sm:$0xff] }
 0x1a1   : > { %v1075_v45 = vpop.f32.mrf.mxu1  ;;  %v1547_v55 = vpop.f32.mrf.mxu0  ;;  %6862 = vmatmul.mubr.msk.f32.gmra.mxu1 %vm291_vm2, %v5413_v28  ;;  %6996 = vmatmul.mubr.msk.f32.gmra.mxu0 %vm291_vm2, %v5504_v31 }
 0x1a2   : > { %v8709_v60 = vadd.f32 %v1547_v55, %v1071_v44  ;;  %6864 = vmatprep.mubr.msk.f32.mxu1 %vm7637_vm1, %v7636_v1  ;;  %6998 = vmatprep.mubr.msk.f32.mxu0 %vm7637_vm1, %v7636_v1  ;;  %v1076_v7 = vadd.f32 %v1075_v45, %v8189_v21  ;;  %v5416_v44 = vld [vmem:[%s7695_s21 + $0x134] sm:$0xff] }
 0x1a3   : > { %v6580_v62 = vpop.f32.mrf.mxu1  ;;  %v6714_v15 = vpop.f32.mrf.mxu0  ;;  %v5507_v45 = vld [vmem:[%s7695_s21 + $0x12d] sm:$0xff] }
 0x1a5   : > { %v1080_v10 = vpop.f32.mrf.mxu1  ;;  %v1552_v13 = vpop.f32.mrf.mxu0  ;;  %6865 = vmatmul.mubr.msk.f32.gmra.mxu1 %vm291_vm2, %v5414_v58  ;;  %6999 = vmatmul.mubr.msk.f32.gmra.mxu0 %vm291_vm2, %v5505_v61 }
 0x1a6   : > { %v8720_v3 = vadd.f32 %v1552_v13, %v1076_v7  ;;  %6867 = vmatprep.mubr.msk.f32.mxu1 %vm7637_vm1, %v7636_v1  ;;  %7001 = vmatprep.mubr.msk.f32.mxu0 %vm7637_vm1, %v7636_v1  ;;  %v1081_v28 = vadd.f32 %v1080_v10, %v8201_v27  ;;  %v5417_v7 = vld [vmem:[%s7695_s21 + $0x13c] sm:$0xff] }
 0x1a7   : > { %v6583_v25 = vpop.f32.mrf.mxu1  ;;  %v6717_v21 = vpop.f32.mrf.mxu0  ;;  %v5508_v10 = vld [vmem:[%s7695_s21 + $0x135] sm:$0xff] }
 0x1a9   : > { %v1085_v31 = vpop.f32.mrf.mxu1  ;;  %v1557_v36 = vpop.f32.mrf.mxu0  ;;  %6868 = vmatmul.mubr.msk.f32.gmra.mxu1 %vm291_vm2, %v5415_v17  ;;  %7002 = vmatmul.mubr.msk.f32.gmra.mxu0 %vm291_vm2, %v5506_v24 }
 0x1aa   : > { %v8731_v9 = vadd.f32 %v1557_v36, %v1081_v28  ;;  %6870 = vmatprep.mubr.msk.f32.mxu1 %vm7637_vm1, %v7636_v1  ;;  %7004 = vmatprep.mubr.msk.f32.mxu0 %vm7637_vm1, %v7636_v1  ;;  %v1086_v58 = vadd.f32 %v1085_v31, %v8213_v33  ;;  %v5418_v28 = vld [vmem:[%s7695_s21 + $0x144] sm:$0xff] }
 0x1ab   : > { %v6586_v55 = vpop.f32.mrf.mxu1  ;;  %v6720_v27 = vpop.f32.mrf.mxu0  ;;  %v5509_v31 = vld [vmem:[%s7695_s21 + $0x13d] sm:$0xff] }
 0x1ad   : > { %v1090_v61 = vpop.f32.mrf.mxu1  ;;  %v1562_v62 = vpop.f32.mrf.mxu0  ;;  %6871 = vmatmul.mubr.msk.f32.gmra.mxu1 %vm291_vm2, %v5416_v44  ;;  %7005 = vmatmul.mubr.msk.f32.gmra.mxu0 %vm291_vm2, %v5507_v45 }
 0x1ae   : > { %v8742_v15 = vadd.f32 %v1562_v62, %v1086_v58  ;;  %6873 = vmatprep.mubr.msk.f32.mxu1 %vm7637_vm1, %v7636_v1  ;;  %7007 = vmatprep.mubr.msk.f32.mxu0 %vm7637_vm1, %v7636_v1  ;;  %v1091_v17 = vadd.f32 %v1090_v61, %v8225_v39  ;;  %v5419_v58 = vld [vmem:[%s7695_s21 + $0x14c] sm:$0xff] }
 0x1af   : > { %v6589_v13 = vpop.f32.mrf.mxu1  ;;  %v6723_v33 = vpop.f32.mrf.mxu0  ;;  %v5510_v61 = vld [vmem:[%s7695_s21 + $0x145] sm:$0xff] }
 0x1b1   : > { %v1095_v24 = vpop.f32.mrf.mxu1  ;;  %v1567_v25 = vpop.f32.mrf.mxu0  ;;  %6874 = vmatmul.mubr.msk.f32.gmra.mxu1 %vm291_vm2, %v5417_v7  ;;  %7008 = vmatmul.mubr.msk.f32.gmra.mxu0 %vm291_vm2, %v5508_v10 }
 0x1b2   : > { %v8753_v21 = vadd.f32 %v1567_v25, %v1091_v17  ;;  %6876 = vmatprep.mubr.msk.f32.mxu1 %vm7637_vm1, %v7636_v1  ;;  %7010 = vmatprep.mubr.msk.f32.mxu0 %vm7637_vm1, %v7636_v1  ;;  %v1096_v44 = vadd.f32 %v1095_v24, %v8237_v49  ;;  %v5420_v17 = vld [vmem:[%s7695_s21 + $0x154] sm:$0xff] }
 0x1b3   : > { %v6592_v36 = vpop.f32.mrf.mxu1  ;;  %v6726_v39 = vpop.f32.mrf.mxu0  ;;  %v5511_v24 = vld [vmem:[%s7695_s21 + $0x14d] sm:$0xff] }
 0x1b5   : > { %v1100_v45 = vpop.f32.mrf.mxu1  ;;  %v1572_v55 = vpop.f32.mrf.mxu0  ;;  %6877 = vmatmul.mubr.msk.f32.gmra.mxu1 %vm291_vm2, %v5418_v28  ;;  %7011 = vmatmul.mubr.msk.f32.gmra.mxu0 %vm291_vm2, %v5509_v31 }
 0x1b6   : > { %v8764_v27 = vadd.f32 %v1572_v55, %v1096_v44  ;;  %6879 = vmatprep.mubr.msk.f32.mxu1 %vm7637_vm1, %v7636_v1  ;;  %7013 = vmatprep.mubr.msk.f32.mxu0 %vm7637_vm1, %v7636_v1  ;;  %v1101_v7 = vadd.f32 %v1100_v45, %v8249_v57  ;;  %v5421_v44 = vld [vmem:[%s7695_s21 + $0x15c] sm:$0xff] }
 0x1b7   : > { %v6595_v62 = vpop.f32.mrf.mxu1  ;;  %v6729_v49 = vpop.f32.mrf.mxu0  ;;  %v5512_v45 = vld [vmem:[%s7695_s21 + $0x155] sm:$0xff] }
 0x1b9   : > { %v1105_v10 = vpop.f32.mrf.mxu1  ;;  %v1577_v13 = vpop.f32.mrf.mxu0  ;;  %6880 = vmatmul.mubr.msk.f32.gmra.mxu1 %vm291_vm2, %v5419_v58  ;;  %7014 = vmatmul.mubr.msk.f32.gmra.mxu0 %vm291_vm2, %v5510_v61 }
 0x1ba   : > { %v8775_v33 = vadd.f32 %v1577_v13, %v1101_v7  ;;  %6882 = vmatprep.mubr.msk.f32.mxu1 %vm7637_vm1, %v7636_v1  ;;  %7016 = vmatprep.mubr.msk.f32.mxu0 %vm7637_vm1, %v7636_v1  ;;  %v1106_v28 = vadd.f32 %v1105_v10, %v8261_v4  ;;  %v5422_v7 = vld [vmem:[%s7695_s21 + $0x164] sm:$0xff] }
 0x1bb   : > { %v6598_v25 = vpop.f32.mrf.mxu1  ;;  %v6732_v57 = vpop.f32.mrf.mxu0  ;;  %v5513_v10 = vld [vmem:[%s7695_s21 + $0x15d] sm:$0xff] }
 0x1bd   : > { %v1110_v31 = vpop.f32.mrf.mxu1  ;;  %v1582_v36 = vpop.f32.mrf.mxu0  ;;  %6883 = vmatmul.mubr.msk.f32.gmra.mxu1 %vm291_vm2, %v5420_v17  ;;  %7017 = vmatmul.mubr.msk.f32.gmra.mxu0 %vm291_vm2, %v5511_v24 }
 0x1be   : > { %v8786_v39 = vadd.f32 %v1582_v36, %v1106_v28  ;;  %6885 = vmatprep.mubr.msk.f32.mxu1 %vm7637_vm1, %v7636_v1  ;;  %7019 = vmatprep.mubr.msk.f32.mxu0 %vm7637_vm1, %v7636_v1  ;;  %v1111_v58 = vadd.f32 %v1110_v31, %v8273_v12  ;;  %v5423_v28 = vld [vmem:[%s7695_s21 + $0x16c] sm:$0xff] }
 0x1bf   : > { %v6601_v55 = vpop.f32.mrf.mxu1  ;;  %v6735_v4 = vpop.f32.mrf.mxu0  ;;  %v5514_v31 = vld [vmem:[%s7695_s21 + $0x165] sm:$0xff] }
 0x1c1   : > { %v1115_v61 = vpop.f32.mrf.mxu1  ;;  %v1587_v62 = vpop.f32.mrf.mxu0  ;;  %6886 = vmatmul.mubr.msk.f32.gmra.mxu1 %vm291_vm2, %v5421_v44  ;;  %7020 = vmatmul.mubr.msk.f32.gmra.mxu0 %vm291_vm2, %v5512_v45 }
 0x1c2   : > { %v8797_v49 = vadd.f32 %v1587_v62, %v1111_v58  ;;  %6888 = vmatprep.mubr.msk.f32.mxu1 %vm7637_vm1, %v7636_v1  ;;  %7022 = vmatprep.mubr.msk.f32.mxu0 %vm7637_vm1, %v7636_v1  ;;  %v1116_v17 = vadd.f32 %v1115_v61, %v8285_v22  ;;  %v5424_v58 = vld [vmem:[%s7695_s21 + $0x174] sm:$0xff] }
 0x1c3   : > { %v6604_v13 = vpop.f32.mrf.mxu1  ;;  %v6738_v12 = vpop.f32.mrf.mxu0  ;;  %v5515_v61 = vld [vmem:[%s7695_s21 + $0x16d] sm:$0xff] }
 0x1c5   : > { %v1120_v24 = vpop.f32.mrf.mxu1  ;;  %v1592_v25 = vpop.f32.mrf.mxu0  ;;  %6889 = vmatmul.mubr.msk.f32.gmra.mxu1 %vm291_vm2, %v5422_v7  ;;  %7023 = vmatmul.mubr.msk.f32.gmra.mxu0 %vm291_vm2, %v5513_v10 }
 0x1c6   : > { %v8808_v57 = vadd.f32 %v1592_v25, %v1116_v17  ;;  %6891 = vmatprep.mubr.msk.f32.mxu1 %vm7637_vm1, %v7636_v1  ;;  %7025 = vmatprep.mubr.msk.f32.mxu0 %vm7637_vm1, %v7636_v1  ;;  %v1121_v44 = vadd.f32 %v1120_v24, %v8297_v30  ;;  %v5516_v17 = vld [vmem:[%s7695_s21 + $0x175] sm:$0xff] }
 0x1c7   : > { %v6607_v36 = vpop.f32.mrf.mxu1  ;;  %v6741_v22 = vpop.f32.mrf.mxu0  ;;  %v5564_v24 = vld [vmem:[%s7695_s21 + $0x16] sm:$0xff] }
 0x1c9   : > { %v1125_v45 = vpop.f32.mrf.mxu1  ;;  %v1597_v55 = vpop.f32.mrf.mxu0  ;;  %6892 = vmatmul.mubr.msk.f32.gmra.mxu1 %vm291_vm2, %v5423_v28  ;;  %7026 = vmatmul.mubr.msk.f32.gmra.mxu0 %vm291_vm2, %v5514_v31  ;;  %v5793_v28 = vld [vmem:[%s10047_s1 + $0x1c] sm:$0xf] }
 0x1ca   : > { %v8819_v4 = vadd.f32 %v1597_v55, %v1121_v44  ;;  %6894 = vmatprep.mubr.msk.f32.mxu1 %vm7637_vm1, %v7636_v1  ;;  %7028 = vmatprep.mubr.msk.f32.mxu0 %vm7637_vm1, %v7636_v1  ;;  %v1126_v7 = vadd.f32 %v1125_v45, %v8309_v40  ;;  %v5565_v45 = vld [vmem:[%s7695_s21 + $0x1e] sm:$0xff]  ;;  %v5656_v55 = vld [vmem:[%s7695_s21 + $0x28] sm:$0xff] }
 0x1cb   : > { %v6610_v62 = vpop.f32.mrf.mxu1  ;;  %v6744_v30 = vpop.f32.mrf.mxu0 }
 0x1cd   : > { %v1130_v10 = vpop.f32.mrf.mxu1  ;;  %v1602_v13 = vpop.f32.mrf.mxu0  ;;  %6895 = vmatmul.mubr.msk.f32.gmra.mxu1 %vm291_vm2, %v5424_v58  ;;  %7029 = vmatmul.mubr.msk.f32.gmra.mxu0 %vm291_vm2, %v5515_v61 }
 0x1ce   : > { %v8830_v12 = vadd.f32 %v1602_v13, %v1126_v7  ;;  %7031 = vmatprep.mubr.msk.f32.mxu0 %vm7637_vm1, %v7636_v1  ;;  %7036 = vmatprep.mubr.msk.f32.mxu1 %vm7637_vm1, %v7636_v1  ;;  %v1131_v31 = vadd.f32 %v1130_v10, %v8321_v52  ;;  %v5885_v52 = vld [vmem:[%s10047_s1 + $0x20] sm:$0xf]  ;;  %v5566_v13 = vld [vmem:[%s7695_s21 + $0x26] sm:$0xff] }
 0x1cf   : > { %v6613_v25 = vpop.f32.mrf.mxu1  ;;  %v6747_v40 = vpop.f32.mrf.mxu0 }
 0x1d1   : > { %v1135_v36 = vpop.f32.mrf.mxu1  ;;  %v1607_v22 = vpop.f32.mrf.mxu0  ;;  %7032 = vmatmul.mubr.msk.f32.gmra.mxu0 %vm291_vm2, %v5516_v17  ;;  %7037 = vmatmul.mubr.msk.f32.vlgmr.msra.gmra.mxu1 %vm291_vm2, %v5564_v24  ;;  %v5657_v17 = vld [vmem:[%s7695_s21 + $0x30] sm:$0xff] }
 0x1d2   : > { %v8844_v44 = vadd.f32 %v1607_v22, %v1131_v31  ;;  %7309 = vmatpush3.msk.msra.mxu1 %vm427_vm0, %v5793_v28  ;;  %7039 = vmatprep.mubr.msk.f32.mxu1 %vm7637_vm1, %v7636_v1  ;;  %v1136_v62 = vadd.f32 %v1135_v36, %v8336_v6  ;;  %v5567_v36 = vld [vmem:[%s7695_s21 + $0x2e] sm:$0xff]  ;;  %v5658_v22 = vld [vmem:[%s7695_s21 + $0x38] sm:$0xff] }
 0x1d3   : > { %v6616_v58 = vpop.f32.mrf.mxu1  ;;  %v6750_v61 = vpop.f32.mrf.mxu0  ;;  %7173 = vmatprep.mubr.msk.f32.mxu0 %vm7637_vm1, %v7636_v1 }
 0x1d5   : > { %v1140_v30 = vpop.f32.mrf.mxu1  ;;  %v1612_v7 = vpop.f32.mrf.mxu0  ;;  %7040 = vmatmul.mubr.msk.f32.gmra.mxu1 %vm291_vm2, %v5565_v45  ;;  %7174 = vmatmul.mubr.msk.f32.vlgmr.msra.gmra.mxu0 %vm291_vm2, %v5656_v55 }
 0x1d6   : > { %v8859_v10 = vadd.f32 %v1612_v7, %v1136_v62  ;;  %7446 = vmatpush3.msk.msra.mxu0 %vm427_vm0, %v5885_v52  ;;  %7042 = vmatprep.mubr.msk.f32.mxu1 %vm7637_vm1, %v7636_v1  ;;  %v1141_v6 = vadd.f32 %v1140_v30, %v8353_v23  ;;  %v5568_v30 = vld [vmem:[%s7695_s21 + $0x36] sm:$0xff] }
 0x1d7   : > { %v6619_v24 = vpop.f32.mrf.mxu1  ;;  %v6753_v25 = vpop.f32.mrf.mxu0  ;;  %7176 = vmatprep.mubr.msk.f32.mxu0 %vm7637_vm1, %v7636_v1 }
 0x1d9   : > { %v1145_v40 = vpop.f32.mrf.mxu1  ;;  %v1617_v28 = vpop.f32.mrf.mxu0  ;;  %7043 = vmatmul.mubr.msk.f32.gmra.mxu1 %vm291_vm2, %v5566_v13  ;;  %7177 = vmatmul.mubr.msk.f32.gmra.mxu0 %vm291_vm2, %v5657_v17 }
 0x1da   : > { %v8871_v31 = vadd.f32 %v1617_v28, %v1141_v6  ;;  %7045 = vmatprep.mubr.msk.f32.mxu1 %vm7637_vm1, %v7636_v1  ;;  %7179 = vmatprep.mubr.msk.f32.mxu0 %vm7637_vm1, %v7636_v1  ;;  %v1146_v55 = vadd.f32 %v1145_v40, %v8367_v35  ;;  %v5659_v35 = vld [vmem:[%s7695_s21 + $0x40] sm:$0xff]  ;;  %v5660_v40 = vld [vmem:[%s7695_s21 + $0x48] sm:$0xff] }
 0x1db   : > { %v6622_v45 = vpop.f32.mrf.mxu1  ;;  %v6756_v23 = vpop.f32.mrf.mxu0  ;;  %v5569_v6 = vld [vmem:[%s7695_s21 + $0x3e] sm:$0xff] }
 0x1dd   : > { %v1622_v58 = vpop.f32.mrf.mxu0  ;;  %v1924_v61 = vpop.f32.mrf.mxu1  ;;  %7046 = vmatmul.mubr.msk.f32.gmra.mxu1 %vm291_vm2, %v5567_v36  ;;  %7180 = vmatmul.mubr.msk.f32.gmra.mxu0 %vm291_vm2, %v5658_v22 }
 0x1de   : > { %v8882_v52 = vadd.f32 %v1622_v58, %v1146_v55  ;;  %v2148_v62 = vadd.f32 %v1924_v61, %v8390_v16  ;;  %7048 = vmatprep.mubr.msk.f32.mxu1 %vm7637_vm1, %v7636_v1  ;;  %7182 = vmatprep.mubr.msk.f32.mxu0 %vm7637_vm1, %v7636_v1  ;;  %v5570_v55 = vld [vmem:[%s7695_s21 + $0x46] sm:$0xff]  ;;  %v5661_v58 = vld [vmem:[%s7695_s21 + $0x50] sm:$0xff] }
 0x1df   : > { %v6759_v7 = vpop.f32.mrf.mxu0  ;;  %v6764_v13 = vpop.f32.mrf.mxu1 }
 0x1e0   : > { %v5571_v13 = vld [vmem:[%s7695_s21 + $0x4e] sm:$0xff] }
 0x1e1   : > { %v1929_v17 = vpop.f32.mrf.mxu1  ;;  %v2446_v24 = vpop.f32.mrf.mxu0  ;;  %7049 = vmatmul.mubr.msk.f32.gmra.mxu1 %vm291_vm2, %v5568_v30  ;;  %7183 = vmatmul.mubr.msk.f32.gmra.mxu0 %vm291_vm2, %v5659_v35 }
 0x1e2   : > { %v2149_v25 = vadd.f32 %v1929_v17, %v8401_v43  ;;  %v8894_v16 = vadd.f32 %v2446_v24, %v2148_v62  ;;  %7051 = vmatprep.mubr.msk.f32.mxu1 %vm7637_vm1, %v7636_v1  ;;  %7185 = vmatprep.mubr.msk.f32.mxu0 %vm7637_vm1, %v7636_v1  ;;  %v5662_v17 = vld [vmem:[%s7695_s21 + $0x58] sm:$0xff] }
 0x1e3   : > { %v6767_v28 = vpop.f32.mrf.mxu1  ;;  %v6901_v36 = vpop.f32.mrf.mxu0 }
 0x1e4   : > { %v5572_v36 = vld [vmem:[%s7695_s21 + $0x56] sm:$0xff] }
 0x1e5   : > { %v1934_v22 = vpop.f32.mrf.mxu1  ;;  %v2451_v45 = vpop.f32.mrf.mxu0  ;;  %7052 = vmatmul.mubr.msk.f32.gmra.mxu1 %vm291_vm2, %v5569_v6  ;;  %7186 = vmatmul.mubr.msk.f32.gmra.mxu0 %vm291_vm2, %v5660_v40 }
 0x1e6   : > { %v2150_v43 = vadd.f32 %v1934_v22, %v8412_v63  ;;  %v8905_v23 = vadd.f32 %v2451_v45, %v2149_v25  ;;  %7054 = vmatprep.mubr.msk.f32.mxu1 %vm7637_vm1, %v7636_v1  ;;  %7188 = vmatprep.mubr.msk.f32.mxu0 %vm7637_vm1, %v7636_v1  ;;  %v5663_v22 = vld [vmem:[%s7695_s21 + $0x60] sm:$0xff] }
 0x1e7   : > { %v6770_v61 = vpop.f32.mrf.mxu1  ;;  %v6904_v62 = vpop.f32.mrf.mxu0 }
 0x1e8   : > { %v5573_v62 = vld [vmem:[%s7695_s21 + $0x5e] sm:$0xff] }
 0x1e9   : > { %v1939_v30 = vpop.f32.mrf.mxu1  ;;  %v2456_v35 = vpop.f32.mrf.mxu0  ;;  %7055 = vmatmul.mubr.msk.f32.gmra.mxu1 %vm291_vm2, %v5570_v55  ;;  %7189 = vmatmul.mubr.msk.f32.gmra.mxu0 %vm291_vm2, %v5661_v58 }
 0x1ea   : > { %v2151_v63 = vadd.f32 %v1939_v30, %v8423_v41  ;;  %v8916_v7 = vadd.f32 %v2456_v35, %v2150_v43  ;;  %7057 = vmatprep.mubr.msk.f32.mxu1 %vm7637_vm1, %v7636_v1  ;;  %7191 = vmatprep.mubr.msk.f32.mxu0 %vm7637_vm1, %v7636_v1  ;;  %v5664_v30 = vld [vmem:[%s7695_s21 + $0x68] sm:$0xff] }
 0x1eb   : > { %v6773_v24 = vpop.f32.mrf.mxu1  ;;  %v6907_v25 = vpop.f32.mrf.mxu0 }
 0x1ec   : > { %v5574_v25 = vld [vmem:[%s7695_s21 + $0x66] sm:$0xff] }
 0x1ed   : > { %v1944_v6 = vpop.f32.mrf.mxu1  ;;  %v2461_v40 = vpop.f32.mrf.mxu0  ;;  %7058 = vmatmul.mubr.msk.f32.gmra.mxu1 %vm291_vm2, %v5571_v13  ;;  %7192 = vmatmul.mubr.msk.f32.gmra.mxu0 %vm291_vm2, %v5662_v17 }
 0x1ee   : > { %v2152_v41 = vadd.f32 %v1944_v6, %v8434_v47  ;;  %v8927_v28 = vadd.f32 %v2461_v40, %v2151_v63  ;;  %7060 = vmatprep.mubr.msk.f32.mxu1 %vm7637_vm1, %v7636_v1  ;;  %7194 = vmatprep.mubr.msk.f32.mxu0 %vm7637_vm1, %v7636_v1  ;;  %v5665_v6 = vld [vmem:[%s7695_s21 + $0x70] sm:$0xff] }
 0x1ef   : > { %v6776_v45 = vpop.f32.mrf.mxu1  ;;  %v6910_v43 = vpop.f32.mrf.mxu0 }
 0x1f0   : > { %v5575_v43 = vld [vmem:[%s7695_s21 + $0x6e] sm:$0xff] }
 0x1f1   : > { %v1949_v55 = vpop.f32.mrf.mxu1  ;;  %v2466_v58 = vpop.f32.mrf.mxu0  ;;  %7061 = vmatmul.mubr.msk.f32.gmra.mxu1 %vm291_vm2, %v5572_v36  ;;  %7195 = vmatmul.mubr.msk.f32.gmra.mxu0 %vm291_vm2, %v5663_v22 }
 0x1f2   : > { %v2153_v47 = vadd.f32 %v1949_v55, %v8445_v53  ;;  %v8938_v61 = vadd.f32 %v2466_v58, %v2152_v41  ;;  %7063 = vmatprep.mubr.msk.f32.mxu1 %vm7637_vm1, %v7636_v1  ;;  %7197 = vmatprep.mubr.msk.f32.mxu0 %vm7637_vm1, %v7636_v1  ;;  %v5666_v55 = vld [vmem:[%s7695_s21 + $0x78] sm:$0xff] }
 0x1f3   : > { %v6779_v35 = vpop.f32.mrf.mxu1  ;;  %v6913_v63 = vpop.f32.mrf.mxu0 }
 0x1f4   : > { %v5576_v63 = vld [vmem:[%s7695_s21 + $0x76] sm:$0xff] }
 0x1f5   : > { %v1954_v13 = vpop.f32.mrf.mxu1  ;;  %v2471_v17 = vpop.f32.mrf.mxu0  ;;  %7064 = vmatmul.mubr.msk.f32.gmra.mxu1 %vm291_vm2, %v5573_v62  ;;  %7198 = vmatmul.mubr.msk.f32.gmra.mxu0 %vm291_vm2, %v5664_v30 }
 0x1f6   : > { %v2154_v53 = vadd.f32 %v1954_v13, %v8456_v59  ;;  %v8949_v24 = vadd.f32 %v2471_v17, %v2153_v47  ;;  %7066 = vmatprep.mubr.msk.f32.mxu1 %vm7637_vm1, %v7636_v1  ;;  %7200 = vmatprep.mubr.msk.f32.mxu0 %vm7637_vm1, %v7636_v1  ;;  %v5667_v13 = vld [vmem:[%s7695_s21 + $0x80] sm:$0xff] }
 0x1f7   : > { %v6782_v40 = vpop.f32.mrf.mxu1  ;;  %v6916_v41 = vpop.f32.mrf.mxu0 }
 0x1f8   : > { %v5577_v41 = vld [vmem:[%s7695_s21 + $0x7e] sm:$0xff] }
 0x1f9   : > { %v1959_v36 = vpop.f32.mrf.mxu1  ;;  %v2476_v22 = vpop.f32.mrf.mxu0  ;;  %7067 = vmatmul.mubr.msk.f32.gmra.mxu1 %vm291_vm2, %v5574_v25  ;;  %7201 = vmatmul.mubr.msk.f32.gmra.mxu0 %vm291_vm2, %v5665_v6 }
 0x1fa   : > { %v2155_v59 = vadd.f32 %v1959_v36, %v8467_v2  ;;  %v8960_v45 = vadd.f32 %v2476_v22, %v2154_v53  ;;  %7069 = vmatprep.mubr.msk.f32.mxu1 %vm7637_vm1, %v7636_v1  ;;  %7203 = vmatprep.mubr.msk.f32.mxu0 %vm7637_vm1, %v7636_v1  ;;  %v5668_v36 = vld [vmem:[%s7695_s21 + $0x88] sm:$0xff] }
 0x1fb   : > { %v6785_v58 = vpop.f32.mrf.mxu1  ;;  %v6919_v47 = vpop.f32.mrf.mxu0 }
 0x1fc   : > { %v5578_v47 = vld [vmem:[%s7695_s21 + $0x86] sm:$0xff] }
 0x1fd   : > { %v1964_v62 = vpop.f32.mrf.mxu1  ;;  %v2481_v30 = vpop.f32.mrf.mxu0  ;;  %7070 = vmatmul.mubr.msk.f32.gmra.mxu1 %vm291_vm2, %v5575_v43  ;;  %7204 = vmatmul.mubr.msk.f32.gmra.mxu0 %vm291_vm2, %v5666_v55 }
 0x1fe   : > { %v2156_v2 = vadd.f32 %v1964_v62, %v8478_v8  ;;  %v8971_v35 = vadd.f32 %v2481_v30, %v2155_v59  ;;  %7072 = vmatprep.mubr.msk.f32.mxu1 %vm7637_vm1, %v7636_v1  ;;  %7206 = vmatprep.mubr.msk.f32.mxu0 %vm7637_vm1, %v7636_v1  ;;  %v5669_v62 = vld [vmem:[%s7695_s21 + $0x90] sm:$0xff] }
 0x1ff   : > { %v6788_v17 = vpop.f32.mrf.mxu1  ;;  %v6922_v53 = vpop.f32.mrf.mxu0 }
 0x200   : > { %v5579_v53 = vld [vmem:[%s7695_s21 + $0x8e] sm:$0xff] }
 0x201   : > { %v1969_v25 = vpop.f32.mrf.mxu1  ;;  %v2486_v6 = vpop.f32.mrf.mxu0  ;;  %7073 = vmatmul.mubr.msk.f32.gmra.mxu1 %vm291_vm2, %v5576_v63  ;;  %7207 = vmatmul.mubr.msk.f32.gmra.mxu0 %vm291_vm2, %v5667_v13 }
 0x202   : > { %v2157_v8 = vadd.f32 %v1969_v25, %v8489_v14  ;;  %v8982_v40 = vadd.f32 %v2486_v6, %v2156_v2  ;;  %7075 = vmatprep.mubr.msk.f32.mxu1 %vm7637_vm1, %v7636_v1  ;;  %7209 = vmatprep.mubr.msk.f32.mxu0 %vm7637_vm1, %v7636_v1  ;;  %v5670_v25 = vld [vmem:[%s7695_s21 + $0x98] sm:$0xff] }
 0x203   : > { %v6791_v22 = vpop.f32.mrf.mxu1  ;;  %v6925_v59 = vpop.f32.mrf.mxu0 }
 0x204   : > { %v5580_v59 = vld [vmem:[%s7695_s21 + $0x96] sm:$0xff] }
 0x205   : > { %v1974_v43 = vpop.f32.mrf.mxu1  ;;  %v2491_v55 = vpop.f32.mrf.mxu0  ;;  %7076 = vmatmul.mubr.msk.f32.gmra.mxu1 %vm291_vm2, %v5577_v41  ;;  %7210 = vmatmul.mubr.msk.f32.gmra.mxu0 %vm291_vm2, %v5668_v36 }
 0x206   : > { %v2158_v14 = vadd.f32 %v1974_v43, %v8500_v20  ;;  %v8993_v58 = vadd.f32 %v2491_v55, %v2157_v8  ;;  %7078 = vmatprep.mubr.msk.f32.mxu1 %vm7637_vm1, %v7636_v1  ;;  %7212 = vmatprep.mubr.msk.f32.mxu0 %vm7637_vm1, %v7636_v1  ;;  %v5671_v43 = vld [vmem:[%s7695_s21 + $0xa0] sm:$0xff] }
 0x207   : > { %v6794_v30 = vpop.f32.mrf.mxu1  ;;  %v6928_v2 = vpop.f32.mrf.mxu0 }
 0x208   : > { %v5581_v2 = vld [vmem:[%s7695_s21 + $0x9e] sm:$0xff] }
 0x209   : > { %v1979_v63 = vpop.f32.mrf.mxu1  ;;  %v2496_v13 = vpop.f32.mrf.mxu0  ;;  %7079 = vmatmul.mubr.msk.f32.gmra.mxu1 %vm291_vm2, %v5578_v47  ;;  %7213 = vmatmul.mubr.msk.f32.gmra.mxu0 %vm291_vm2, %v5669_v62 }
 0x20a   : > { %v2159_v20 = vadd.f32 %v1979_v63, %v8511_v26  ;;  %v9004_v17 = vadd.f32 %v2496_v13, %v2158_v14  ;;  %7081 = vmatprep.mubr.msk.f32.mxu1 %vm7637_vm1, %v7636_v1  ;;  %7215 = vmatprep.mubr.msk.f32.mxu0 %vm7637_vm1, %v7636_v1  ;;  %v5672_v63 = vld [vmem:[%s7695_s21 + $0xa8] sm:$0xff] }
 0x20b   : > { %v6797_v6 = vpop.f32.mrf.mxu1  ;;  %v6931_v8 = vpop.f32.mrf.mxu0 }
 0x20c   : > { %v5582_v8 = vld [vmem:[%s7695_s21 + $0xa6] sm:$0xff] }
 0x20d   : > { %v1984_v41 = vpop.f32.mrf.mxu1  ;;  %v2501_v36 = vpop.f32.mrf.mxu0  ;;  %7082 = vmatmul.mubr.msk.f32.gmra.mxu1 %vm291_vm2, %v5579_v53  ;;  %7216 = vmatmul.mubr.msk.f32.gmra.mxu0 %vm291_vm2, %v5670_v25 }
 0x20e   : > { %v2160_v26 = vadd.f32 %v1984_v41, %v8522_v32  ;;  %v9015_v22 = vadd.f32 %v2501_v36, %v2159_v20  ;;  %7084 = vmatprep.mubr.msk.f32.mxu1 %vm7637_vm1, %v7636_v1  ;;  %7218 = vmatprep.mubr.msk.f32.mxu0 %vm7637_vm1, %v7636_v1  ;;  %v5673_v41 = vld [vmem:[%s7695_s21 + $0xb0] sm:$0xff] }
 0x20f   : > { %v6800_v55 = vpop.f32.mrf.mxu1  ;;  %v6934_v14 = vpop.f32.mrf.mxu0 }
 0x210   : > { %v5583_v14 = vld [vmem:[%s7695_s21 + $0xae] sm:$0xff] }
 0x211   : > { %v1989_v47 = vpop.f32.mrf.mxu1  ;;  %v2506_v62 = vpop.f32.mrf.mxu0  ;;  %7085 = vmatmul.mubr.msk.f32.gmra.mxu1 %vm291_vm2, %v5580_v59  ;;  %7219 = vmatmul.mubr.msk.f32.gmra.mxu0 %vm291_vm2, %v5671_v43 }
 0x212   : > { %v2161_v32 = vadd.f32 %v1989_v47, %v8533_v38  ;;  %v9026_v30 = vadd.f32 %v2506_v62, %v2160_v26  ;;  %7087 = vmatprep.mubr.msk.f32.mxu1 %vm7637_vm1, %v7636_v1  ;;  %7221 = vmatprep.mubr.msk.f32.mxu0 %vm7637_vm1, %v7636_v1  ;;  %v5674_v47 = vld [vmem:[%s7695_s21 + $0xb8] sm:$0xff] }
 0x213   : > { %v6803_v13 = vpop.f32.mrf.mxu1  ;;  %v6937_v20 = vpop.f32.mrf.mxu0 }
 0x214   : > { %v5584_v20 = vld [vmem:[%s7695_s21 + $0xb6] sm:$0xff] }
 0x215   : > { %v1994_v53 = vpop.f32.mrf.mxu1  ;;  %v2511_v25 = vpop.f32.mrf.mxu0  ;;  %7088 = vmatmul.mubr.msk.f32.gmra.mxu1 %vm291_vm2, %v5581_v2  ;;  %7222 = vmatmul.mubr.msk.f32.gmra.mxu0 %vm291_vm2, %v5672_v63 }
 0x216   : > { %v2162_v38 = vadd.f32 %v1994_v53, %v8544_v46  ;;  %v9037_v6 = vadd.f32 %v2511_v25, %v2161_v32  ;;  %7090 = vmatprep.mubr.msk.f32.mxu1 %vm7637_vm1, %v7636_v1  ;;  %7224 = vmatprep.mubr.msk.f32.mxu0 %vm7637_vm1, %v7636_v1  ;;  %v5675_v53 = vld [vmem:[%s7695_s21 + $0xc0] sm:$0xff] }
 0x217   : > { %v6806_v36 = vpop.f32.mrf.mxu1  ;;  %v6940_v26 = vpop.f32.mrf.mxu0 }
 0x218   : > { %v5585_v26 = vld [vmem:[%s7695_s21 + $0xbe] sm:$0xff] }
 0x219   : > { %v1999_v59 = vpop.f32.mrf.mxu1  ;;  %v2516_v43 = vpop.f32.mrf.mxu0  ;;  %7091 = vmatmul.mubr.msk.f32.gmra.mxu1 %vm291_vm2, %v5582_v8  ;;  %7225 = vmatmul.mubr.msk.f32.gmra.mxu0 %vm291_vm2, %v5673_v41 }
 0x21a   : > { %v2163_v46 = vadd.f32 %v1999_v59, %v8555_v56  ;;  %v9048_v55 = vadd.f32 %v2516_v43, %v2162_v38  ;;  %7093 = vmatprep.mubr.msk.f32.mxu1 %vm7637_vm1, %v7636_v1  ;;  %7227 = vmatprep.mubr.msk.f32.mxu0 %vm7637_vm1, %v7636_v1  ;;  %v5676_v59 = vld [vmem:[%s7695_s21 + $0xc8] sm:$0xff] }
 0x21b   : > { %v6809_v62 = vpop.f32.mrf.mxu1  ;;  %v6943_v32 = vpop.f32.mrf.mxu0 }
 0x21c   : > { %v5586_v32 = vld [vmem:[%s7695_s21 + $0xc6] sm:$0xff] }
 0x21d   : > { %v2004_v2 = vpop.f32.mrf.mxu1  ;;  %v2521_v63 = vpop.f32.mrf.mxu0  ;;  %7094 = vmatmul.mubr.msk.f32.gmra.mxu1 %vm291_vm2, %v5583_v14  ;;  %7228 = vmatmul.mubr.msk.f32.gmra.mxu0 %vm291_vm2, %v5674_v47 }
 0x21e   : > { %v2164_v56 = vadd.f32 %v2004_v2, %v8566_v0  ;;  %v9059_v13 = vadd.f32 %v2521_v63, %v2163_v46  ;;  %7096 = vmatprep.mubr.msk.f32.mxu1 %vm7637_vm1, %v7636_v1  ;;  %7230 = vmatprep.mubr.msk.f32.mxu0 %vm7637_vm1, %v7636_v1  ;;  %v5677_v2 = vld [vmem:[%s7695_s21 + $0xd0] sm:$0xff] }
 0x21f   : > { %v6812_v25 = vpop.f32.mrf.mxu1  ;;  %v6946_v38 = vpop.f32.mrf.mxu0 }
 0x220   : > { %v5587_v38 = vld [vmem:[%s7695_s21 + $0xce] sm:$0xff] }
 0x221   : > { %v2009_v8 = vpop.f32.mrf.mxu1  ;;  %v2526_v41 = vpop.f32.mrf.mxu0  ;;  %7097 = vmatmul.mubr.msk.f32.gmra.mxu1 %vm291_vm2, %v5584_v20  ;;  %7231 = vmatmul.mubr.msk.f32.gmra.mxu0 %vm291_vm2, %v5675_v53 }
 0x222   : > { %v2165_v0 = vadd.f32 %v2009_v8, %v8577_v11  ;;  %v9070_v36 = vadd.f32 %v2526_v41, %v2164_v56  ;;  %7099 = vmatprep.mubr.msk.f32.mxu1 %vm7637_vm1, %v7636_v1  ;;  %7233 = vmatprep.mubr.msk.f32.mxu0 %vm7637_vm1, %v7636_v1  ;;  %v5678_v8 = vld [vmem:[%s7695_s21 + $0xd8] sm:$0xff] }
 0x223   : > { %v6815_v43 = vpop.f32.mrf.mxu1  ;;  %v6949_v46 = vpop.f32.mrf.mxu0 }
 0x224   : > { %v5588_v46 = vld [vmem:[%s7695_s21 + $0xd6] sm:$0xff] }
 0x225   : > { %v2014_v14 = vpop.f32.mrf.mxu1  ;;  %v2531_v47 = vpop.f32.mrf.mxu0  ;;  %7100 = vmatmul.mubr.msk.f32.gmra.mxu1 %vm291_vm2, %v5585_v26  ;;  %7234 = vmatmul.mubr.msk.f32.gmra.mxu0 %vm291_vm2, %v5676_v59 }
 0x226   : > { %v2166_v11 = vadd.f32 %v2014_v14, %v8588_v19  ;;  %v9081_v62 = vadd.f32 %v2531_v47, %v2165_v0  ;;  %7102 = vmatprep.mubr.msk.f32.mxu1 %vm7637_vm1, %v7636_v1  ;;  %7236 = vmatprep.mubr.msk.f32.mxu0 %vm7637_vm1, %v7636_v1  ;;  %v5679_v14 = vld [vmem:[%s7695_s21 + $0xe0] sm:$0xff] }
 0x227   : > { %v6818_v63 = vpop.f32.mrf.mxu1  ;;  %v6952_v56 = vpop.f32.mrf.mxu0 }
 0x228   : > { %v5589_v56 = vld [vmem:[%s7695_s21 + $0xde] sm:$0xff] }
 0x229   : > { %v2019_v20 = vpop.f32.mrf.mxu1  ;;  %v2536_v53 = vpop.f32.mrf.mxu0  ;;  %7103 = vmatmul.mubr.msk.f32.gmra.mxu1 %vm291_vm2, %v5586_v32  ;;  %7237 = vmatmul.mubr.msk.f32.gmra.mxu0 %vm291_vm2, %v5677_v2 }
 0x22a   : > { %v2167_v19 = vadd.f32 %v2019_v20, %v8599_v29  ;;  %v9092_v25 = vadd.f32 %v2536_v53, %v2166_v11  ;;  %7105 = vmatprep.mubr.msk.f32.mxu1 %vm7637_vm1, %v7636_v1  ;;  %7239 = vmatprep.mubr.msk.f32.mxu0 %vm7637_vm1, %v7636_v1  ;;  %v5680_v20 = vld [vmem:[%s7695_s21 + $0xe8] sm:$0xff] }
 0x22b   : > { %v6821_v41 = vpop.f32.mrf.mxu1  ;;  %v6955_v0 = vpop.f32.mrf.mxu0 }
 0x22c   : > { %v5590_v0 = vld [vmem:[%s7695_s21 + $0xe6] sm:$0xff] }
 0x22d   : > { %v2024_v26 = vpop.f32.mrf.mxu1  ;;  %v2541_v59 = vpop.f32.mrf.mxu0  ;;  %7106 = vmatmul.mubr.msk.f32.gmra.mxu1 %vm291_vm2, %v5587_v38  ;;  %7240 = vmatmul.mubr.msk.f32.gmra.mxu0 %vm291_vm2, %v5678_v8 }
 0x22e   : > { %v2168_v29 = vadd.f32 %v2024_v26, %v8610_v37  ;;  %v9103_v43 = vadd.f32 %v2541_v59, %v2167_v19  ;;  %7108 = vmatprep.mubr.msk.f32.mxu1 %vm7637_vm1, %v7636_v1  ;;  %7242 = vmatprep.mubr.msk.f32.mxu0 %vm7637_vm1, %v7636_v1  ;;  %v5681_v26 = vld [vmem:[%s7695_s21 + $0xf0] sm:$0xff] }
 0x22f   : > { %v6824_v47 = vpop.f32.mrf.mxu1  ;;  %v6958_v11 = vpop.f32.mrf.mxu0 }
 0x230   : > { %v5591_v11 = vld [vmem:[%s7695_s21 + $0xee] sm:$0xff] }
 0x231   : > { %v2029_v32 = vpop.f32.mrf.mxu1  ;;  %v2546_v2 = vpop.f32.mrf.mxu0  ;;  %7109 = vmatmul.mubr.msk.f32.gmra.mxu1 %vm291_vm2, %v5588_v46  ;;  %7243 = vmatmul.mubr.msk.f32.gmra.mxu0 %vm291_vm2, %v5679_v14 }
 0x232   : > { %v2169_v37 = vadd.f32 %v2029_v32, %v8621_v51  ;;  %v9114_v63 = vadd.f32 %v2546_v2, %v2168_v29  ;;  %7111 = vmatprep.mubr.msk.f32.mxu1 %vm7637_vm1, %v7636_v1  ;;  %7245 = vmatprep.mubr.msk.f32.mxu0 %vm7637_vm1, %v7636_v1  ;;  %v5682_v32 = vld [vmem:[%s7695_s21 + $0xf8] sm:$0xff] }
 0x233   : > { %v6827_v53 = vpop.f32.mrf.mxu1  ;;  %v6961_v19 = vpop.f32.mrf.mxu0 }
 0x234   : > { %v5592_v19 = vld [vmem:[%s7695_s21 + $0xf6] sm:$0xff] }
 0x235   : > { %v2034_v38 = vpop.f32.mrf.mxu1  ;;  %v2551_v8 = vpop.f32.mrf.mxu0  ;;  %7112 = vmatmul.mubr.msk.f32.gmra.mxu1 %vm291_vm2, %v5589_v56  ;;  %7246 = vmatmul.mubr.msk.f32.gmra.mxu0 %vm291_vm2, %v5680_v20 }
 0x236   : > { %v2170_v51 = vadd.f32 %v2034_v38, %v8632_v5  ;;  %v9125_v41 = vadd.f32 %v2551_v8, %v2169_v37  ;;  %7114 = vmatprep.mubr.msk.f32.mxu1 %vm7637_vm1, %v7636_v1  ;;  %7248 = vmatprep.mubr.msk.f32.mxu0 %vm7637_vm1, %v7636_v1  ;;  %v5683_v38 = vld [vmem:[%s7695_s21 + $0x100] sm:$0xff] }
 0x237   : > { %v6830_v59 = vpop.f32.mrf.mxu1  ;;  %v6964_v29 = vpop.f32.mrf.mxu0 }
 0x238   : > { %v5593_v29 = vld [vmem:[%s7695_s21 + $0xfe] sm:$0xff] }
 0x239   : > { %v2039_v46 = vpop.f32.mrf.mxu1  ;;  %v2556_v14 = vpop.f32.mrf.mxu0  ;;  %7115 = vmatmul.mubr.msk.f32.gmra.mxu1 %vm291_vm2, %v5590_v0  ;;  %7249 = vmatmul.mubr.msk.f32.gmra.mxu0 %vm291_vm2, %v5681_v26 }
 0x23a   : > { %v2171_v5 = vadd.f32 %v2039_v46, %v8643_v18  ;;  %v9136_v47 = vadd.f32 %v2556_v14, %v2170_v51  ;;  %7117 = vmatprep.mubr.msk.f32.mxu1 %vm7637_vm1, %v7636_v1  ;;  %7251 = vmatprep.mubr.msk.f32.mxu0 %vm7637_vm1, %v7636_v1  ;;  %v5684_v46 = vld [vmem:[%s7695_s21 + $0x108] sm:$0xff] }
 0x23b   : > { %v6833_v2 = vpop.f32.mrf.mxu1  ;;  %v6967_v37 = vpop.f32.mrf.mxu0 }
 0x23c   : > { %v5594_v37 = vld [vmem:[%s7695_s21 + $0x106] sm:$0xff] }
 0x23d   : > { %v2044_v56 = vpop.f32.mrf.mxu1  ;;  %v2561_v20 = vpop.f32.mrf.mxu0  ;;  %7118 = vmatmul.mubr.msk.f32.gmra.mxu1 %vm291_vm2, %v5591_v11  ;;  %7252 = vmatmul.mubr.msk.f32.gmra.mxu0 %vm291_vm2, %v5682_v32 }
 0x23e   : > { %v2172_v18 = vadd.f32 %v2044_v56, %v8654_v34  ;;  %v9147_v53 = vadd.f32 %v2561_v20, %v2171_v5  ;;  %7120 = vmatprep.mubr.msk.f32.mxu1 %vm7637_vm1, %v7636_v1  ;;  %7254 = vmatprep.mubr.msk.f32.mxu0 %vm7637_vm1, %v7636_v1  ;;  %v5685_v56 = vld [vmem:[%s7695_s21 + $0x110] sm:$0xff] }
 0x23f   : > { %v6836_v8 = vpop.f32.mrf.mxu1  ;;  %v6970_v51 = vpop.f32.mrf.mxu0 }
 0x240   : > { %v5595_v51 = vld [vmem:[%s7695_s21 + $0x10e] sm:$0xff] }
 0x241   : > { %v2049_v0 = vpop.f32.mrf.mxu1  ;;  %v2566_v26 = vpop.f32.mrf.mxu0  ;;  %7121 = vmatmul.mubr.msk.f32.gmra.mxu1 %vm291_vm2, %v5592_v19  ;;  %7255 = vmatmul.mubr.msk.f32.gmra.mxu0 %vm291_vm2, %v5683_v38 }
 0x242   : > { %v2173_v34 = vadd.f32 %v2049_v0, %v8665_v50  ;;  %v9158_v59 = vadd.f32 %v2566_v26, %v2172_v18  ;;  %7123 = vmatprep.mubr.msk.f32.mxu1 %vm7637_vm1, %v7636_v1  ;;  %7257 = vmatprep.mubr.msk.f32.mxu0 %vm7637_vm1, %v7636_v1  ;;  %v5686_v0 = vld [vmem:[%s7695_s21 + $0x118] sm:$0xff] }
 0x243   : > { %v6839_v14 = vpop.f32.mrf.mxu1  ;;  %v6973_v5 = vpop.f32.mrf.mxu0 }
 0x244   : > { %v5596_v5 = vld [vmem:[%s7695_s21 + $0x116] sm:$0xff] }
 0x245   : > { %v2054_v11 = vpop.f32.mrf.mxu1  ;;  %v2571_v32 = vpop.f32.mrf.mxu0  ;;  %7124 = vmatmul.mubr.msk.f32.gmra.mxu1 %vm291_vm2, %v5593_v29  ;;  %7258 = vmatmul.mubr.msk.f32.gmra.mxu0 %vm291_vm2, %v5684_v46 }
 0x246   : > { %v2174_v50 = vadd.f32 %v2054_v11, %v8676_v42  ;;  %v9169_v2 = vadd.f32 %v2571_v32, %v2173_v34  ;;  %7126 = vmatprep.mubr.msk.f32.mxu1 %vm7637_vm1, %v7636_v1  ;;  %7260 = vmatprep.mubr.msk.f32.mxu0 %vm7637_vm1, %v7636_v1  ;;  %v5687_v11 = vld [vmem:[%s7695_s21 + $0x120] sm:$0xff] }
 0x247   : > { %v6842_v20 = vpop.f32.mrf.mxu1  ;;  %v6976_v18 = vpop.f32.mrf.mxu0 }
 0x248   : > { %v5597_v18 = vld [vmem:[%s7695_s21 + $0x11e] sm:$0xff] }
 0x249   : > { %v2059_v19 = vpop.f32.mrf.mxu1  ;;  %v2576_v38 = vpop.f32.mrf.mxu0  ;;  %7127 = vmatmul.mubr.msk.f32.gmra.mxu1 %vm291_vm2, %v5594_v37  ;;  %7261 = vmatmul.mubr.msk.f32.gmra.mxu0 %vm291_vm2, %v5685_v56 }
 0x24a   : > { %v2175_v42 = vadd.f32 %v2059_v19, %v8687_v48  ;;  %v9180_v8 = vadd.f32 %v2576_v38, %v2174_v50  ;;  %7129 = vmatprep.mubr.msk.f32.mxu1 %vm7637_vm1, %v7636_v1  ;;  %7263 = vmatprep.mubr.msk.f32.mxu0 %vm7637_vm1, %v7636_v1  ;;  %v5688_v19 = vld [vmem:[%s7695_s21 + $0x128] sm:$0xff] }
 0x24b   : > { %v6845_v26 = vpop.f32.mrf.mxu1  ;;  %v6979_v34 = vpop.f32.mrf.mxu0 }
 0x24c   : > { %v5598_v34 = vld [vmem:[%s7695_s21 + $0x126] sm:$0xff] }
 0x24d   : > { %v2064_v29 = vpop.f32.mrf.mxu1  ;;  %v2581_v46 = vpop.f32.mrf.mxu0  ;;  %7130 = vmatmul.mubr.msk.f32.gmra.mxu1 %vm291_vm2, %v5595_v51  ;;  %7264 = vmatmul.mubr.msk.f32.gmra.mxu0 %vm291_vm2, %v5686_v0 }
 0x24e   : > { %v2176_v48 = vadd.f32 %v2064_v29, %v8698_v54  ;;  %v9191_v14 = vadd.f32 %v2581_v46, %v2175_v42  ;;  %7132 = vmatprep.mubr.msk.f32.mxu1 %vm7637_vm1, %v7636_v1  ;;  %7266 = vmatprep.mubr.msk.f32.mxu0 %vm7637_vm1, %v7636_v1  ;;  %v5689_v29 = vld [vmem:[%s7695_s21 + $0x130] sm:$0xff] }
 0x24f   : > { %v6848_v32 = vpop.f32.mrf.mxu1  ;;  %v6982_v50 = vpop.f32.mrf.mxu0 }
 0x250   : > { %v5599_v50 = vld [vmem:[%s7695_s21 + $0x12e] sm:$0xff] }
 0x251   : > { %v2069_v37 = vpop.f32.mrf.mxu1  ;;  %v2586_v56 = vpop.f32.mrf.mxu0  ;;  %7133 = vmatmul.mubr.msk.f32.gmra.mxu1 %vm291_vm2, %v5596_v5  ;;  %7267 = vmatmul.mubr.msk.f32.gmra.mxu0 %vm291_vm2, %v5687_v11 }
 0x252   : > { %v2177_v54 = vadd.f32 %v2069_v37, %v8709_v60  ;;  %v9202_v20 = vadd.f32 %v2586_v56, %v2176_v48  ;;  %7135 = vmatprep.mubr.msk.f32.mxu1 %vm7637_vm1, %v7636_v1  ;;  %7269 = vmatprep.mubr.msk.f32.mxu0 %vm7637_vm1, %v7636_v1  ;;  %v5690_v37 = vld [vmem:[%s7695_s21 + $0x138] sm:$0xff] }
 0x253   : > { %v6851_v38 = vpop.f32.mrf.mxu1  ;;  %v6985_v42 = vpop.f32.mrf.mxu0 }
 0x254   : > { %v5600_v42 = vld [vmem:[%s7695_s21 + $0x136] sm:$0xff] }
 0x255   : > { %v2074_v51 = vpop.f32.mrf.mxu1  ;;  %v2591_v0 = vpop.f32.mrf.mxu0  ;;  %7136 = vmatmul.mubr.msk.f32.gmra.mxu1 %vm291_vm2, %v5597_v18  ;;  %7270 = vmatmul.mubr.msk.f32.gmra.mxu0 %vm291_vm2, %v5688_v19 }
 0x256   : > { %v2178_v60 = vadd.f32 %v2074_v51, %v8720_v3  ;;  %v9213_v26 = vadd.f32 %v2591_v0, %v2177_v54  ;;  %7138 = vmatprep.mubr.msk.f32.mxu1 %vm7637_vm1, %v7636_v1  ;;  %7272 = vmatprep.mubr.msk.f32.mxu0 %vm7637_vm1, %v7636_v1  ;;  %v5691_v51 = vld [vmem:[%s7695_s21 + $0x140] sm:$0xff] }
 0x257   : > { %v6854_v46 = vpop.f32.mrf.mxu1  ;;  %v6988_v48 = vpop.f32.mrf.mxu0 }
 0x258   : > { %v5601_v48 = vld [vmem:[%s7695_s21 + $0x13e] sm:$0xff] }
 0x259   : > { %v2079_v5 = vpop.f32.mrf.mxu1  ;;  %v2596_v11 = vpop.f32.mrf.mxu0  ;;  %7139 = vmatmul.mubr.msk.f32.gmra.mxu1 %vm291_vm2, %v5598_v34  ;;  %7273 = vmatmul.mubr.msk.f32.gmra.mxu0 %vm291_vm2, %v5689_v29 }
 0x25a   : > { %v2179_v3 = vadd.f32 %v2079_v5, %v8731_v9  ;;  %v9224_v32 = vadd.f32 %v2596_v11, %v2178_v60  ;;  %7141 = vmatprep.mubr.msk.f32.mxu1 %vm7637_vm1, %v7636_v1  ;;  %7275 = vmatprep.mubr.msk.f32.mxu0 %vm7637_vm1, %v7636_v1  ;;  %v5692_v5 = vld [vmem:[%s7695_s21 + $0x148] sm:$0xff] }
 0x25b   : > { %v6857_v56 = vpop.f32.mrf.mxu1  ;;  %v6991_v54 = vpop.f32.mrf.mxu0 }
 0x25c   : > { %v5602_v54 = vld [vmem:[%s7695_s21 + $0x146] sm:$0xff] }
 0x25d   : > { %v2084_v18 = vpop.f32.mrf.mxu1  ;;  %v2601_v19 = vpop.f32.mrf.mxu0  ;;  %7142 = vmatmul.mubr.msk.f32.gmra.mxu1 %vm291_vm2, %v5599_v50  ;;  %7276 = vmatmul.mubr.msk.f32.gmra.mxu0 %vm291_vm2, %v5690_v37 }
 0x25e   : > { %v2180_v9 = vadd.f32 %v2084_v18, %v8742_v15  ;;  %v9235_v38 = vadd.f32 %v2601_v19, %v2179_v3  ;;  %7144 = vmatprep.mubr.msk.f32.mxu1 %vm7637_vm1, %v7636_v1  ;;  %7278 = vmatprep.mubr.msk.f32.mxu0 %vm7637_vm1, %v7636_v1  ;;  %v5693_v18 = vld [vmem:[%s7695_s21 + $0x150] sm:$0xff] }
 0x25f   : > { %v6860_v0 = vpop.f32.mrf.mxu1  ;;  %v6994_v60 = vpop.f32.mrf.mxu0 }
 0x260   : > { %v5603_v60 = vld [vmem:[%s7695_s21 + $0x14e] sm:$0xff] }
 0x261   : > { %v2089_v34 = vpop.f32.mrf.mxu1  ;;  %v2606_v29 = vpop.f32.mrf.mxu0  ;;  %7145 = vmatmul.mubr.msk.f32.gmra.mxu1 %vm291_vm2, %v5600_v42  ;;  %7279 = vmatmul.mubr.msk.f32.gmra.mxu0 %vm291_vm2, %v5691_v51 }
 0x262   : > { %v2181_v15 = vadd.f32 %v2089_v34, %v8753_v21  ;;  %v9246_v46 = vadd.f32 %v2606_v29, %v2180_v9  ;;  %7147 = vmatprep.mubr.msk.f32.mxu1 %vm7637_vm1, %v7636_v1  ;;  %7281 = vmatprep.mubr.msk.f32.mxu0 %vm7637_vm1, %v7636_v1  ;;  %v5694_v34 = vld [vmem:[%s7695_s21 + $0x158] sm:$0xff] }
 0x263   : > { %v6863_v11 = vpop.f32.mrf.mxu1  ;;  %v6997_v3 = vpop.f32.mrf.mxu0 }
 0x264   : > { %v5604_v3 = vld [vmem:[%s7695_s21 + $0x156] sm:$0xff] }
 0x265   : > { %v2094_v50 = vpop.f32.mrf.mxu1  ;;  %v2611_v37 = vpop.f32.mrf.mxu0  ;;  %7148 = vmatmul.mubr.msk.f32.gmra.mxu1 %vm291_vm2, %v5601_v48  ;;  %7282 = vmatmul.mubr.msk.f32.gmra.mxu0 %vm291_vm2, %v5692_v5 }
 0x266   : > { %v2182_v21 = vadd.f32 %v2094_v50, %v8764_v27  ;;  %v9257_v56 = vadd.f32 %v2611_v37, %v2181_v15  ;;  %7150 = vmatprep.mubr.msk.f32.mxu1 %vm7637_vm1, %v7636_v1  ;;  %7284 = vmatprep.mubr.msk.f32.mxu0 %vm7637_vm1, %v7636_v1  ;;  %v5695_v50 = vld [vmem:[%s7695_s21 + $0x160] sm:$0xff] }
 0x267   : > { %v6866_v19 = vpop.f32.mrf.mxu1  ;;  %v7000_v9 = vpop.f32.mrf.mxu0 }
 0x268   : > { %v5605_v9 = vld [vmem:[%s7695_s21 + $0x15e] sm:$0xff] }
 0x269   : > { %v2099_v42 = vpop.f32.mrf.mxu1  ;;  %v2616_v51 = vpop.f32.mrf.mxu0  ;;  %7151 = vmatmul.mubr.msk.f32.gmra.mxu1 %vm291_vm2, %v5602_v54  ;;  %7285 = vmatmul.mubr.msk.f32.gmra.mxu0 %vm291_vm2, %v5693_v18 }
 0x26a   : > { %v2183_v27 = vadd.f32 %v2099_v42, %v8775_v33  ;;  %v9268_v0 = vadd.f32 %v2616_v51, %v2182_v21  ;;  %7153 = vmatprep.mubr.msk.f32.mxu1 %vm7637_vm1, %v7636_v1  ;;  %7287 = vmatprep.mubr.msk.f32.mxu0 %vm7637_vm1, %v7636_v1  ;;  %v5696_v42 = vld [vmem:[%s7695_s21 + $0x168] sm:$0xff] }
 0x26b   : > { %v6869_v29 = vpop.f32.mrf.mxu1  ;;  %v7003_v15 = vpop.f32.mrf.mxu0 }
 0x26c   : > { %v5606_v15 = vld [vmem:[%s7695_s21 + $0x166] sm:$0xff] }
 0x26d   : > { %v2104_v48 = vpop.f32.mrf.mxu1  ;;  %v2621_v5 = vpop.f32.mrf.mxu0  ;;  %7154 = vmatmul.mubr.msk.f32.gmra.mxu1 %vm291_vm2, %v5603_v60  ;;  %7288 = vmatmul.mubr.msk.f32.gmra.mxu0 %vm291_vm2, %v5694_v34 }
 0x26e   : > { %v2184_v33 = vadd.f32 %v2104_v48, %v8786_v39  ;;  %v9279_v11 = vadd.f32 %v2621_v5, %v2183_v27  ;;  %7156 = vmatprep.mubr.msk.f32.mxu1 %vm7637_vm1, %v7636_v1  ;;  %7290 = vmatprep.mubr.msk.f32.mxu0 %vm7637_vm1, %v7636_v1  ;;  %v5697_v48 = vld [vmem:[%s7695_s21 + $0x170] sm:$0xff] }
 0x26f   : > { %v6872_v37 = vpop.f32.mrf.mxu1  ;;  %v7006_v21 = vpop.f32.mrf.mxu0 }
 0x270   : > { %v5607_v21 = vld [vmem:[%s7695_s21 + $0x16e] sm:$0xff] }
 0x271   : > { %v2109_v54 = vpop.f32.mrf.mxu1  ;;  %v2626_v18 = vpop.f32.mrf.mxu0  ;;  %7157 = vmatmul.mubr.msk.f32.gmra.mxu1 %vm291_vm2, %v5604_v3  ;;  %7291 = vmatmul.mubr.msk.f32.gmra.mxu0 %vm291_vm2, %v5695_v50 }
 0x272   : > { %v2185_v39 = vadd.f32 %v2109_v54, %v8797_v49  ;;  %v9290_v19 = vadd.f32 %v2626_v18, %v2184_v33  ;;  %7159 = vmatprep.mubr.msk.f32.mxu1 %vm7637_vm1, %v7636_v1  ;;  %7293 = vmatprep.mubr.msk.f32.mxu0 %vm7637_vm1, %v7636_v1  ;;  %v5698_v54 = vld [vmem:[%s7695_s21 + $0x178] sm:$0xff] }
 0x273   : > { %v6875_v51 = vpop.f32.mrf.mxu1  ;;  %v7009_v27 = vpop.f32.mrf.mxu0 }
 0x274   : > { %v5608_v27 = vld [vmem:[%s7695_s21 + $0x176] sm:$0xff] }
 0x275   : > { %v2114_v60 = vpop.f32.mrf.mxu1  ;;  %v2631_v34 = vpop.f32.mrf.mxu0  ;;  %7160 = vmatmul.mubr.msk.f32.gmra.mxu1 %vm291_vm2, %v5605_v9  ;;  %7294 = vmatmul.mubr.msk.f32.gmra.mxu0 %vm291_vm2, %v5696_v42 }
 0x276   : > { %v2186_v49 = vadd.f32 %v2114_v60, %v8808_v57  ;;  %v9301_v29 = vadd.f32 %v2631_v34, %v2185_v39  ;;  %7162 = vmatprep.mubr.msk.f32.mxu1 %vm7637_vm1, %v7636_v1  ;;  %7296 = vmatprep.mubr.msk.f32.mxu0 %vm7637_vm1, %v7636_v1  ;;  %v5699_v60 = vld [vmem:[%s7695_s21 + $0x180] sm:$0xff] }
 0x277   : > { %v6878_v5 = vpop.f32.mrf.mxu1  ;;  %v7012_v33 = vpop.f32.mrf.mxu0 }
 0x278   : > { %v5700_v33 = vld [vmem:[%s7695_s21 + $0x188] sm:$0xff] }
 0x279   : > { %v2119_v3 = vpop.f32.mrf.mxu1  ;;  %v2636_v50 = vpop.f32.mrf.mxu0  ;;  %7163 = vmatmul.mubr.msk.f32.gmra.mxu1 %vm291_vm2, %v5606_v15  ;;  %7297 = vmatmul.mubr.msk.f32.gmra.mxu0 %vm291_vm2, %v5697_v48 }
 0x27a   : > { %v2187_v57 = vadd.f32 %v2119_v3, %v8819_v4  ;;  %v9312_v37 = vadd.f32 %v2636_v50, %v2186_v49  ;;  %7165 = vmatprep.mubr.msk.f32.mxu1 %vm7637_vm1, %v7636_v1  ;;  %7299 = vmatprep.mubr.msk.f32.mxu0 %vm7637_vm1, %v7636_v1  ;;  %v5748_v3 = vld [vmem:[%s7695_s21 + $0x29] sm:$0xff] }
 0x27b   : > { %v6881_v18 = vpop.f32.mrf.mxu1  ;;  %v7015_v39 = vpop.f32.mrf.mxu0 }
 0x27c   : > { %v5749_v39 = vld [vmem:[%s7695_s21 + $0x31] sm:$0xff] }
 0x27d   : > { %v2124_v9 = vpop.f32.mrf.mxu1  ;;  %v2641_v42 = vpop.f32.mrf.mxu0  ;;  %7166 = vmatmul.mubr.msk.f32.gmra.mxu1 %vm291_vm2, %v5607_v21  ;;  %7300 = vmatmul.mubr.msk.f32.gmra.mxu0 %vm291_vm2, %v5698_v54 }
 0x27e   : > { %v2188_v4 = vadd.f32 %v2124_v9, %v8830_v12  ;;  %v9323_v51 = vadd.f32 %v2641_v42, %v2187_v57  ;;  %7168 = vmatprep.mubr.msk.f32.mxu1 %vm7637_vm1, %v7636_v1  ;;  %7302 = vmatprep.mubr.msk.f32.mxu0 %vm7637_vm1, %v7636_v1  ;;  %v5840_v9 = vld [vmem:[%s7695_s21 + $0x2a] sm:$0xff] }
 0x27f   : > { %v6884_v34 = vpop.f32.mrf.mxu1  ;;  %v7018_v49 = vpop.f32.mrf.mxu0 }
 0x280   : > { %v5750_v49 = vld [vmem:[%s7695_s21 + $0x39] sm:$0xff] }
 0x281   : > { %v2129_v15 = vpop.f32.mrf.mxu1  ;;  %v2646_v48 = vpop.f32.mrf.mxu0  ;;  %7169 = vmatmul.mubr.msk.f32.gmra.mxu1 %vm291_vm2, %v5608_v27  ;;  %7303 = vmatmul.mubr.msk.f32.gmra.mxu0 %vm291_vm2, %v5699_v60 }
 0x282   : > { %v2189_v12 = vadd.f32 %v2129_v15, %v8844_v44  ;;  %v9334_v5 = vadd.f32 %v2646_v48, %v2188_v4  ;;  %7305 = vmatprep.mubr.msk.f32.mxu0 %vm7637_vm1, %v7636_v1  ;;  %7310 = vmatprep.mubr.msk.f32.mxu1 %vm7637_vm1, %v7636_v1  ;;  %v5841_v15 = vld [vmem:[%s7695_s21 + $0x32] sm:$0xff] }
 0x283   : > { %v6887_v50 = vpop.f32.mrf.mxu1  ;;  %v7021_v57 = vpop.f32.mrf.mxu0 }
 0x284   : > { %v5751_v57 = vld [vmem:[%s7695_s21 + $0x41] sm:$0xff] }
 0x285   : > { %v2134_v21 = vpop.f32.mrf.mxu1  ;;  %v2651_v54 = vpop.f32.mrf.mxu0  ;;  %7306 = vmatmul.mubr.msk.f32.gmra.mxu0 %vm291_vm2, %v5700_v33  ;;  %7311 = vmatmul.mubr.msk.f32.vlgmr.msra.gmra.mxu1 %vm291_vm2, %v5748_v3 }
 0x286   : > { %v2190_v44 = vadd.f32 %v2134_v21, %v8859_v10  ;;  %v9345_v18 = vadd.f32 %v2651_v54, %v2189_v12  ;;  %7313 = vmatprep.mubr.msk.f32.mxu1 %vm7637_vm1, %v7636_v1  ;;  %7447 = vmatprep.mubr.msk.f32.mxu0 %vm7637_vm1, %v7636_v1  ;;  %v5842_v21 = vld [vmem:[%s7695_s21 + $0x3a] sm:$0xff] }
 0x287   : > { %v6890_v42 = vpop.f32.mrf.mxu1  ;;  %v7024_v4 = vpop.f32.mrf.mxu0 }
 0x288   : > { %v5752_v4 = vld [vmem:[%s7695_s21 + $0x49] sm:$0xff] }
 0x289   : > { %v2139_v27 = vpop.f32.mrf.mxu1  ;;  %v2656_v60 = vpop.f32.mrf.mxu0  ;;  %7314 = vmatmul.mubr.msk.f32.gmra.mxu1 %vm291_vm2, %v5749_v39  ;;  %7448 = vmatmul.mubr.msk.f32.vlgmr.msra.gmra.mxu0 %vm291_vm2, %v5840_v9 }
 0x28a   : > { %v2191_v10 = vadd.f32 %v2139_v27, %v8871_v31  ;;  %v9356_v34 = vadd.f32 %v2656_v60, %v2190_v44  ;;  %7316 = vmatprep.mubr.msk.f32.mxu1 %vm7637_vm1, %v7636_v1  ;;  %7450 = vmatprep.mubr.msk.f32.mxu0 %vm7637_vm1, %v7636_v1  ;;  %v5843_v27 = vld [vmem:[%s7695_s21 + $0x42] sm:$0xff] }
 0x28b   : > { %v6893_v48 = vpop.f32.mrf.mxu1  ;;  %v7027_v12 = vpop.f32.mrf.mxu0 }
 0x28c   : > { %v5753_v12 = vld [vmem:[%s7695_s21 + $0x51] sm:$0xff] }
 0x28d   : > { %v2144_v33 = vpop.f32.mrf.mxu1  ;;  %v2661_v3 = vpop.f32.mrf.mxu0  ;;  %7317 = vmatmul.mubr.msk.f32.gmra.mxu1 %vm291_vm2, %v5750_v49  ;;  %7451 = vmatmul.mubr.msk.f32.gmra.mxu0 %vm291_vm2, %v5841_v15 }
 0x28e   : > { %v2192_v31 = vadd.f32 %v2144_v33, %v8882_v52  ;;  %v9367_v50 = vadd.f32 %v2661_v3, %v2191_v10  ;;  %7319 = vmatprep.mubr.msk.f32.mxu1 %vm7637_vm1, %v7636_v1  ;;  %7453 = vmatprep.mubr.msk.f32.mxu0 %vm7637_vm1, %v7636_v1  ;;  %v5844_v33 = vld [vmem:[%s7695_s21 + $0x4a] sm:$0xff] }
 0x28f   : > { %v6896_v54 = vpop.f32.mrf.mxu1  ;;  %v7030_v44 = vpop.f32.mrf.mxu0 }
 0x290   : > { %v5754_v44 = vld [vmem:[%s7695_s21 + $0x59] sm:$0xff] }
 0x291   : > { %v2666_v39 = vpop.f32.mrf.mxu0  ;;  %v2968_v9 = vpop.f32.mrf.mxu1  ;;  %7320 = vmatmul.mubr.msk.f32.gmra.mxu1 %vm291_vm2, %v5751_v57  ;;  %7454 = vmatmul.mubr.msk.f32.gmra.mxu0 %vm291_vm2, %v5842_v21 }
 0x292   : > { %v9377_v52 = vadd.f32 %v2666_v39, %v2192_v31  ;;  %v3192_v42 = vadd.f32 %v2968_v9, %v8894_v16  ;;  %7322 = vmatprep.mubr.msk.f32.mxu1 %vm7637_vm1, %v7636_v1  ;;  %7456 = vmatprep.mubr.msk.f32.mxu0 %vm7637_vm1, %v7636_v1  ;;  %v5845_v39 = vld [vmem:[%s7695_s21 + $0x52] sm:$0xff] }
 0x293   : > { %v7033_v60 = vpop.f32.mrf.mxu0  ;;  %v7038_v10 = vpop.f32.mrf.mxu1 }
 0x294   : > { %v5755_v10 = vld [vmem:[%s7695_s21 + $0x61] sm:$0xff] }
 0x295   : > { %v2973_v49 = vpop.f32.mrf.mxu1  ;;  %v3490_v15 = vpop.f32.mrf.mxu0  ;;  %7323 = vmatmul.mubr.msk.f32.gmra.mxu1 %vm291_vm2, %v5752_v4  ;;  %7457 = vmatmul.mubr.msk.f32.gmra.mxu0 %vm291_vm2, %v5843_v27 }
 0x296   : > { %v3193_v48 = vadd.f32 %v2973_v49, %v8905_v23  ;;  %v9389_v16 = vadd.f32 %v3490_v15, %v3192_v42  ;;  %7325 = vmatprep.mubr.msk.f32.mxu1 %vm7637_vm1, %v7636_v1  ;;  %7459 = vmatprep.mubr.msk.f32.mxu0 %vm7637_vm1, %v7636_v1  ;;  %v5846_v49 = vld [vmem:[%s7695_s21 + $0x5a] sm:$0xff] }
 0x297   : > { %v7041_v3 = vpop.f32.mrf.mxu1  ;;  %v7175_v31 = vpop.f32.mrf.mxu0 }
 0x298   : > { %v5756_v31 = vld [vmem:[%s7695_s21 + $0x69] sm:$0xff] }
 0x299   : > { %v2978_v57 = vpop.f32.mrf.mxu1  ;;  %v3495_v21 = vpop.f32.mrf.mxu0  ;;  %7326 = vmatmul.mubr.msk.f32.gmra.mxu1 %vm291_vm2, %v5753_v12  ;;  %7460 = vmatmul.mubr.msk.f32.gmra.mxu0 %vm291_vm2, %v5844_v33 }
 0x29a   : > { %v3194_v23 = vadd.f32 %v2978_v57, %v8916_v7  ;;  %v9400_v54 = vadd.f32 %v3495_v21, %v3193_v48  ;;  %7328 = vmatprep.mubr.msk.f32.mxu1 %vm7637_vm1, %v7636_v1  ;;  %7462 = vmatprep.mubr.msk.f32.mxu0 %vm7637_vm1, %v7636_v1  ;;  %v5847_v57 = vld [vmem:[%s7695_s21 + $0x62] sm:$0xff] }
 0x29b   : > { %v7044_v9 = vpop.f32.mrf.mxu1  ;;  %v7178_v42 = vpop.f32.mrf.mxu0 }
 0x29c   : > { %v5757_v42 = vld [vmem:[%s7695_s21 + $0x71] sm:$0xff] }
 0x29d   : > { %v2983_v4 = vpop.f32.mrf.mxu1  ;;  %v3500_v27 = vpop.f32.mrf.mxu0  ;;  %7329 = vmatmul.mubr.msk.f32.gmra.mxu1 %vm291_vm2, %v5754_v44  ;;  %7463 = vmatmul.mubr.msk.f32.gmra.mxu0 %vm291_vm2, %v5845_v39 }
 0x29e   : > { %v3195_v7 = vadd.f32 %v2983_v4, %v8927_v28  ;;  %v9411_v60 = vadd.f32 %v3500_v27, %v3194_v23  ;;  %7331 = vmatprep.mubr.msk.f32.mxu1 %vm7637_vm1, %v7636_v1  ;;  %7465 = vmatprep.mubr.msk.f32.mxu0 %vm7637_vm1, %v7636_v1  ;;  %v5848_v4 = vld [vmem:[%s7695_s21 + $0x6a] sm:$0xff] }
 0x29f   : > { %v7047_v15 = vpop.f32.mrf.mxu1  ;;  %v7181_v48 = vpop.f32.mrf.mxu0 }
 0x2a0   : > { %v5758_v48 = vld [vmem:[%s7695_s21 + $0x79] sm:$0xff] }
 0x2a1   : > { %v2988_v12 = vpop.f32.mrf.mxu1  ;;  %v3505_v33 = vpop.f32.mrf.mxu0  ;;  %7332 = vmatmul.mubr.msk.f32.gmra.mxu1 %vm291_vm2, %v5755_v10  ;;  %7466 = vmatmul.mubr.msk.f32.gmra.mxu0 %vm291_vm2, %v5846_v49 }
 0x2a2   : > { %v3196_v28 = vadd.f32 %v2988_v12, %v8938_v61  ;;  %v9422_v3 = vadd.f32 %v3505_v33, %v3195_v7  ;;  %7334 = vmatprep.mubr.msk.f32.mxu1 %vm7637_vm1, %v7636_v1  ;;  %7468 = vmatprep.mubr.msk.f32.mxu0 %vm7637_vm1, %v7636_v1  ;;  %v5849_v12 = vld [vmem:[%s7695_s21 + $0x72] sm:$0xff] }
 0x2a3   : > { %v7050_v21 = vpop.f32.mrf.mxu1  ;;  %v7184_v23 = vpop.f32.mrf.mxu0 }
 0x2a4   : > { %v5759_v23 = vld [vmem:[%s7695_s21 + $0x81] sm:$0xff] }
 0x2a5   : > { %v2993_v44 = vpop.f32.mrf.mxu1  ;;  %v3510_v39 = vpop.f32.mrf.mxu0  ;;  %7335 = vmatmul.mubr.msk.f32.gmra.mxu1 %vm291_vm2, %v5756_v31  ;;  %7469 = vmatmul.mubr.msk.f32.gmra.mxu0 %vm291_vm2, %v5847_v57 }
 0x2a6   : > { %v3197_v61 = vadd.f32 %v2993_v44, %v8949_v24  ;;  %v9433_v9 = vadd.f32 %v3510_v39, %v3196_v28  ;;  %7337 = vmatprep.mubr.msk.f32.mxu1 %vm7637_vm1, %v7636_v1  ;;  %7471 = vmatprep.mubr.msk.f32.mxu0 %vm7637_vm1, %v7636_v1  ;;  %v5850_v44 = vld [vmem:[%s7695_s21 + $0x7a] sm:$0xff] }
 0x2a7   : > { %v7053_v27 = vpop.f32.mrf.mxu1  ;;  %v7187_v7 = vpop.f32.mrf.mxu0 }
 0x2a8   : > { %v5760_v7 = vld [vmem:[%s7695_s21 + $0x89] sm:$0xff] }
 0x2a9   : > { %v2998_v10 = vpop.f32.mrf.mxu1  ;;  %v3515_v49 = vpop.f32.mrf.mxu0  ;;  %7338 = vmatmul.mubr.msk.f32.gmra.mxu1 %vm291_vm2, %v5757_v42  ;;  %7472 = vmatmul.mubr.msk.f32.gmra.mxu0 %vm291_vm2, %v5848_v4 }
 0x2aa   : > { %v3198_v24 = vadd.f32 %v2998_v10, %v8960_v45  ;;  %v9444_v15 = vadd.f32 %v3515_v49, %v3197_v61  ;;  %7340 = vmatprep.mubr.msk.f32.mxu1 %vm7637_vm1, %v7636_v1  ;;  %7474 = vmatprep.mubr.msk.f32.mxu0 %vm7637_vm1, %v7636_v1  ;;  %v5851_v10 = vld [vmem:[%s7695_s21 + $0x82] sm:$0xff] }
 0x2ab   : > { %v7056_v33 = vpop.f32.mrf.mxu1  ;;  %v7190_v28 = vpop.f32.mrf.mxu0 }
 0x2ac   : > { %v5761_v28 = vld [vmem:[%s7695_s21 + $0x91] sm:$0xff] }
 0x2ad   : > { %v3003_v31 = vpop.f32.mrf.mxu1  ;;  %v3520_v57 = vpop.f32.mrf.mxu0  ;;  %7341 = vmatmul.mubr.msk.f32.gmra.mxu1 %vm291_vm2, %v5758_v48  ;;  %7475 = vmatmul.mubr.msk.f32.gmra.mxu0 %vm291_vm2, %v5849_v12 }
 0x2ae   : > { %v3199_v45 = vadd.f32 %v3003_v31, %v8971_v35  ;;  %v9455_v21 = vadd.f32 %v3520_v57, %v3198_v24  ;;  %7343 = vmatprep.mubr.msk.f32.mxu1 %vm7637_vm1, %v7636_v1  ;;  %7477 = vmatprep.mubr.msk.f32.mxu0 %vm7637_vm1, %v7636_v1  ;;  %v5852_v31 = vld [vmem:[%s7695_s21 + $0x8a] sm:$0xff] }
 0x2af   : > { %v7059_v39 = vpop.f32.mrf.mxu1  ;;  %v7193_v61 = vpop.f32.mrf.mxu0 }
 0x2b0   : > { %v5762_v61 = vld [vmem:[%s7695_s21 + $0x99] sm:$0xff] }
 0x2b1   : > { %v3008_v42 = vpop.f32.mrf.mxu1  ;;  %v3525_v4 = vpop.f32.mrf.mxu0  ;;  %7344 = vmatmul.mubr.msk.f32.gmra.mxu1 %vm291_vm2, %v5759_v23  ;;  %7478 = vmatmul.mubr.msk.f32.gmra.mxu0 %vm291_vm2, %v5850_v44 }
 0x2b2   : > { %v3200_v35 = vadd.f32 %v3008_v42, %v8982_v40  ;;  %v9466_v27 = vadd.f32 %v3525_v4, %v3199_v45  ;;  %7346 = vmatprep.mubr.msk.f32.mxu1 %vm7637_vm1, %v7636_v1  ;;  %7480 = vmatprep.mubr.msk.f32.mxu0 %vm7637_vm1, %v7636_v1  ;;  %v5853_v42 = vld [vmem:[%s7695_s21 + $0x92] sm:$0xff] }
 0x2b3   : > { %v7062_v49 = vpop.f32.mrf.mxu1  ;;  %v7196_v24 = vpop.f32.mrf.mxu0 }
 0x2b4   : > { %v5763_v24 = vld [vmem:[%s7695_s21 + $0xa1] sm:$0xff] }
 0x2b5   : > { %v3013_v48 = vpop.f32.mrf.mxu1  ;;  %v3530_v12 = vpop.f32.mrf.mxu0  ;;  %7347 = vmatmul.mubr.msk.f32.gmra.mxu1 %vm291_vm2, %v5760_v7  ;;  %7481 = vmatmul.mubr.msk.f32.gmra.mxu0 %vm291_vm2, %v5851_v10 }
 0x2b6   : > { %v3201_v40 = vadd.f32 %v3013_v48, %v8993_v58  ;;  %v9477_v33 = vadd.f32 %v3530_v12, %v3200_v35  ;;  %7349 = vmatprep.mubr.msk.f32.mxu1 %vm7637_vm1, %v7636_v1  ;;  %7483 = vmatprep.mubr.msk.f32.mxu0 %vm7637_vm1, %v7636_v1  ;;  %v5854_v48 = vld [vmem:[%s7695_s21 + $0x9a] sm:$0xff] }
 0x2b7   : > { %v7065_v57 = vpop.f32.mrf.mxu1  ;;  %v7199_v45 = vpop.f32.mrf.mxu0 }
 0x2b8   : > { %v5764_v45 = vld [vmem:[%s7695_s21 + $0xa9] sm:$0xff] }
 0x2b9   : > { %v3018_v23 = vpop.f32.mrf.mxu1  ;;  %v3535_v44 = vpop.f32.mrf.mxu0  ;;  %7350 = vmatmul.mubr.msk.f32.gmra.mxu1 %vm291_vm2, %v5761_v28  ;;  %7484 = vmatmul.mubr.msk.f32.gmra.mxu0 %vm291_vm2, %v5852_v31 }
 0x2ba   : > { %v3202_v58 = vadd.f32 %v3018_v23, %v9004_v17  ;;  %v9488_v39 = vadd.f32 %v3535_v44, %v3201_v40  ;;  %7352 = vmatprep.mubr.msk.f32.mxu1 %vm7637_vm1, %v7636_v1  ;;  %7486 = vmatprep.mubr.msk.f32.mxu0 %vm7637_vm1, %v7636_v1  ;;  %v5855_v23 = vld [vmem:[%s7695_s21 + $0xa2] sm:$0xff] }
 0x2bb   : > { %v7068_v4 = vpop.f32.mrf.mxu1  ;;  %v7202_v35 = vpop.f32.mrf.mxu0 }
 0x2bc   : > { %v5765_v35 = vld [vmem:[%s7695_s21 + $0xb1] sm:$0xff] }
 0x2bd   : > { %v3023_v7 = vpop.f32.mrf.mxu1  ;;  %v3540_v10 = vpop.f32.mrf.mxu0  ;;  %7353 = vmatmul.mubr.msk.f32.gmra.mxu1 %vm291_vm2, %v5762_v61  ;;  %7487 = vmatmul.mubr.msk.f32.gmra.mxu0 %vm291_vm2, %v5853_v42 }
 0x2be   : > { %v3203_v17 = vadd.f32 %v3023_v7, %v9015_v22  ;;  %v9499_v49 = vadd.f32 %v3540_v10, %v3202_v58  ;;  %7355 = vmatprep.mubr.msk.f32.mxu1 %vm7637_vm1, %v7636_v1  ;;  %7489 = vmatprep.mubr.msk.f32.mxu0 %vm7637_vm1, %v7636_v1  ;;  %v5856_v7 = vld [vmem:[%s7695_s21 + $0xaa] sm:$0xff] }
 0x2bf   : > { %v7071_v12 = vpop.f32.mrf.mxu1  ;;  %v7205_v40 = vpop.f32.mrf.mxu0 }
 0x2c0   : > { %v5766_v40 = vld [vmem:[%s7695_s21 + $0xb9] sm:$0xff] }
 0x2c1   : > { %v3028_v28 = vpop.f32.mrf.mxu1  ;;  %v3545_v31 = vpop.f32.mrf.mxu0  ;;  %7356 = vmatmul.mubr.msk.f32.gmra.mxu1 %vm291_vm2, %v5763_v24  ;;  %7490 = vmatmul.mubr.msk.f32.gmra.mxu0 %vm291_vm2, %v5854_v48 }
 0x2c2   : > { %v3204_v22 = vadd.f32 %v3028_v28, %v9026_v30  ;;  %v9510_v57 = vadd.f32 %v3545_v31, %v3203_v17  ;;  %7358 = vmatprep.mubr.msk.f32.mxu1 %vm7637_vm1, %v7636_v1  ;;  %7492 = vmatprep.mubr.msk.f32.mxu0 %vm7637_vm1, %v7636_v1  ;;  %v5857_v28 = vld [vmem:[%s7695_s21 + $0xb2] sm:$0xff] }
 0x2c3   : > { %v7074_v44 = vpop.f32.mrf.mxu1  ;;  %v7208_v58 = vpop.f32.mrf.mxu0 }
 0x2c4   : > { %v5767_v58 = vld [vmem:[%s7695_s21 + $0xc1] sm:$0xff] }
 0x2c5   : > { %v3033_v61 = vpop.f32.mrf.mxu1  ;;  %v3550_v42 = vpop.f32.mrf.mxu0  ;;  %7359 = vmatmul.mubr.msk.f32.gmra.mxu1 %vm291_vm2, %v5764_v45  ;;  %7493 = vmatmul.mubr.msk.f32.gmra.mxu0 %vm291_vm2, %v5855_v23 }
 0x2c6   : > { %v3205_v30 = vadd.f32 %v3033_v61, %v9037_v6  ;;  %v9521_v4 = vadd.f32 %v3550_v42, %v3204_v22  ;;  %7361 = vmatprep.mubr.msk.f32.mxu1 %vm7637_vm1, %v7636_v1  ;;  %7495 = vmatprep.mubr.msk.f32.mxu0 %vm7637_vm1, %v7636_v1  ;;  %v5858_v61 = vld [vmem:[%s7695_s21 + $0xba] sm:$0xff] }
 0x2c7   : > { %v7077_v10 = vpop.f32.mrf.mxu1  ;;  %v7211_v17 = vpop.f32.mrf.mxu0 }
 0x2c8   : > { %v5768_v17 = vld [vmem:[%s7695_s21 + $0xc9] sm:$0xff] }
 0x2c9   : > { %v3038_v24 = vpop.f32.mrf.mxu1  ;;  %v3555_v48 = vpop.f32.mrf.mxu0  ;;  %7362 = vmatmul.mubr.msk.f32.gmra.mxu1 %vm291_vm2, %v5765_v35  ;;  %7496 = vmatmul.mubr.msk.f32.gmra.mxu0 %vm291_vm2, %v5856_v7 }
 0x2ca   : > { %v3206_v6 = vadd.f32 %v3038_v24, %v9048_v55  ;;  %v9532_v12 = vadd.f32 %v3555_v48, %v3205_v30  ;;  %7364 = vmatprep.mubr.msk.f32.mxu1 %vm7637_vm1, %v7636_v1  ;;  %7498 = vmatprep.mubr.msk.f32.mxu0 %vm7637_vm1, %v7636_v1  ;;  %v5859_v24 = vld [vmem:[%s7695_s21 + $0xc2] sm:$0xff] }
 0x2cb   : > { %v7080_v31 = vpop.f32.mrf.mxu1  ;;  %v7214_v22 = vpop.f32.mrf.mxu0 }
 0x2cc   : > { %v5769_v22 = vld [vmem:[%s7695_s21 + $0xd1] sm:$0xff] }
 0x2cd   : > { %v3043_v45 = vpop.f32.mrf.mxu1  ;;  %v3560_v23 = vpop.f32.mrf.mxu0  ;;  %7365 = vmatmul.mubr.msk.f32.gmra.mxu1 %vm291_vm2, %v5766_v40  ;;  %7499 = vmatmul.mubr.msk.f32.gmra.mxu0 %vm291_vm2, %v5857_v28 }
 0x2ce   : > { %v3207_v55 = vadd.f32 %v3043_v45, %v9059_v13  ;;  %v9543_v44 = vadd.f32 %v3560_v23, %v3206_v6  ;;  %7367 = vmatprep.mubr.msk.f32.mxu1 %vm7637_vm1, %v7636_v1  ;;  %7501 = vmatprep.mubr.msk.f32.mxu0 %vm7637_vm1, %v7636_v1  ;;  %v5860_v45 = vld [vmem:[%s7695_s21 + $0xca] sm:$0xff] }
 0x2cf   : > { %v7083_v42 = vpop.f32.mrf.mxu1  ;;  %v7217_v30 = vpop.f32.mrf.mxu0 }
 0x2d0   : > { %v5770_v30 = vld [vmem:[%s7695_s21 + $0xd9] sm:$0xff] }
 0x2d1   : > { %v3048_v35 = vpop.f32.mrf.mxu1  ;;  %v3565_v7 = vpop.f32.mrf.mxu0  ;;  %7368 = vmatmul.mubr.msk.f32.gmra.mxu1 %vm291_vm2, %v5767_v58  ;;  %7502 = vmatmul.mubr.msk.f32.gmra.mxu0 %vm291_vm2, %v5858_v61 }
 0x2d2   : > { %v3208_v13 = vadd.f32 %v3048_v35, %v9070_v36  ;;  %v9554_v10 = vadd.f32 %v3565_v7, %v3207_v55  ;;  %7370 = vmatprep.mubr.msk.f32.mxu1 %vm7637_vm1, %v7636_v1  ;;  %7504 = vmatprep.mubr.msk.f32.mxu0 %vm7637_vm1, %v7636_v1  ;;  %v5861_v35 = vld [vmem:[%s7695_s21 + $0xd2] sm:$0xff] }
 0x2d3   : > { %v7086_v48 = vpop.f32.mrf.mxu1  ;;  %v7220_v6 = vpop.f32.mrf.mxu0 }
 0x2d4   : > { %v5771_v6 = vld [vmem:[%s7695_s21 + $0xe1] sm:$0xff] }
 0x2d5   : > { %v3053_v40 = vpop.f32.mrf.mxu1  ;;  %v3570_v28 = vpop.f32.mrf.mxu0  ;;  %7371 = vmatmul.mubr.msk.f32.gmra.mxu1 %vm291_vm2, %v5768_v17  ;;  %7505 = vmatmul.mubr.msk.f32.gmra.mxu0 %vm291_vm2, %v5859_v24 }
 0x2d6   : > { %v3209_v36 = vadd.f32 %v3053_v40, %v9081_v62  ;;  %v9565_v31 = vadd.f32 %v3570_v28, %v3208_v13  ;;  %7373 = vmatprep.mubr.msk.f32.mxu1 %vm7637_vm1, %v7636_v1  ;;  %7507 = vmatprep.mubr.msk.f32.mxu0 %vm7637_vm1, %v7636_v1  ;;  %v5862_v40 = vld [vmem:[%s7695_s21 + $0xda] sm:$0xff] }
 0x2d7   : > { %v7089_v23 = vpop.f32.mrf.mxu1  ;;  %v7223_v55 = vpop.f32.mrf.mxu0 }
 0x2d8   : > { %v5772_v55 = vld [vmem:[%s7695_s21 + $0xe9] sm:$0xff] }
 0x2d9   : > { %v3058_v58 = vpop.f32.mrf.mxu1  ;;  %v3575_v61 = vpop.f32.mrf.mxu0  ;;  %7374 = vmatmul.mubr.msk.f32.gmra.mxu1 %vm291_vm2, %v5769_v22  ;;  %7508 = vmatmul.mubr.msk.f32.gmra.mxu0 %vm291_vm2, %v5860_v45 }
 0x2da   : > { %v3210_v62 = vadd.f32 %v3058_v58, %v9092_v25  ;;  %v9576_v42 = vadd.f32 %v3575_v61, %v3209_v36  ;;  %7376 = vmatprep.mubr.msk.f32.mxu1 %vm7637_vm1, %v7636_v1  ;;  %7510 = vmatprep.mubr.msk.f32.mxu0 %vm7637_vm1, %v7636_v1  ;;  %v5863_v58 = vld [vmem:[%s7695_s21 + $0xe2] sm:$0xff] }
 0x2db   : > { %v7092_v7 = vpop.f32.mrf.mxu1  ;;  %v7226_v13 = vpop.f32.mrf.mxu0 }
 0x2dc   : > { %v5773_v13 = vld [vmem:[%s7695_s21 + $0xf1] sm:$0xff] }
 0x2dd   : > { %v3063_v17 = vpop.f32.mrf.mxu1  ;;  %v3580_v24 = vpop.f32.mrf.mxu0  ;;  %7377 = vmatmul.mubr.msk.f32.gmra.mxu1 %vm291_vm2, %v5770_v30  ;;  %7511 = vmatmul.mubr.msk.f32.gmra.mxu0 %vm291_vm2, %v5861_v35 }
 0x2de   : > { %v3211_v25 = vadd.f32 %v3063_v17, %v9103_v43  ;;  %v9587_v48 = vadd.f32 %v3580_v24, %v3210_v62  ;;  %7379 = vmatprep.mubr.msk.f32.mxu1 %vm7637_vm1, %v7636_v1  ;;  %7513 = vmatprep.mubr.msk.f32.mxu0 %vm7637_vm1, %v7636_v1  ;;  %v5864_v17 = vld [vmem:[%s7695_s21 + $0xea] sm:$0xff] }
 0x2df   : > { %v7095_v28 = vpop.f32.mrf.mxu1  ;;  %v7229_v36 = vpop.f32.mrf.mxu0 }
 0x2e0   : > { %v5774_v36 = vld [vmem:[%s7695_s21 + $0xf9] sm:$0xff] }
 0x2e1   : > { %v3068_v22 = vpop.f32.mrf.mxu1  ;;  %v3585_v45 = vpop.f32.mrf.mxu0  ;;  %7380 = vmatmul.mubr.msk.f32.gmra.mxu1 %vm291_vm2, %v5771_v6  ;;  %7514 = vmatmul.mubr.msk.f32.gmra.mxu0 %vm291_vm2, %v5862_v40 }
 0x2e2   : > { %v3212_v43 = vadd.f32 %v3068_v22, %v9114_v63  ;;  %v9598_v23 = vadd.f32 %v3585_v45, %v3211_v25  ;;  %7382 = vmatprep.mubr.msk.f32.mxu1 %vm7637_vm1, %v7636_v1  ;;  %7516 = vmatprep.mubr.msk.f32.mxu0 %vm7637_vm1, %v7636_v1  ;;  %v5865_v22 = vld [vmem:[%s7695_s21 + $0xf2] sm:$0xff] }
 0x2e3   : > { %v7098_v61 = vpop.f32.mrf.mxu1  ;;  %v7232_v62 = vpop.f32.mrf.mxu0 }
 0x2e4   : > { %v5775_v62 = vld [vmem:[%s7695_s21 + $0x101] sm:$0xff] }
 0x2e5   : > { %v3073_v30 = vpop.f32.mrf.mxu1  ;;  %v3590_v35 = vpop.f32.mrf.mxu0  ;;  %7383 = vmatmul.mubr.msk.f32.gmra.mxu1 %vm291_vm2, %v5772_v55  ;;  %7517 = vmatmul.mubr.msk.f32.gmra.mxu0 %vm291_vm2, %v5863_v58 }
 0x2e6   : > { %v3213_v63 = vadd.f32 %v3073_v30, %v9125_v41  ;;  %v9609_v7 = vadd.f32 %v3590_v35, %v3212_v43  ;;  %7385 = vmatprep.mubr.msk.f32.mxu1 %vm7637_vm1, %v7636_v1  ;;  %7519 = vmatprep.mubr.msk.f32.mxu0 %vm7637_vm1, %v7636_v1  ;;  %v5866_v30 = vld [vmem:[%s7695_s21 + $0xfa] sm:$0xff] }
 0x2e7   : > { %v7101_v24 = vpop.f32.mrf.mxu1  ;;  %v7235_v25 = vpop.f32.mrf.mxu0 }
 0x2e8   : > { %v5776_v25 = vld [vmem:[%s7695_s21 + $0x109] sm:$0xff] }
 0x2e9   : > { %v3078_v6 = vpop.f32.mrf.mxu1  ;;  %v3595_v40 = vpop.f32.mrf.mxu0  ;;  %7386 = vmatmul.mubr.msk.f32.gmra.mxu1 %vm291_vm2, %v5773_v13  ;;  %7520 = vmatmul.mubr.msk.f32.gmra.mxu0 %vm291_vm2, %v5864_v17 }
 0x2ea   : > { %v3214_v41 = vadd.f32 %v3078_v6, %v9136_v47  ;;  %v9620_v28 = vadd.f32 %v3595_v40, %v3213_v63  ;;  %7388 = vmatprep.mubr.msk.f32.mxu1 %vm7637_vm1, %v7636_v1  ;;  %7522 = vmatprep.mubr.msk.f32.mxu0 %vm7637_vm1, %v7636_v1  ;;  %v5867_v6 = vld [vmem:[%s7695_s21 + $0x102] sm:$0xff] }
 0x2eb   : > { %v7104_v45 = vpop.f32.mrf.mxu1  ;;  %v7238_v43 = vpop.f32.mrf.mxu0 }
 0x2ec   : > { %v5777_v43 = vld [vmem:[%s7695_s21 + $0x111] sm:$0xff] }
 0x2ed   : > { %v3083_v55 = vpop.f32.mrf.mxu1  ;;  %v3600_v58 = vpop.f32.mrf.mxu0  ;;  %7389 = vmatmul.mubr.msk.f32.gmra.mxu1 %vm291_vm2, %v5774_v36  ;;  %7523 = vmatmul.mubr.msk.f32.gmra.mxu0 %vm291_vm2, %v5865_v22 }
 0x2ee   : > { %v3215_v47 = vadd.f32 %v3083_v55, %v9147_v53  ;;  %v9631_v61 = vadd.f32 %v3600_v58, %v3214_v41  ;;  %7391 = vmatprep.mubr.msk.f32.mxu1 %vm7637_vm1, %v7636_v1  ;;  %7525 = vmatprep.mubr.msk.f32.mxu0 %vm7637_vm1, %v7636_v1  ;;  %v5868_v55 = vld [vmem:[%s7695_s21 + $0x10a] sm:$0xff] }
 0x2ef   : > { %v7107_v35 = vpop.f32.mrf.mxu1  ;;  %v7241_v63 = vpop.f32.mrf.mxu0 }
 0x2f0   : > { %v5778_v63 = vld [vmem:[%s7695_s21 + $0x119] sm:$0xff] }
 0x2f1   : > { %v3088_v13 = vpop.f32.mrf.mxu1  ;;  %v3605_v17 = vpop.f32.mrf.mxu0  ;;  %7392 = vmatmul.mubr.msk.f32.gmra.mxu1 %vm291_vm2, %v5775_v62  ;;  %7526 = vmatmul.mubr.msk.f32.gmra.mxu0 %vm291_vm2, %v5866_v30 }
 0x2f2   : > { %v3216_v53 = vadd.f32 %v3088_v13, %v9158_v59  ;;  %v9642_v24 = vadd.f32 %v3605_v17, %v3215_v47  ;;  %7394 = vmatprep.mubr.msk.f32.mxu1 %vm7637_vm1, %v7636_v1  ;;  %7528 = vmatprep.mubr.msk.f32.mxu0 %vm7637_vm1, %v7636_v1  ;;  %v5869_v13 = vld [vmem:[%s7695_s21 + $0x112] sm:$0xff] }
 0x2f3   : > { %v7110_v40 = vpop.f32.mrf.mxu1  ;;  %v7244_v41 = vpop.f32.mrf.mxu0 }
 0x2f4   : > { %v5779_v41 = vld [vmem:[%s7695_s21 + $0x121] sm:$0xff] }
 0x2f5   : > { %v3093_v36 = vpop.f32.mrf.mxu1  ;;  %v3610_v22 = vpop.f32.mrf.mxu0  ;;  %7395 = vmatmul.mubr.msk.f32.gmra.mxu1 %vm291_vm2, %v5776_v25  ;;  %7529 = vmatmul.mubr.msk.f32.gmra.mxu0 %vm291_vm2, %v5867_v6 }
 0x2f6   : > { %v3217_v59 = vadd.f32 %v3093_v36, %v9169_v2  ;;  %v9653_v45 = vadd.f32 %v3610_v22, %v3216_v53  ;;  %7397 = vmatprep.mubr.msk.f32.mxu1 %vm7637_vm1, %v7636_v1  ;;  %7531 = vmatprep.mubr.msk.f32.mxu0 %vm7637_vm1, %v7636_v1  ;;  %v5870_v36 = vld [vmem:[%s7695_s21 + $0x11a] sm:$0xff] }
 0x2f7   : > { %v7113_v58 = vpop.f32.mrf.mxu1  ;;  %v7247_v47 = vpop.f32.mrf.mxu0 }
 0x2f8   : > { %v5780_v47 = vld [vmem:[%s7695_s21 + $0x129] sm:$0xff] }
 0x2f9   : > { %v3098_v62 = vpop.f32.mrf.mxu1  ;;  %v3615_v30 = vpop.f32.mrf.mxu0  ;;  %7398 = vmatmul.mubr.msk.f32.gmra.mxu1 %vm291_vm2, %v5777_v43  ;;  %7532 = vmatmul.mubr.msk.f32.gmra.mxu0 %vm291_vm2, %v5868_v55 }
 0x2fa   : > { %v3218_v2 = vadd.f32 %v3098_v62, %v9180_v8  ;;  %v9664_v35 = vadd.f32 %v3615_v30, %v3217_v59  ;;  %7400 = vmatprep.mubr.msk.f32.mxu1 %vm7637_vm1, %v7636_v1  ;;  %7534 = vmatprep.mubr.msk.f32.mxu0 %vm7637_vm1, %v7636_v1  ;;  %v5871_v62 = vld [vmem:[%s7695_s21 + $0x122] sm:$0xff] }
 0x2fb   : > { %v7116_v17 = vpop.f32.mrf.mxu1  ;;  %v7250_v53 = vpop.f32.mrf.mxu0 }
 0x2fc   : > { %v5781_v53 = vld [vmem:[%s7695_s21 + $0x131] sm:$0xff] }
 0x2fd   : > { %v3103_v25 = vpop.f32.mrf.mxu1  ;;  %v3620_v6 = vpop.f32.mrf.mxu0  ;;  %7401 = vmatmul.mubr.msk.f32.gmra.mxu1 %vm291_vm2, %v5778_v63  ;;  %7535 = vmatmul.mubr.msk.f32.gmra.mxu0 %vm291_vm2, %v5869_v13 }
 0x2fe   : > { %v3219_v8 = vadd.f32 %v3103_v25, %v9191_v14  ;;  %v9675_v40 = vadd.f32 %v3620_v6, %v3218_v2  ;;  %7403 = vmatprep.mubr.msk.f32.mxu1 %vm7637_vm1, %v7636_v1  ;;  %7537 = vmatprep.mubr.msk.f32.mxu0 %vm7637_vm1, %v7636_v1  ;;  %v5872_v25 = vld [vmem:[%s7695_s21 + $0x12a] sm:$0xff] }
 0x2ff   : > { %v7119_v22 = vpop.f32.mrf.mxu1  ;;  %v7253_v59 = vpop.f32.mrf.mxu0 }
 0x300   : > { %v5782_v59 = vld [vmem:[%s7695_s21 + $0x139] sm:$0xff] }
 0x301   : > { %v3108_v43 = vpop.f32.mrf.mxu1  ;;  %v3625_v55 = vpop.f32.mrf.mxu0  ;;  %7404 = vmatmul.mubr.msk.f32.gmra.mxu1 %vm291_vm2, %v5779_v41  ;;  %7538 = vmatmul.mubr.msk.f32.gmra.mxu0 %vm291_vm2, %v5870_v36 }
 0x302   : > { %v3220_v14 = vadd.f32 %v3108_v43, %v9202_v20  ;;  %v9686_v58 = vadd.f32 %v3625_v55, %v3219_v8  ;;  %7406 = vmatprep.mubr.msk.f32.mxu1 %vm7637_vm1, %v7636_v1  ;;  %7540 = vmatprep.mubr.msk.f32.mxu0 %vm7637_vm1, %v7636_v1  ;;  %v5873_v43 = vld [vmem:[%s7695_s21 + $0x132] sm:$0xff] }
 0x303   : > { %v7122_v30 = vpop.f32.mrf.mxu1  ;;  %v7256_v2 = vpop.f32.mrf.mxu0 }
 0x304   : > { %v5783_v2 = vld [vmem:[%s7695_s21 + $0x141] sm:$0xff] }
 0x305   : > { %v3113_v63 = vpop.f32.mrf.mxu1  ;;  %v3630_v13 = vpop.f32.mrf.mxu0  ;;  %7407 = vmatmul.mubr.msk.f32.gmra.mxu1 %vm291_vm2, %v5780_v47  ;;  %7541 = vmatmul.mubr.msk.f32.gmra.mxu0 %vm291_vm2, %v5871_v62 }
 0x306   : > { %v3221_v20 = vadd.f32 %v3113_v63, %v9213_v26  ;;  %v9697_v17 = vadd.f32 %v3630_v13, %v3220_v14  ;;  %7409 = vmatprep.mubr.msk.f32.mxu1 %vm7637_vm1, %v7636_v1  ;;  %7543 = vmatprep.mubr.msk.f32.mxu0 %vm7637_vm1, %v7636_v1  ;;  %v5874_v63 = vld [vmem:[%s7695_s21 + $0x13a] sm:$0xff] }
 0x307   : > { %v7125_v6 = vpop.f32.mrf.mxu1  ;;  %v7259_v8 = vpop.f32.mrf.mxu0 }
 0x308   : > { %v5784_v8 = vld [vmem:[%s7695_s21 + $0x149] sm:$0xff] }
 0x309   : > { %v3118_v41 = vpop.f32.mrf.mxu1  ;;  %v3635_v36 = vpop.f32.mrf.mxu0  ;;  %7410 = vmatmul.mubr.msk.f32.gmra.mxu1 %vm291_vm2, %v5781_v53  ;;  %7544 = vmatmul.mubr.msk.f32.gmra.mxu0 %vm291_vm2, %v5872_v25 }
 0x30a   : > { %v3222_v26 = vadd.f32 %v3118_v41, %v9224_v32  ;;  %v9708_v22 = vadd.f32 %v3635_v36, %v3221_v20  ;;  %7412 = vmatprep.mubr.msk.f32.mxu1 %vm7637_vm1, %v7636_v1  ;;  %7546 = vmatprep.mubr.msk.f32.mxu0 %vm7637_vm1, %v7636_v1  ;;  %v5875_v41 = vld [vmem:[%s7695_s21 + $0x142] sm:$0xff] }
 0x30b   : > { %v7128_v55 = vpop.f32.mrf.mxu1  ;;  %v7262_v14 = vpop.f32.mrf.mxu0 }
 0x30c   : > { %v5785_v14 = vld [vmem:[%s7695_s21 + $0x151] sm:$0xff] }
 0x30d   : > { %v3123_v47 = vpop.f32.mrf.mxu1  ;;  %v3640_v62 = vpop.f32.mrf.mxu0  ;;  %7413 = vmatmul.mubr.msk.f32.gmra.mxu1 %vm291_vm2, %v5782_v59  ;;  %7547 = vmatmul.mubr.msk.f32.gmra.mxu0 %vm291_vm2, %v5873_v43 }
 0x30e   : > { %v3223_v32 = vadd.f32 %v3123_v47, %v9235_v38  ;;  %v9719_v30 = vadd.f32 %v3640_v62, %v3222_v26  ;;  %7415 = vmatprep.mubr.msk.f32.mxu1 %vm7637_vm1, %v7636_v1  ;;  %7549 = vmatprep.mubr.msk.f32.mxu0 %vm7637_vm1, %v7636_v1  ;;  %v5876_v47 = vld [vmem:[%s7695_s21 + $0x14a] sm:$0xff] }
 0x30f   : > { %v7131_v13 = vpop.f32.mrf.mxu1  ;;  %v7265_v20 = vpop.f32.mrf.mxu0 }
 0x310   : > { %v5786_v20 = vld [vmem:[%s7695_s21 + $0x159] sm:$0xff] }
 0x311   : > { %v3128_v53 = vpop.f32.mrf.mxu1  ;;  %v3645_v25 = vpop.f32.mrf.mxu0  ;;  %7416 = vmatmul.mubr.msk.f32.gmra.mxu1 %vm291_vm2, %v5783_v2  ;;  %7550 = vmatmul.mubr.msk.f32.gmra.mxu0 %vm291_vm2, %v5874_v63 }
 0x312   : > { %v3224_v38 = vadd.f32 %v3128_v53, %v9246_v46  ;;  %v9730_v6 = vadd.f32 %v3645_v25, %v3223_v32  ;;  %7418 = vmatprep.mubr.msk.f32.mxu1 %vm7637_vm1, %v7636_v1  ;;  %7552 = vmatprep.mubr.msk.f32.mxu0 %vm7637_vm1, %v7636_v1  ;;  %v5877_v53 = vld [vmem:[%s7695_s21 + $0x152] sm:$0xff] }
 0x313   : > { %v7134_v36 = vpop.f32.mrf.mxu1  ;;  %v7268_v26 = vpop.f32.mrf.mxu0 }
 0x314   : > { %v5787_v26 = vld [vmem:[%s7695_s21 + $0x161] sm:$0xff] }
 0x315   : > { %v3133_v59 = vpop.f32.mrf.mxu1  ;;  %v3650_v43 = vpop.f32.mrf.mxu0  ;;  %7419 = vmatmul.mubr.msk.f32.gmra.mxu1 %vm291_vm2, %v5784_v8  ;;  %7553 = vmatmul.mubr.msk.f32.gmra.mxu0 %vm291_vm2, %v5875_v41 }
 0x316   : > { %v3225_v46 = vadd.f32 %v3133_v59, %v9257_v56  ;;  %v9741_v55 = vadd.f32 %v3650_v43, %v3224_v38  ;;  %7421 = vmatprep.mubr.msk.f32.mxu1 %vm7637_vm1, %v7636_v1  ;;  %7555 = vmatprep.mubr.msk.f32.mxu0 %vm7637_vm1, %v7636_v1  ;;  %v5878_v59 = vld [vmem:[%s7695_s21 + $0x15a] sm:$0xff] }
 0x317   : > { %v7137_v62 = vpop.f32.mrf.mxu1  ;;  %v7271_v32 = vpop.f32.mrf.mxu0 }
 0x318   : > { %v5788_v32 = vld [vmem:[%s7695_s21 + $0x169] sm:$0xff] }
 0x319   : > { %v3138_v2 = vpop.f32.mrf.mxu1  ;;  %v3655_v63 = vpop.f32.mrf.mxu0  ;;  %7422 = vmatmul.mubr.msk.f32.gmra.mxu1 %vm291_vm2, %v5785_v14  ;;  %7556 = vmatmul.mubr.msk.f32.gmra.mxu0 %vm291_vm2, %v5876_v47 }
 0x31a   : > { %v3226_v56 = vadd.f32 %v3138_v2, %v9268_v0  ;;  %v9752_v13 = vadd.f32 %v3655_v63, %v3225_v46  ;;  %7424 = vmatprep.mubr.msk.f32.mxu1 %vm7637_vm1, %v7636_v1  ;;  %7558 = vmatprep.mubr.msk.f32.mxu0 %vm7637_vm1, %v7636_v1  ;;  %v5879_v2 = vld [vmem:[%s7695_s21 + $0x162] sm:$0xff] }
 0x31b   : > { %v7140_v25 = vpop.f32.mrf.mxu1  ;;  %v7274_v38 = vpop.f32.mrf.mxu0 }
 0x31c   : > { %v5789_v38 = vld [vmem:[%s7695_s21 + $0x171] sm:$0xff] }
 0x31d   : > { %v3143_v8 = vpop.f32.mrf.mxu1  ;;  %v3660_v41 = vpop.f32.mrf.mxu0  ;;  %7425 = vmatmul.mubr.msk.f32.gmra.mxu1 %vm291_vm2, %v5786_v20  ;;  %7559 = vmatmul.mubr.msk.f32.gmra.mxu0 %vm291_vm2, %v5877_v53 }
 0x31e   : > { %v3227_v0 = vadd.f32 %v3143_v8, %v9279_v11  ;;  %v9763_v36 = vadd.f32 %v3660_v41, %v3226_v56  ;;  %7427 = vmatprep.mubr.msk.f32.mxu1 %vm7637_vm1, %v7636_v1  ;;  %7561 = vmatprep.mubr.msk.f32.mxu0 %vm7637_vm1, %v7636_v1  ;;  %v5880_v8 = vld [vmem:[%s7695_s21 + $0x16a] sm:$0xff] }
 0x31f   : > { %v7143_v43 = vpop.f32.mrf.mxu1  ;;  %v7277_v46 = vpop.f32.mrf.mxu0 }
 0x320   : > { %v5790_v46 = vld [vmem:[%s7695_s21 + $0x179] sm:$0xff] }
 0x321   : > { %v3148_v14 = vpop.f32.mrf.mxu1  ;;  %v3665_v47 = vpop.f32.mrf.mxu0  ;;  %7428 = vmatmul.mubr.msk.f32.gmra.mxu1 %vm291_vm2, %v5787_v26  ;;  %7562 = vmatmul.mubr.msk.f32.gmra.mxu0 %vm291_vm2, %v5878_v59 }
 0x322   : > { %v3228_v11 = vadd.f32 %v3148_v14, %v9290_v19  ;;  %v9774_v62 = vadd.f32 %v3665_v47, %v3227_v0  ;;  %7430 = vmatprep.mubr.msk.f32.mxu1 %vm7637_vm1, %v7636_v1  ;;  %7564 = vmatprep.mubr.msk.f32.mxu0 %vm7637_vm1, %v7636_v1  ;;  %v5881_v14 = vld [vmem:[%s7695_s21 + $0x172] sm:$0xff] }
 0x323   : > { %v7146_v63 = vpop.f32.mrf.mxu1  ;;  %v7280_v56 = vpop.f32.mrf.mxu0 }
 0x324   : > { %v5791_v56 = vld [vmem:[%s7695_s21 + $0x181] sm:$0xff] }
 0x325   : > { %v3153_v20 = vpop.f32.mrf.mxu1  ;;  %v3670_v53 = vpop.f32.mrf.mxu0  ;;  %7431 = vmatmul.mubr.msk.f32.gmra.mxu1 %vm291_vm2, %v5788_v32  ;;  %7565 = vmatmul.mubr.msk.f32.gmra.mxu0 %vm291_vm2, %v5879_v2 }
 0x326   : > { %v3229_v19 = vadd.f32 %v3153_v20, %v9301_v29  ;;  %v9785_v25 = vadd.f32 %v3670_v53, %v3228_v11  ;;  %7433 = vmatprep.mubr.msk.f32.mxu1 %vm7637_vm1, %v7636_v1  ;;  %7567 = vmatprep.mubr.msk.f32.mxu0 %vm7637_vm1, %v7636_v1  ;;  %v5882_v20 = vld [vmem:[%s7695_s21 + $0x17a] sm:$0xff] }
 0x327   : > { %v7149_v41 = vpop.f32.mrf.mxu1  ;;  %v7283_v0 = vpop.f32.mrf.mxu0 }
 0x328   : > { %v5792_v0 = vld [vmem:[%s7695_s21 + $0x189] sm:$0xff] }
 0x329   : > { %v3158_v26 = vpop.f32.mrf.mxu1  ;;  %v3675_v59 = vpop.f32.mrf.mxu0  ;;  %7434 = vmatmul.mubr.msk.f32.gmra.mxu1 %vm291_vm2, %v5789_v38  ;;  %7568 = vmatmul.mubr.msk.f32.gmra.mxu0 %vm291_vm2, %v5880_v8 }
 0x32a   : > { %v3230_v29 = vadd.f32 %v3158_v26, %v9312_v37  ;;  %v9796_v43 = vadd.f32 %v3675_v59, %v3229_v19  ;;  %7436 = vmatprep.mubr.msk.f32.mxu1 %vm7637_vm1, %v7636_v1  ;;  %7570 = vmatprep.mubr.msk.f32.mxu0 %vm7637_vm1, %v7636_v1  ;;  %v5883_v26 = vld [vmem:[%s7695_s21 + $0x182] sm:$0xff] }
 0x32b   : > { %v7152_v47 = vpop.f32.mrf.mxu1  ;;  %v7286_v11 = vpop.f32.mrf.mxu0 }
 0x32c   : > { %v5884_v11 = vld [vmem:[%s7695_s21 + $0x18a] sm:$0xff] }
 0x32d   : > { %v3163_v32 = vpop.f32.mrf.mxu1  ;;  %v3680_v2 = vpop.f32.mrf.mxu0  ;;  %7437 = vmatmul.mubr.msk.f32.gmra.mxu1 %vm291_vm2, %v5790_v46  ;;  %7571 = vmatmul.mubr.msk.f32.gmra.mxu0 %vm291_vm2, %v5881_v14 }
 0x32e   : > { %v3231_v37 = vadd.f32 %v3163_v32, %v9323_v51  ;;  %v9807_v63 = vadd.f32 %v3680_v2, %v3230_v29  ;;  %7439 = vmatprep.mubr.msk.f32.mxu1 %vm7637_vm1, %v7636_v1  ;;  %7573 = vmatprep.mubr.msk.f32.mxu0 %vm7637_vm1, %v7636_v1 }
 0x32f   : > { %v7155_v53 = vpop.f32.mrf.mxu1  ;;  %v7289_v19 = vpop.f32.mrf.mxu0 }
 0x331   : > { %v3168_v38 = vpop.f32.mrf.mxu1  ;;  %v3685_v8 = vpop.f32.mrf.mxu0  ;;  %7440 = vmatmul.mubr.msk.f32.gmra.mxu1 %vm291_vm2, %v5791_v56  ;;  %7574 = vmatmul.mubr.msk.f32.gmra.mxu0 %vm291_vm2, %v5882_v20 }
 0x332   : > { %v3232_v51 = vadd.f32 %v3168_v38, %v9334_v5  ;;  %v9818_v41 = vadd.f32 %v3685_v8, %v3231_v37  ;;  %7442 = vmatprep.mubr.msk.f32.mxu1 %vm7637_vm1, %v7636_v1  ;;  %7576 = vmatprep.mubr.msk.f32.mxu0 %vm7637_vm1, %v7636_v1 }
 0x333   : > { %v7158_v59 = vpop.f32.mrf.mxu1  ;;  %v7292_v29 = vpop.f32.mrf.mxu0 }
 0x335   : > { %v3173_v46 = vpop.f32.mrf.mxu1  ;;  %v3690_v14 = vpop.f32.mrf.mxu0  ;;  %7443 = vmatmul.mubr.msk.f32.gmra.mxu1 %vm291_vm2, %v5792_v0  ;;  %7577 = vmatmul.mubr.msk.f32.gmra.mxu0 %vm291_vm2, %v5883_v26 }
 0x336   : > { %v3233_v5 = vadd.f32 %v3173_v46, %v9345_v18  ;;  %v9829_v47 = vadd.f32 %v3690_v14, %v3232_v51  ;;  %7579 = vmatprep.mubr.msk.f32.mxu0 %vm7637_vm1, %v7636_v1 }
 0x337   : > { %v7161_v32 = vpop.f32.mrf.mxu1  ;;  %v7295_v2 = vpop.f32.mrf.mxu0 }
 0x339   : > { %v3178_v37 = vpop.f32.mrf.mxu1  ;;  %v3695_v56 = vpop.f32.mrf.mxu0  ;;  %7580 = vmatmul.mubr.msk.f32.gmra.mxu0 %vm291_vm2, %v5884_v11 }
 0x33a   : > { %v3234_v20 = vadd.f32 %v3178_v37, %v9356_v34  ;;  %v9836_v53 = vadd.f32 %v3695_v56, %v3233_v5 }
 0x33b   : > { %v7164_v19 = vpop.f32.mrf.mxu1  ;;  %v7298_v38 = vpop.f32.mrf.mxu0 }
 0x33d   : > { %v3183_v8 = vpop.f32.mrf.mxu1  ;;  %v3700_v18 = vpop.f32.mrf.mxu0 }
 0x33e   : > { %v3235_v51 = vadd.f32 %v3183_v8, %v9367_v50  ;;  %v9839_v0 = vadd.f32 %v3700_v18, %v3234_v20 }
 0x33f   : > { %v7167_v1 = vpop.f32.mrf.mxu1  ;;  %v7301_v26 = vpop.f32.mrf.mxu0 }
 0x340   : > { %v9852_v1 = vld [vmem:[%s10048_s2] ss:$0 sm:$0xff] }
 0x341   : > { %v3188_v59 = vpop.f32.mrf.mxu1  ;;  %v3705_v29 = vpop.f32.mrf.mxu0 }
 0x342   : > { %v3236_v46 = vadd.f32 %v3188_v59, %v9377_v52  ;;  %v9842_v14 = vadd.f32 %v3705_v29, %v3235_v51 }
 0x343   : > { %v7170_v34 = vpop.f32.mrf.mxu1  ;;  %v7304_v5 = vpop.f32.mrf.mxu0 }
 0x345   : > { %v3710_v11 = vpop.f32.mrf.mxu0  ;;  %v4012_v32 = vpop.f32.mrf.mxu1 }
 0x346   : > { %v9844_v2 = vadd.f32 %v3710_v11, %v3236_v46  ;;  %v4236_v50 = vadd.f32 %v4012_v32, %v9389_v16 }
 0x347   : > { %v7307_v37 = vpop.f32.mrf.mxu0  ;;  %v7312_v56 = vpop.f32.mrf.mxu1 }
 0x349   : > { %v4017_v20 = vpop.f32.mrf.mxu1  ;;  %v4534_v19 = vpop.f32.mrf.mxu0 }
 0x34a   : > { %v4758_v38 = vadd.f32 %v4534_v19, %v4236_v50  ;;  %v4237_v52 = vadd.f32 %v4017_v20, %v9400_v54 }
 0x34b   : > { %v7315_v8 = vpop.f32.mrf.mxu1  ;;  %v7449_v18 = vpop.f32.mrf.mxu0 }
 0x34c   : > { %vm4803_vm3 = vcmp.ge.f32.partialorder %v4758_v38, 0.0  ;;  %v4848_v51 = vmul.f32 0.2, %v4758_v38 }
 0x34d   : > { %v4022_v26 = vpop.f32.mrf.mxu1  ;;  %v4539_v59 = vpop.f32.mrf.mxu0 }
 0x34e   : > { %v4893_v16 = vsel %vm4803_vm3, %v4758_v38, %v4848_v51  ;;  %v4759_v29 = vadd.f32 %v4539_v59, %v4237_v52  ;;  %v4238_v5 = vadd.f32 %v4022_v26, %v9411_v60 }
 0x34f   : > { %v4945_v54 = vadd.f32 %v9852_v1, %v4893_v16  ;;  %v7318_v46 = vpop.f32.mrf.mxu1  ;;  %v7452_v34 = vpop.f32.mrf.mxu0 }
 0x350   : > { %vm4804_vm5 = vcmp.ge.f32.partialorder %v4759_v29, 0.0  ;;  %v4849_v11 = vmul.f32 0.2, %v4759_v29 }
 0x351   : > { %4991 = vst.msk [vmem:[%s9857_s20] sm:$0xff] %vm4990_vm4, %v4945_v54  ;;  %v4027_v32 = vpop.f32.mrf.mxu1  ;;  %v4544_v37 = vpop.f32.mrf.mxu0 }
 0x352   : > { %v4894_v56 = vsel %vm4804_vm5, %v4759_v29, %v4849_v11  ;;  %v4760_v50 = vadd.f32 %v4544_v37, %v4238_v5  ;;  %v4239_v8 = vadd.f32 %v4027_v32, %v9422_v3 }
 0x353   : > { %v4946_v20 = vadd.f32 %v9852_v1, %v4894_v56  ;;  %v7321_v19 = vpop.f32.mrf.mxu1  ;;  %v7455_v38 = vpop.f32.mrf.mxu0 }
 0x354   : > { %vm4805_vm6 = vcmp.ge.f32.partialorder %v4760_v50, 0.0  ;;  %v4850_v18 = vmul.f32 0.2, %v4760_v50 }
 0x355   : > { %4992 = vst.msk [vmem:[%s9857_s20 + $0x8] sm:$0xff] %vm4990_vm4, %v4946_v20  ;;  %v4032_v60 = vpop.f32.mrf.mxu1  ;;  %v4549_v52 = vpop.f32.mrf.mxu0 }
 0x356   : > { %v4895_v51 = vsel %vm4805_vm6, %v4760_v50, %v4850_v18  ;;  %v4761_v26 = vadd.f32 %v4549_v52, %v4239_v8  ;;  %v4240_v54 = vadd.f32 %v4032_v60, %v9433_v9 }
 0x357   : > { %v4947_v59 = vadd.f32 %v9852_v1, %v4895_v51  ;;  %v7324_v16 = vpop.f32.mrf.mxu1  ;;  %v7458_v29 = vpop.f32.mrf.mxu0 }
 0x358   : > { %vm4806_vm7 = vcmp.ge.f32.partialorder %v4761_v26, 0.0  ;;  %v4851_v46 = vmul.f32 0.2, %v4761_v26 }
 0x359   : > { %4993 = vst.msk [vmem:[%s9857_s20 + $0x10] sm:$0xff] %vm4990_vm4, %v4947_v59  ;;  %v4037_v3 = vpop.f32.mrf.mxu1  ;;  %v4554_v34 = vpop.f32.mrf.mxu0 }
 0x35a   : > { %v4896_v5 = vsel %vm4806_vm7, %v4761_v26, %v4851_v46  ;;  %v4762_v11 = vadd.f32 %v4554_v34, %v4240_v54  ;;  %v4241_v50 = vadd.f32 %v4037_v3, %v9444_v15 }
 0x35b   : > { %v4948_v32 = vadd.f32 %v9852_v1, %v4896_v5  ;;  %v7327_v37 = vpop.f32.mrf.mxu1  ;;  %v7461_v56 = vpop.f32.mrf.mxu0 }
 0x35c   : > { %vm4807_vm8 = vcmp.ge.f32.partialorder %v4762_v11, 0.0  ;;  %v4852_v20 = vmul.f32 0.2, %v4762_v11 }
 0x35d   : > { %4994 = vst.msk [vmem:[%s9857_s20 + $0x18] sm:$0xff] %vm4990_vm4, %v4948_v32  ;;  %v4042_v9 = vpop.f32.mrf.mxu1  ;;  %v4559_v19 = vpop.f32.mrf.mxu0 }
 0x35e   : > { %v4897_v38 = vsel %vm4807_vm8, %v4762_v11, %v4852_v20  ;;  %v4763_v8 = vadd.f32 %v4559_v19, %v4241_v50  ;;  %v4242_v51 = vadd.f32 %v4042_v9, %v9455_v21 }
 0x35f   : > { %v4949_v18 = vadd.f32 %v9852_v1, %v4897_v38  ;;  %v7330_v60 = vpop.f32.mrf.mxu1  ;;  %v7464_v52 = vpop.f32.mrf.mxu0 }
 0x360   : > { %vm4808_vm9 = vcmp.ge.f32.partialorder %v4763_v8, 0.0  ;;  %v4853_v26 = vmul.f32 0.2, %v4763_v8 }
 0x361   : > { %4995 = vst.msk [vmem:[%s9857_s20 + $0x20] sm:$0xff] %vm4990_vm4, %v4949_v18  ;;  %v4047_v15 = vpop.f32.mrf.mxu1  ;;  %v4564_v59 = vpop.f32.mrf.mxu0 }
 0x362   : > { %v4898_v16 = vsel %vm4808_vm9, %v4763_v8, %v4853_v26  ;;  %v4764_v29 = vadd.f32 %v4564_v59, %v4242_v51  ;;  %v4243_v34 = vadd.f32 %v4047_v15, %v9466_v27 }
 0x363   : > { %v4950_v54 = vadd.f32 %v9852_v1, %v4898_v16  ;;  %v7333_v46 = vpop.f32.mrf.mxu1  ;;  %v7467_v3 = vpop.f32.mrf.mxu0 }
 0x364   : > { %vm4809_vm10 = vcmp.ge.f32.partialorder %v4764_v29, 0.0  ;;  %v4854_v5 = vmul.f32 0.2, %v4764_v29 }
 0x365   : > { %4996 = vst.msk [vmem:[%s9857_s20 + $0x28] sm:$0xff] %vm4990_vm4, %v4950_v54  ;;  %v4052_v21 = vpop.f32.mrf.mxu1  ;;  %v4569_v11 = vpop.f32.mrf.mxu0 }
 0x366   : > { %v4899_v32 = vsel %vm4809_vm10, %v4764_v29, %v4854_v5  ;;  %v4765_v37 = vadd.f32 %v4569_v11, %v4243_v34  ;;  %v4244_v9 = vadd.f32 %v4052_v21, %v9477_v33 }
 0x367   : > { %v4951_v56 = vadd.f32 %v9852_v1, %v4899_v32  ;;  %v7336_v50 = vpop.f32.mrf.mxu1  ;;  %v7470_v20 = vpop.f32.mrf.mxu0 }
 0x368   : > { %vm4810_vm11 = vcmp.ge.f32.partialorder %v4765_v37, 0.0  ;;  %v4855_v19 = vmul.f32 0.2, %v4765_v37 }
 0x369   : > { %4997 = vst.msk [vmem:[%s9857_s20 + $0x30] sm:$0xff] %vm4990_vm4, %v4951_v56  ;;  %v4057_v27 = vpop.f32.mrf.mxu1  ;;  %v4574_v38 = vpop.f32.mrf.mxu0 }
 0x36a   : > { %v4900_v8 = vsel %vm4810_vm11, %v4765_v37, %v4855_v19  ;;  %v4766_v18 = vadd.f32 %v4574_v38, %v4244_v9  ;;  %v4245_v26 = vadd.f32 %v4057_v27, %v9488_v39 }
 0x36b   : > { %v4952_v60 = vadd.f32 %v9852_v1, %v4900_v8  ;;  %v7339_v52 = vpop.f32.mrf.mxu1  ;;  %v7473_v51 = vpop.f32.mrf.mxu0 }
 0x36c   : > { %vm4811_vm12 = vcmp.ge.f32.partialorder %v4766_v18, 0.0  ;;  %v4856_v15 = vmul.f32 0.2, %v4766_v18 }
 0x36d   : > { %4998 = vst.msk [vmem:[%s9857_s20 + $0x38] sm:$0xff] %vm4990_vm4, %v4952_v60  ;;  %v4062_v33 = vpop.f32.mrf.mxu1  ;;  %v4579_v59 = vpop.f32.mrf.mxu0 }
 0x36e   : > { %v4901_v16 = vsel %vm4811_vm12, %v4766_v18, %v4856_v15  ;;  %v4767_v29 = vadd.f32 %v4579_v59, %v4245_v26  ;;  %v4246_v34 = vadd.f32 %v4062_v33, %v9499_v49 }
 0x36f   : > { %v4953_v54 = vadd.f32 %v9852_v1, %v4901_v16  ;;  %v7342_v46 = vpop.f32.mrf.mxu1  ;;  %v7476_v3 = vpop.f32.mrf.mxu0 }
 0x370   : > { %vm4812_vm13 = vcmp.ge.f32.partialorder %v4767_v29, 0.0  ;;  %v4857_v5 = vmul.f32 0.2, %v4767_v29 }
 0x371   : > { %4999 = vst.msk [vmem:[%s9857_s20 + $0x40] sm:$0xff] %vm4990_vm4, %v4953_v54  ;;  %v4067_v39 = vpop.f32.mrf.mxu1  ;;  %v4584_v21 = vpop.f32.mrf.mxu0 }
 0x372   : > { %v4902_v11 = vsel %vm4812_vm13, %v4767_v29, %v4857_v5  ;;  %v4768_v32 = vadd.f32 %v4584_v21, %v4246_v34  ;;  %v4247_v20 = vadd.f32 %v4067_v39, %v9510_v57 }
 0x373   : > { %v4954_v37 = vadd.f32 %v9852_v1, %v4902_v11  ;;  %v7345_v56 = vpop.f32.mrf.mxu1  ;;  %v7479_v50 = vpop.f32.mrf.mxu0 }
 0x374   : > { %vm4813_vm14 = vcmp.ge.f32.partialorder %v4768_v32, 0.0  ;;  %v4858_v9 = vmul.f32 0.2, %v4768_v32 }
 0x375   : > { %5000 = vst.msk [vmem:[%s9857_s20 + $0x48] sm:$0xff] %vm4990_vm4, %v4954_v37  ;;  %v4072_v49 = vpop.f32.mrf.mxu1  ;;  %v4589_v19 = vpop.f32.mrf.mxu0 }
 0x376   : > { %v4903_v27 = vsel %vm4813_vm14, %v4768_v32, %v4858_v9  ;;  %v4769_v38 = vadd.f32 %v4589_v19, %v4247_v20  ;;  %v4248_v52 = vadd.f32 %v4072_v49, %v9521_v4 }
 0x377   : > { %v4955_v8 = vadd.f32 %v9852_v1, %v4903_v27  ;;  %v7348_v18 = vpop.f32.mrf.mxu1  ;;  %v7482_v60 = vpop.f32.mrf.mxu0 }
 0x378   : > { %vm4814_vm15 = vcmp.ge.f32.partialorder %v4769_v38, 0.0  ;;  %v4859_v51 = vmul.f32 0.2, %v4769_v38 }
 0x379   : > { %5001 = vst.msk [vmem:[%s9857_s20 + $0x50] sm:$0xff] %vm4990_vm4, %v4955_v8  ;;  %v4077_v57 = vpop.f32.mrf.mxu1  ;;  %v4594_v26 = vpop.f32.mrf.mxu0 }
 0x37a   : > { %v4904_v15 = vsel %vm4814_vm15, %v4769_v38, %v4859_v51  ;;  %v4770_v33 = vadd.f32 %v4594_v26, %v4248_v52  ;;  %v4249_v54 = vadd.f32 %v4077_v57, %v9532_v12 }
 0x37b   : > { %v4956_v59 = vadd.f32 %v9852_v1, %v4904_v15  ;;  %v7351_v16 = vpop.f32.mrf.mxu1  ;;  %v7485_v29 = vpop.f32.mrf.mxu0 }
 0x37c   : > { %vm4815_vm0 = vcmp.ge.f32.partialorder %v4770_v33, 0.0  ;;  %v4860_v46 = vmul.f32 0.2, %v4770_v33 }
 0x37d   : > { %5002 = vst.msk [vmem:[%s9857_s20 + $0x58] sm:$0xff] %vm4990_vm4, %v4956_v59  ;;  %v4082_v4 = vpop.f32.mrf.mxu1  ;;  %v4599_v3 = vpop.f32.mrf.mxu0 }
 0x37e   : > { %v4905_v34 = vsel %vm4815_vm0, %v4770_v33, %v4860_v46  ;;  %v4771_v5 = vadd.f32 %v4599_v3, %v4249_v54  ;;  %v4250_v32 = vadd.f32 %v4082_v4, %v9543_v44 }
 0x37f   : > { %v4957_v39 = vadd.f32 %v9852_v1, %v4905_v34  ;;  %v7354_v21 = vpop.f32.mrf.mxu1  ;;  %v7488_v11 = vpop.f32.mrf.mxu0 }
 0x380   : > { %vm4816_vm1 = vcmp.ge.f32.partialorder %v4771_v5, 0.0  ;;  %v4861_v37 = vmul.f32 0.2, %v4771_v5 }
 0x381   : > { %5003 = vst.msk [vmem:[%s9857_s20 + $0x60] sm:$0xff] %vm4990_vm4, %v4957_v39  ;;  %v4087_v12 = vpop.f32.mrf.mxu1  ;;  %v4604_v56 = vpop.f32.mrf.mxu0 }
 0x382   : > { %v4906_v50 = vsel %vm4816_vm1, %v4771_v5, %v4861_v37  ;;  %v4772_v20 = vadd.f32 %v4604_v56, %v4250_v32  ;;  %v4251_v27 = vadd.f32 %v4087_v12, %v9554_v10 }
 0x383   : > { %v4958_v9 = vadd.f32 %v9852_v1, %v4906_v50  ;;  %v7357_v49 = vpop.f32.mrf.mxu1  ;;  %v7491_v19 = vpop.f32.mrf.mxu0 }
 0x384   : > { %vm4817_vm2 = vcmp.ge.f32.partialorder %v4772_v20, 0.0  ;;  %v4862_v38 = vmul.f32 0.2, %v4772_v20 }
 0x385   : > { %5004 = vst.msk [vmem:[%s9857_s20 + $0x68] sm:$0xff] %vm4990_vm4, %v4958_v9  ;;  %v4092_v44 = vpop.f32.mrf.mxu1  ;;  %v4609_v8 = vpop.f32.mrf.mxu0 }
 0x386   : > { %v4907_v18 = vsel %vm4817_vm2, %v4772_v20, %v4862_v38  ;;  %v4773_v60 = vadd.f32 %v4609_v8, %v4251_v27  ;;  %v4252_v26 = vadd.f32 %v4092_v44, %v9565_v31 }
 0x387   : > { %v4959_v52 = vadd.f32 %v9852_v1, %v4907_v18  ;;  %v7360_v51 = vpop.f32.mrf.mxu1  ;;  %v7494_v57 = vpop.f32.mrf.mxu0 }
 0x388   : > { %vm4818_vm3 = vcmp.ge.f32.partialorder %v4773_v60, 0.0  ;;  %v4863_v15 = vmul.f32 0.2, %v4773_v60 }
 0x389   : > { %5005 = vst.msk [vmem:[%s9857_s20 + $0x70] sm:$0xff] %vm4990_vm4, %v4959_v52  ;;  %v4097_v10 = vpop.f32.mrf.mxu1  ;;  %v4614_v33 = vpop.f32.mrf.mxu0 }
 0x38a   : > { %v4908_v59 = vsel %vm4818_vm3, %v4773_v60, %v4863_v15  ;;  %v4774_v16 = vadd.f32 %v4614_v33, %v4252_v26  ;;  %v4253_v4 = vadd.f32 %v4097_v10, %v9576_v42 }
 0x38b   : > { %v4960_v29 = vadd.f32 %v9852_v1, %v4908_v59  ;;  %v7363_v54 = vpop.f32.mrf.mxu1  ;;  %v7497_v46 = vpop.f32.mrf.mxu0 }
 0x38c   : > { %vm4819_vm5 = vcmp.ge.f32.partialorder %v4774_v16, 0.0  ;;  %v4864_v3 = vmul.f32 0.2, %v4774_v16 }
 0x38d   : > { %5006 = vst.msk [vmem:[%s9857_s20 + $0x78] sm:$0xff] %vm4990_vm4, %v4960_v29  ;;  %v4102_v31 = vpop.f32.mrf.mxu1  ;;  %v4619_v34 = vpop.f32.mrf.mxu0 }
 0x38e   : > { %v4909_v5 = vsel %vm4819_vm5, %v4774_v16, %v4864_v3  ;;  %v4775_v39 = vadd.f32 %v4619_v34, %v4253_v4  ;;  %v4254_v37 = vadd.f32 %v4102_v31, %v9587_v48 }
 0x38f   : > { %v4961_v21 = vadd.f32 %v9852_v1, %v4909_v5  ;;  %v7366_v11 = vpop.f32.mrf.mxu1  ;;  %v7500_v32 = vpop.f32.mrf.mxu0 }
 0x390   : > { %vm4820_vm6 = vcmp.ge.f32.partialorder %v4775_v39, 0.0  ;;  %v4865_v12 = vmul.f32 0.2, %v4775_v39 }
 0x391   : > { %5007 = vst.msk [vmem:[%s9857_s20 + $0x80] sm:$0xff] %vm4990_vm4, %v4961_v21  ;;  %v4107_v42 = vpop.f32.mrf.mxu1  ;;  %v4624_v56 = vpop.f32.mrf.mxu0 }
 0x392   : > { %v4910_v50 = vsel %vm4820_vm6, %v4775_v39, %v4865_v12  ;;  %v4776_v20 = vadd.f32 %v4624_v56, %v4254_v37  ;;  %v4255_v27 = vadd.f32 %v4107_v42, %v9598_v23 }
 0x393   : > { %v4962_v9 = vadd.f32 %v9852_v1, %v4910_v50  ;;  %v7369_v49 = vpop.f32.mrf.mxu1  ;;  %v7503_v19 = vpop.f32.mrf.mxu0 }
 0x394   : > { %vm4821_vm7 = vcmp.ge.f32.partialorder %v4776_v20, 0.0  ;;  %v4866_v38 = vmul.f32 0.2, %v4776_v20 }
 0x395   : > { %5008 = vst.msk [vmem:[%s9857_s20 + $0x88] sm:$0xff] %vm4990_vm4, %v4962_v9  ;;  %v4112_v48 = vpop.f32.mrf.mxu1  ;;  %v4629_v44 = vpop.f32.mrf.mxu0 }
 0x396   : > { %v4911_v8 = vsel %vm4821_vm7, %v4776_v20, %v4866_v38  ;;  %v4777_v18 = vadd.f32 %v4629_v44, %v4255_v27  ;;  %v4256_v57 = vadd.f32 %v4112_v48, %v9609_v7 }
 0x397   : > { %v4963_v60 = vadd.f32 %v9852_v1, %v4911_v8  ;;  %v7372_v52 = vpop.f32.mrf.mxu1  ;;  %v7506_v51 = vpop.f32.mrf.mxu0 }
 0x398   : > { %vm4822_vm8 = vcmp.ge.f32.partialorder %v4777_v18, 0.0  ;;  %v4867_v26 = vmul.f32 0.2, %v4777_v18 }
 0x399   : > { %5009 = vst.msk [vmem:[%s9857_s20 + $0x90] sm:$0xff] %vm4990_vm4, %v4963_v60  ;;  %v4117_v23 = vpop.f32.mrf.mxu1  ;;  %v4634_v15 = vpop.f32.mrf.mxu0 }
 0x39a   : > { %v4912_v10 = vsel %vm4822_vm8, %v4777_v18, %v4867_v26  ;;  %v4778_v33 = vadd.f32 %v4634_v15, %v4256_v57  ;;  %v4257_v54 = vadd.f32 %v4117_v23, %v9620_v28 }
 0x39b   : > { %v4964_v59 = vadd.f32 %v9852_v1, %v4912_v10  ;;  %v7375_v16 = vpop.f32.mrf.mxu1  ;;  %v7509_v29 = vpop.f32.mrf.mxu0 }
 0x39c   : > { %vm4823_vm9 = vcmp.ge.f32.partialorder %v4778_v33, 0.0  ;;  %v4868_v46 = vmul.f32 0.2, %v4778_v33 }
 0x39d   : > { %5010 = vst.msk [vmem:[%s9857_s20 + $0x98] sm:$0xff] %vm4990_vm4, %v4964_v59  ;;  %v4122_v7 = vpop.f32.mrf.mxu1  ;;  %v4639_v4 = vpop.f32.mrf.mxu0 }
 0x39e   : > { %v4913_v3 = vsel %vm4823_vm9, %v4778_v33, %v4868_v46  ;;  %v4779_v31 = vadd.f32 %v4639_v4, %v4257_v54  ;;  %v4258_v21 = vadd.f32 %v4122_v7, %v9631_v61 }
 0x39f   : > { %v4965_v34 = vadd.f32 %v9852_v1, %v4913_v3  ;;  %v7378_v5 = vpop.f32.mrf.mxu1  ;;  %v7512_v39 = vpop.f32.mrf.mxu0 }
 0x3a0   : > { %vm4824_vm10 = vcmp.ge.f32.partialorder %v4779_v31, 0.0  ;;  %v4869_v11 = vmul.f32 0.2, %v4779_v31 }
 0x3a1   : > { %5011 = vst.msk [vmem:[%s9857_s20 + $0xa0] sm:$0xff] %vm4990_vm4, %v4965_v34  ;;  %v4127_v28 = vpop.f32.mrf.mxu1  ;;  %v4644_v32 = vpop.f32.mrf.mxu0 }
 0x3a2   : > { %v4914_v37 = vsel %vm4824_vm10, %v4779_v31, %v4869_v11  ;;  %v4780_v12 = vadd.f32 %v4644_v32, %v4258_v21  ;;  %v4259_v20 = vadd.f32 %v4127_v28, %v9642_v24 }
 0x3a3   : > { %v4966_v42 = vadd.f32 %v9852_v1, %v4914_v37  ;;  %v7381_v56 = vpop.f32.mrf.mxu1  ;;  %v7515_v50 = vpop.f32.mrf.mxu0 }
 0x3a4   : > { %vm4825_vm11 = vcmp.ge.f32.partialorder %v4780_v12, 0.0  ;;  %v4870_v9 = vmul.f32 0.2, %v4780_v12 }
 0x3a5   : > { %5012 = vst.msk [vmem:[%s9857_s20 + $0xa8] sm:$0xff] %vm4990_vm4, %v4966_v42  ;;  %v4132_v61 = vpop.f32.mrf.mxu1  ;;  %v4649_v49 = vpop.f32.mrf.mxu0 }
 0x3a6   : > { %v4915_v19 = vsel %vm4825_vm11, %v4780_v12, %v4870_v9  ;;  %v4781_v27 = vadd.f32 %v4649_v49, %v4259_v20  ;;  %v4260_v8 = vadd.f32 %v4132_v61, %v9653_v45 }
 0x3a7   : > { %v4967_v38 = vadd.f32 %v9852_v1, %v4915_v19  ;;  %v7384_v48 = vpop.f32.mrf.mxu1  ;;  %v7518_v44 = vpop.f32.mrf.mxu0 }
 0x3a8   : > { %vm4826_vm12 = vcmp.ge.f32.partialorder %v4781_v27, 0.0  ;;  %v4871_v18 = vmul.f32 0.2, %v4781_v27 }
 0x3a9   : > { %5013 = vst.msk [vmem:[%s9857_s20 + $0xb0] sm:$0xff] %vm4990_vm4, %v4967_v38  ;;  %v4137_v24 = vpop.f32.mrf.mxu1  ;;  %v4654_v60 = vpop.f32.mrf.mxu0 }
 0x3aa   : > { %v4916_v52 = vsel %vm4826_vm12, %v4781_v27, %v4871_v18  ;;  %v4782_v51 = vadd.f32 %v4654_v60, %v4260_v8  ;;  %v4261_v15 = vadd.f32 %v4137_v24, %v9664_v35 }
 0x3ab   : > { %v4968_v57 = vadd.f32 %v9852_v1, %v4916_v52  ;;  %v7387_v26 = vpop.f32.mrf.mxu1  ;;  %v7521_v23 = vpop.f32.mrf.mxu0 }
 0x3ac   : > { %vm4827_vm13 = vcmp.ge.f32.partialorder %v4782_v51, 0.0  ;;  %v4872_v10 = vmul.f32 0.2, %v4782_v51 }
 0x3ad   : > { %5014 = vst.msk [vmem:[%s9857_s20 + $0xb8] sm:$0xff] %vm4990_vm4, %v4968_v57  ;;  %v4142_v45 = vpop.f32.mrf.mxu1  ;;  %v4659_v33 = vpop.f32.mrf.mxu0 }
 0x3ae   : > { %v4917_v59 = vsel %vm4827_vm13, %v4782_v51, %v4872_v10  ;;  %v4783_v16 = vadd.f32 %v4659_v33, %v4261_v15  ;;  %v4262_v7 = vadd.f32 %v4142_v45, %v9675_v40 }
 0x3af   : > { %v4969_v29 = vadd.f32 %v9852_v1, %v4917_v59  ;;  %v7390_v54 = vpop.f32.mrf.mxu1  ;;  %v7524_v46 = vpop.f32.mrf.mxu0 }
 0x3b0   : > { %vm4828_vm14 = vcmp.ge.f32.partialorder %v4783_v16, 0.0  ;;  %v4873_v4 = vmul.f32 0.2, %v4783_v16 }
 0x3b1   : > { %5015 = vst.msk [vmem:[%s9857_s20 + $0xc0] sm:$0xff] %vm4990_vm4, %v4969_v29  ;;  %v4147_v35 = vpop.f32.mrf.mxu1  ;;  %v4664_v3 = vpop.f32.mrf.mxu0 }
 0x3b2   : > { %v4918_v31 = vsel %vm4828_vm14, %v4783_v16, %v4873_v4  ;;  %v4784_v34 = vadd.f32 %v4664_v3, %v4262_v7  ;;  %v4263_v11 = vadd.f32 %v4147_v35, %v9686_v58 }
 0x3b3   : > { %v4970_v5 = vadd.f32 %v9852_v1, %v4918_v31  ;;  %v7393_v39 = vpop.f32.mrf.mxu1  ;;  %v7527_v21 = vpop.f32.mrf.mxu0 }
 0x3b4   : > { %vm4829_vm15 = vcmp.ge.f32.partialorder %v4784_v34, 0.0  ;;  %v4874_v28 = vmul.f32 0.2, %v4784_v34 }
 0x3b5   : > { %5016 = vst.msk [vmem:[%s9857_s20 + $0xc8] sm:$0xff] %vm4990_vm4, %v4970_v5  ;;  %v4152_v40 = vpop.f32.mrf.mxu1  ;;  %v4669_v32 = vpop.f32.mrf.mxu0 }
 0x3b6   : > { %v4919_v37 = vsel %vm4829_vm15, %v4784_v34, %v4874_v28  ;;  %v4785_v12 = vadd.f32 %v4669_v32, %v4263_v11  ;;  %v4264_v20 = vadd.f32 %v4152_v40, %v9697_v17 }
 0x3b7   : > { %v4971_v42 = vadd.f32 %v9852_v1, %v4919_v37  ;;  %v7396_v56 = vpop.f32.mrf.mxu1  ;;  %v7530_v50 = vpop.f32.mrf.mxu0 }
 0x3b8   : > { %vm4830_vm0 = vcmp.ge.f32.partialorder %v4785_v12, 0.0  ;;  %v4875_v9 = vmul.f32 0.2, %v4785_v12 }
 0x3b9   : > { %5017 = vst.msk [vmem:[%s9857_s20 + $0xd0] sm:$0xff] %vm4990_vm4, %v4971_v42  ;;  %v4157_v58 = vpop.f32.mrf.mxu1  ;;  %v4674_v61 = vpop.f32.mrf.mxu0 }
 0x3ba   : > { %v4920_v49 = vsel %vm4830_vm0, %v4785_v12, %v4875_v9  ;;  %v4786_v19 = vadd.f32 %v4674_v61, %v4264_v20  ;;  %v4265_v44 = vadd.f32 %v4157_v58, %v9708_v22 }
 0x3bb   : > { %v4972_v27 = vadd.f32 %v9852_v1, %v4920_v49  ;;  %v7399_v38 = vpop.f32.mrf.mxu1  ;;  %v7533_v48 = vpop.f32.mrf.mxu0 }
 0x3bc   : > { %vm4831_vm1 = vcmp.ge.f32.partialorder %v4786_v19, 0.0  ;;  %v4876_v8 = vmul.f32 0.2, %v4786_v19 }
 0x3bd   : > { %5018 = vst.msk [vmem:[%s9857_s20 + $0xd8] sm:$0xff] %vm4990_vm4, %v4972_v27  ;;  %v4162_v17 = vpop.f32.mrf.mxu1  ;;  %v4679_v18 = vpop.f32.mrf.mxu0 }
 0x3be   : > { %v4921_v24 = vsel %vm4831_vm1, %v4786_v19, %v4876_v8  ;;  %v4787_v60 = vadd.f32 %v4679_v18, %v4265_v44  ;;  %v4266_v26 = vadd.f32 %v4162_v17, %v9719_v30 }
 0x3bf   : > { %v4973_v52 = vadd.f32 %v9852_v1, %v4921_v24  ;;  %v7402_v51 = vpop.f32.mrf.mxu1  ;;  %v7536_v57 = vpop.f32.mrf.mxu0 }
 0x3c0   : > { %vm4832_vm2 = vcmp.ge.f32.partialorder %v4787_v60, 0.0  ;;  %v4877_v23 = vmul.f32 0.2, %v4787_v60 }
 0x3c1   : > { %5019 = vst.msk [vmem:[%s9857_s20 + $0xe0] sm:$0xff] %vm4990_vm4, %v4973_v52  ;;  %v4167_v22 = vpop.f32.mrf.mxu1  ;;  %v4684_v15 = vpop.f32.mrf.mxu0 }
 0x3c2   : > { %v4922_v10 = vsel %vm4832_vm2, %v4787_v60, %v4877_v23  ;;  %v4788_v45 = vadd.f32 %v4684_v15, %v4266_v26  ;;  %v4267_v29 = vadd.f32 %v4167_v22, %v9730_v6 }
 0x3c3   : > { %v4974_v33 = vadd.f32 %v9852_v1, %v4922_v10  ;;  %v7405_v59 = vpop.f32.mrf.mxu1  ;;  %v7539_v16 = vpop.f32.mrf.mxu0 }
 0x3c4   : > { %vm4833_vm3 = vcmp.ge.f32.partialorder %v4788_v45, 0.0  ;;  %v4878_v54 = vmul.f32 0.2, %v4788_v45 }
 0x3c5   : > { %5020 = vst.msk [vmem:[%s9857_s20 + $0xe8] sm:$0xff] %vm4990_vm4, %v4974_v33  ;;  %v4172_v30 = vpop.f32.mrf.mxu1  ;;  %v4689_v46 = vpop.f32.mrf.mxu0 }
 0x3c6   : > { %v4923_v7 = vsel %vm4833_vm3, %v4788_v45, %v4878_v54  ;;  %v4789_v4 = vadd.f32 %v4689_v46, %v4267_v29  ;;  %v4268_v34 = vadd.f32 %v4172_v30, %v9741_v55 }
 0x3c7   : > { %v4975_v35 = vadd.f32 %v9852_v1, %v4923_v7  ;;  %v7408_v3 = vpop.f32.mrf.mxu1  ;;  %v7542_v31 = vpop.f32.mrf.mxu0 }
 0x3c8   : > { %vm4834_vm5 = vcmp.ge.f32.partialorder %v4789_v4, 0.0  ;;  %v4879_v5 = vmul.f32 0.2, %v4789_v4 }
 0x3c9   : > { %5021 = vst.msk [vmem:[%s9857_s20 + $0xf0] sm:$0xff] %vm4990_vm4, %v4975_v35  ;;  %v4177_v6 = vpop.f32.mrf.mxu1  ;;  %v4694_v39 = vpop.f32.mrf.mxu0 }
 0x3ca   : > { %v4924_v21 = vsel %vm4834_vm5, %v4789_v4, %v4879_v5  ;;  %v4790_v11 = vadd.f32 %v4694_v39, %v4268_v34  ;;  %v4269_v37 = vadd.f32 %v4177_v6, %v9752_v13 }
 0x3cb   : > { %v4976_v28 = vadd.f32 %v9852_v1, %v4924_v21  ;;  %v7411_v40 = vpop.f32.mrf.mxu1  ;;  %v7545_v32 = vpop.f32.mrf.mxu0 }
 0x3cc   : > { %vm4835_vm6 = vcmp.ge.f32.partialorder %v4790_v11, 0.0  ;;  %v4880_v12 = vmul.f32 0.2, %v4790_v11 }
 0x3cd   : > { %5022 = vst.msk [vmem:[%s9857_s20 + $0xf8] sm:$0xff] %vm4990_vm4, %v4976_v28  ;;  %v4182_v55 = vpop.f32.mrf.mxu1  ;;  %v4699_v42 = vpop.f32.mrf.mxu0 }
 0x3ce   : > { %v4925_v56 = vsel %vm4835_vm6, %v4790_v11, %v4880_v12  ;;  %v4791_v50 = vadd.f32 %v4699_v42, %v4269_v37  ;;  %v4270_v61 = vadd.f32 %v4182_v55, %v9763_v36 }
 0x3cf   : > { %v4977_v20 = vadd.f32 %v9852_v1, %v4925_v56  ;;  %v7414_v9 = vpop.f32.mrf.mxu1  ;;  %v7548_v58 = vpop.f32.mrf.mxu0 }
 0x3d0   : > { %vm4836_vm7 = vcmp.ge.f32.partialorder %v4791_v50, 0.0  ;;  %v4881_v49 = vmul.f32 0.2, %v4791_v50 }
 0x3d1   : > { %5023 = vst.msk [vmem:[%s9857_s20 + $0x100] sm:$0xff] %vm4990_vm4, %v4977_v20  ;;  %v4187_v13 = vpop.f32.mrf.mxu1  ;;  %v4704_v19 = vpop.f32.mrf.mxu0 }
 0x3d2   : > { %v4926_v27 = vsel %vm4836_vm7, %v4791_v50, %v4881_v49  ;;  %v4792_v38 = vadd.f32 %v4704_v19, %v4270_v61  ;;  %v4271_v17 = vadd.f32 %v4187_v13, %v9774_v62 }
 0x3d3   : > { %v4978_v48 = vadd.f32 %v9852_v1, %v4926_v27  ;;  %v7417_v44 = vpop.f32.mrf.mxu1  ;;  %v7551_v8 = vpop.f32.mrf.mxu0 }
 0x3d4   : > { %vm4837_vm8 = vcmp.ge.f32.partialorder %v4792_v38, 0.0  ;;  %v4882_v18 = vmul.f32 0.2, %v4792_v38 }
 0x3d5   : > { %5024 = vst.msk [vmem:[%s9857_s20 + $0x108] sm:$0xff] %vm4990_vm4, %v4978_v48  ;;  %v4192_v36 = vpop.f32.mrf.mxu1  ;;  %v4709_v24 = vpop.f32.mrf.mxu0 }
 0x3d6   : > { %v4927_v60 = vsel %vm4837_vm8, %v4792_v38, %v4882_v18  ;;  %v4793_v52 = vadd.f32 %v4709_v24, %v4271_v17  ;;  %v4272_v23 = vadd.f32 %v4192_v36, %v9785_v25 }
 0x3d7   : > { %v4979_v51 = vadd.f32 %v9852_v1, %v4927_v60  ;;  %v7420_v57 = vpop.f32.mrf.mxu1  ;;  %v7554_v26 = vpop.f32.mrf.mxu0 }
 0x3d8   : > { %vm4838_vm9 = vcmp.ge.f32.partialorder %v4793_v52, 0.0  ;;  %v4883_v22 = vmul.f32 0.2, %v4793_v52 }
 0x3d9   : > { %5025 = vst.msk [vmem:[%s9857_s20 + $0x110] sm:$0xff] %vm4990_vm4, %v4979_v51  ;;  %v4197_v62 = vpop.f32.mrf.mxu1  ;;  %v4714_v15 = vpop.f32.mrf.mxu0 }
 0x3da   : > { %v4928_v10 = vsel %vm4838_vm9, %v4793_v52, %v4883_v22  ;;  %v4794_v45 = vadd.f32 %v4714_v15, %v4272_v23  ;;  %v4273_v29 = vadd.f32 %v4197_v62, %v9796_v43 }
 0x3db   : > { %v4980_v33 = vadd.f32 %v9852_v1, %v4928_v10  ;;  %v7423_v59 = vpop.f32.mrf.mxu1  ;;  %v7557_v16 = vpop.f32.mrf.mxu0 }
 0x3dc   : > { %vm4839_vm10 = vcmp.ge.f32.partialorder %v4794_v45, 0.0  ;;  %v4884_v54 = vmul.f32 0.2, %v4794_v45 }
 0x3dd   : > { %5026 = vst.msk [vmem:[%s9857_s20 + $0x118] sm:$0xff] %vm4990_vm4, %v4980_v33  ;;  %v4202_v25 = vpop.f32.mrf.mxu1  ;;  %v4719_v30 = vpop.f32.mrf.mxu0 }
 0x3de   : > { %v4929_v46 = vsel %vm4839_vm10, %v4794_v45, %v4884_v54  ;;  %v4795_v7 = vadd.f32 %v4719_v30, %v4273_v29  ;;  %v4274_v31 = vadd.f32 %v4202_v25, %v9807_v63 }
 0x3df   : > { %v4981_v4 = vadd.f32 %v9852_v1, %v4929_v46  ;;  %v7426_v35 = vpop.f32.mrf.mxu1  ;;  %v7560_v3 = vpop.f32.mrf.mxu0 }
 0x3e0   : > { %vm4840_vm11 = vcmp.ge.f32.partialorder %v4795_v7, 0.0  ;;  %v4885_v34 = vmul.f32 0.2, %v4795_v7 }
 0x3e1   : > { %5027 = vst.msk [vmem:[%s9857_s20 + $0x120] sm:$0xff] %vm4990_vm4, %v4981_v4  ;;  %v4207_v43 = vpop.f32.mrf.mxu1  ;;  %v4724_v5 = vpop.f32.mrf.mxu0 }
 0x3e2   : > { %v4930_v6 = vsel %vm4840_vm11, %v4795_v7, %v4885_v34  ;;  %v4796_v39 = vadd.f32 %v4724_v5, %v4274_v31  ;;  %v4275_v40 = vadd.f32 %v4207_v43, %v9818_v41 }
 0x3e3   : > { %v4982_v21 = vadd.f32 %v9852_v1, %v4930_v6  ;;  %v7429_v11 = vpop.f32.mrf.mxu1  ;;  %v7563_v28 = vpop.f32.mrf.mxu0 }
 0x3e4   : > { %vm4841_vm12 = vcmp.ge.f32.partialorder %v4796_v39, 0.0  ;;  %v4886_v32 = vmul.f32 0.2, %v4796_v39 }
 0x3e5   : > { %5028 = vst.msk [vmem:[%s9857_s20 + $0x128] sm:$0xff] %vm4990_vm4, %v4982_v21  ;;  %v4212_v63 = vpop.f32.mrf.mxu1  ;;  %v4729_v37 = vpop.f32.mrf.mxu0 }
 0x3e6   : > { %v4931_v12 = vsel %vm4841_vm12, %v4796_v39, %v4886_v32  ;;  %v4797_v55 = vadd.f32 %v4729_v37, %v4275_v40  ;;  %v4276_v20 = vadd.f32 %v4212_v63, %v9829_v47 }
 0x3e7   : > { %v4983_v42 = vadd.f32 %v9852_v1, %v4931_v12  ;;  %v7432_v56 = vpop.f32.mrf.mxu1  ;;  %v7566_v50 = vpop.f32.mrf.mxu0 }
 0x3e8   : > { %vm4842_vm13 = vcmp.ge.f32.partialorder %v4797_v55, 0.0  ;;  %v4887_v9 = vmul.f32 0.2, %v4797_v55 }
 0x3e9   : > { %5029 = vst.msk [vmem:[%s9857_s20 + $0x130] sm:$0xff] %vm4990_vm4, %v4983_v42  ;;  %v4217_v41 = vpop.f32.mrf.mxu1  ;;  %v4734_v58 = vpop.f32.mrf.mxu0 }
 0x3ea   : > { %v4932_v61 = vsel %vm4842_vm13, %v4797_v55, %v4887_v9  ;;  %v4798_v49 = vadd.f32 %v4734_v58, %v4276_v20  ;;  %v4277_v38 = vadd.f32 %v4217_v41, %v9836_v53 }
 0x3eb   : > { %v4984_v13 = vadd.f32 %v9852_v1, %v4932_v61  ;;  %v7435_v19 = vpop.f32.mrf.mxu1  ;;  %v7569_v27 = vpop.f32.mrf.mxu0 }
 0x3ec   : > { %vm4843_vm14 = vcmp.ge.f32.partialorder %v4798_v49, 0.0  ;;  %v4888_v48 = vmul.f32 0.2, %v4798_v49 }
 0x3ed   : > { %5030 = vst.msk [vmem:[%s9857_s20 + $0x138] sm:$0xff] %vm4990_vm4, %v4984_v13  ;;  %v4222_v47 = vpop.f32.mrf.mxu1  ;;  %v4739_v44 = vpop.f32.mrf.mxu0 }
 0x3ee   : > { %v4933_v8 = vsel %vm4843_vm14, %v4798_v49, %v4888_v48  ;;  %v4799_v17 = vadd.f32 %v4739_v44, %v4277_v38  ;;  %v4278_v60 = vadd.f32 %v4222_v47, %v9839_v0 }
 0x3ef   : > { %v4985_v18 = vadd.f32 %v9852_v1, %v4933_v8  ;;  %v7438_v36 = vpop.f32.mrf.mxu1  ;;  %v7572_v24 = vpop.f32.mrf.mxu0 }
 0x3f0   : > { %vm4844_vm15 = vcmp.ge.f32.partialorder %v4799_v17, 0.0  ;;  %v4889_v52 = vmul.f32 0.2, %v4799_v17 }
 0x3f1   : > { %5031 = vst.msk [vmem:[%s9857_s20 + $0x140] sm:$0xff] %vm4990_vm4, %v4985_v18  ;;  %v4227_v53 = vpop.f32.mrf.mxu1  ;;  %v4744_v51 = vpop.f32.mrf.mxu0 }
 0x3f2   : > { %v4934_v57 = vsel %vm4844_vm15, %v4799_v17, %v4889_v52  ;;  %v4800_v26 = vadd.f32 %v4744_v51, %v4278_v60  ;;  %v4279_v15 = vadd.f32 %v4227_v53, %v9842_v14 }
 0x3f3   : > { %v4986_v23 = vadd.f32 %v9852_v1, %v4934_v57  ;;  %v7441_v22 = vpop.f32.mrf.mxu1  ;;  %v7575_v62 = vpop.f32.mrf.mxu0 }
 0x3f4   : > { %vm4845_vm0 = vcmp.ge.f32.partialorder %v4800_v26, 0.0  ;;  %v4890_v10 = vmul.f32 0.2, %v4800_v26 }
 0x3f5   : > { %5032 = vst.msk [vmem:[%s9857_s20 + $0x148] sm:$0xff] %vm4990_vm4, %v4986_v23  ;;  %v4232_v0 = vpop.f32.mrf.mxu1  ;;  %v4749_v45 = vpop.f32.mrf.mxu0 }
 0x3f6   : > { %v4935_v33 = vsel %vm4845_vm0, %v4800_v26, %v4890_v10  ;;  %v4801_v59 = vadd.f32 %v4749_v45, %v4279_v15  ;;  %v4280_v25 = vadd.f32 %v4232_v0, %v9844_v2 }
 0x3f7   : > { %v4987_v16 = vadd.f32 %v9852_v1, %v4935_v33  ;;  %v7444_v29 = vpop.f32.mrf.mxu1  ;;  %v7578_v54 = vpop.f32.mrf.mxu0 }
 0x3f8   : > { %vm4846_vm1 = vcmp.ge.f32.partialorder %v4801_v59, 0.0  ;;  %v4891_v30 = vmul.f32 0.2, %v4801_v59 }
 0x3f9   : > { %5033 = vst.msk [vmem:[%s9857_s20 + $0x150] sm:$0xff] %vm4990_vm4, %v4987_v16  ;;  %v4754_v14 = vpop.f32.mrf.mxu0 }
 0x3fa   : > { %v4936_v46 = vsel %vm4846_vm1, %v4801_v59, %v4891_v30  ;;  %v4802_v7 = vadd.f32 %v4754_v14, %v4280_v25 }
 0x3fb   : > { %v4988_v4 = vadd.f32 %v9852_v1, %v4936_v46  ;;  %v7581_v35 = vpop.f32.mrf.mxu0 }
 0x3fc   : > { %vm4847_vm2 = vcmp.ge.f32.partialorder %v4802_v7, 0.0  ;;  %v4892_v3 = vmul.f32 0.2, %v4802_v7 }
 0x3fd   : > { %5034 = vst.msk [vmem:[%s9857_s20 + $0x158] sm:$0xff] %vm4990_vm4, %v4988_v4 }
 0x3fe   : > { %v4937_v31 = vsel %vm4847_vm2, %v4802_v7, %v4892_v3 }
 0x3ff   : > { %v4989_v34 = vadd.f32 %v9852_v1, %v4937_v31 }
 0x401   : > { %5035 = vst.msk [vmem:[%s9857_s20 + $0x160] sm:$0xff] %vm4990_vm4, %v4989_v34 }
 0x402 PF: > { %s13_s14 = sadd.s32 1, %s7634_s14   ;;  %s10050_s12 = smov %s7630_s13 }
 0x403   : > { %p10_p5 = scmp.ge.s32.totalorder %s13_s14, 4   ;;  %s10051_s13 = smov %s10053_s15 }
 0x405   :  { %12 = sbr.rel (!%p10_p5) target bundleno = 2 (0x2), region = 79 }

</bundles_post_ra>
